<compile_context>
chip_gen: v7x
topology: tpu7x:2x2x1
jax: 0.10.0
libtpu: 0.0.40
codegen_flags: <defaults>
</compile_context>

<pallas_src>
import jax
import jax.numpy as jnp
from jax import lax
from jax.experimental import pallas as pl
from jax.experimental.pallas import tpu as pltpu

EPS = 1e-5


def linear_layernorm_kernel(x_ref, w_ref, gamma_ref, beta_ref, o_ref):
    # x_ref:     (M, Cin)    f32 activations (cast to bf16 in-kernel)
    # w_ref:     (Cin, Cout) bf16 weight, already (in, out) layout
    # gamma_ref: (1, Cout)   f32 LayerNorm scale
    # beta_ref:  (1, Cout)   f32 LayerNorm shift
    # o_ref:     (M, Cout)   f32 output
    x_bf16 = x_ref[...].astype(jnp.bfloat16)
    y = jnp.dot(x_bf16, w_ref[...], preferred_element_type=jnp.float32)

    # LayerNorm over last dim, biased variance (torch.nn.LayerNorm semantics), f32.
    mean = jnp.mean(y, axis=-1, keepdims=True)
    centered = y - mean
    var = jnp.mean(centered * centered, axis=-1, keepdims=True)
    y_norm = centered * lax.rsqrt(var + EPS)
    o_ref[...] = (y_norm * gamma_ref[...] + beta_ref[...]).astype(o_ref.dtype)


def prepare_params(weight, gamma, beta):
    """One-time parameter preparation (NOT on the per-call hot path).

    weight: PyTorch-layout (Cout, Cin) f32  ->  (Cin, Cout) bf16
    gamma/beta: (Cout,) f32                ->  (1, Cout) f32
    """
    w_t = jnp.asarray(weight).T.astype(jnp.bfloat16)
    g2 = jnp.asarray(gamma).reshape(1, -1).astype(jnp.float32)
    b2 = jnp.asarray(beta).reshape(1, -1).astype(jnp.float32)
    return w_t, g2, b2


def linear_layernorm(x, w_t_bf16, gamma2d, beta2d):
    """x: (B, H, W, Cin) f32; w_t_bf16: (Cin, Cout) bf16; gamma2d/beta2d: (1, Cout) f32."""
    B, H, W, Cin = x.shape
    Cout = w_t_bf16.shape[1]
    M = B * H * W

    # Pure-metadata reshape; no pad, no cast, no slice.
    x2d = x.reshape(M, Cin)

    vmem = pl.BlockSpec(memory_space=pltpu.MemorySpace.VMEM)
    out2d = pl.pallas_call(
        linear_layernorm_kernel,
        out_shape=jax.ShapeDtypeStruct((M, Cout), jnp.float32),
        in_specs=[vmem, vmem, vmem, vmem],   # full arrays resident in VMEM, no grid
        out_specs=vmem,
    )(x2d, w_t_bf16, gamma2d, beta2d)

    return out2d.reshape(B, H, W, Cout)


if __name__ == "__main__":
    key = jax.random.PRNGKey(0)
    k_x, k_w = jax.random.split(key)

    B, Hs, Ws, Cin, Cout = 1, 7, 7, 1536, 768

    # Deterministic synthetic parameters (shapes from the module's __init__).
    x = jax.random.normal(k_x, (B, Hs, Ws, Cin), dtype=jnp.float32)
    bound = 1.0 / (Cin ** 0.5)
    weight = jax.random.uniform(k_w, (Cout, Cin), minval=-bound, maxval=bound,
                                dtype=jnp.float32)          # PyTorch layout (out, in)
    gamma = jnp.ones((Cout,), dtype=jnp.float32)             # LayerNorm default init
    beta = jnp.zeros((Cout,), dtype=jnp.float32)

    # One-time prep (transpose + bf16 cast happen here, NOT per forward call).
    w_t, g2, b2 = prepare_params(weight, gamma, beta)

    fwd = jax.jit(linear_layernorm)
    out = fwd(x, w_t, g2, b2)
    jax.block_until_ready(out)

    # Reference in pure f32 (module semantics). bf16 matmul quantization makes the
    # kernel approximate, so tolerance is loosened vs an f32-only version.
    ref = x.reshape(-1, Cin) @ weight.T
    mu = ref.mean(-1, keepdims=True)
    va = ((ref - mu) ** 2).mean(-1, keepdims=True)
    ref = ((ref - mu) / jnp.sqrt(va + EPS)) * gamma + beta
    ref = ref.reshape(B, Hs, Ws, Cout)

    assert out.shape == (B, Hs, Ws, Cout)
    err = float(jnp.max(jnp.abs(out - ref)))
    assert err < 3e-2, f"max abs error {err}"

    print("KERNEL_OK")
</pallas_src>

<mosaic_0001>
module attributes {stable_mosaic.version = 11 : i64} {
  func.func @linear_layernorm_kernel(%arg0: memref<49x1536xf32, #tpu.memory_space<vmem>>, %arg1: memref<1536x768xbf16, #tpu.memory_space<vmem>>, %arg2: memref<1x768xf32, #tpu.memory_space<vmem>>, %arg3: memref<1x768xf32, #tpu.memory_space<vmem>>, %arg4: memref<49x768xf32, #tpu.memory_space<vmem>>) attributes {dimension_semantics = [], scalar_prefetch = 0 : i64, scratch_operands = 0 : i64, tpu.core_type = #tpu.core_type<tc>} {
    %c0 = arith.constant 0 : index
    %c0_0 = arith.constant 0 : index
    %0 = vector.load %arg0[%c0, %c0_0] : memref<49x1536xf32, #tpu.memory_space<vmem>>, vector<49x1536xf32>
    %1 = arith.truncf %0 : vector<49x1536xf32> to vector<49x1536xbf16>
    %c0_1 = arith.constant 0 : index
    %c0_2 = arith.constant 0 : index
    %2 = vector.load %arg1[%c0_1, %c0_2] : memref<1536x768xbf16, #tpu.memory_space<vmem>>, vector<1536x768xbf16>
    %cst = arith.constant dense<0.000000e+00> : vector<49x768xf32>
    %3 = tpu.matmul %1, %2, %cst {dimension_numbers = #tpu.dot_dimension_numbers<[1], [0], [0], [1], [0, 0, 1, 1], [], []>} : vector<49x1536xbf16>, vector<1536x768xbf16>, vector<49x768xf32> -> vector<49x768xf32>
    %cst_3 = arith.constant dense<0.000000e+00> : vector<49xf32>
    %4 = vector.multi_reduction <add>, %3, %cst_3 [1] : vector<49x768xf32> to vector<49xf32>
    %5 = vector.shape_cast %4 : vector<49xf32> to vector<49x1xf32>
    %cst_4 = arith.constant 7.680000e+02 : f32
    %6 = vector.broadcast %cst_4 : f32 to vector<49x1xf32>
    %7 = arith.divf %5, %6 : vector<49x1xf32>
    %8 = vector.broadcast %7 : vector<49x1xf32> to vector<49x768xf32>
    %9 = arith.subf %3, %8 : vector<49x768xf32>
    %10 = arith.mulf %9, %9 : vector<49x768xf32>
    %cst_5 = arith.constant dense<0.000000e+00> : vector<49xf32>
    %11 = vector.multi_reduction <add>, %10, %cst_5 [1] : vector<49x768xf32> to vector<49xf32>
    %12 = vector.shape_cast %11 : vector<49xf32> to vector<49x1xf32>
    %cst_6 = arith.constant 7.680000e+02 : f32
    %13 = vector.broadcast %cst_6 : f32 to vector<49x1xf32>
    %14 = arith.divf %12, %13 : vector<49x1xf32>
    %cst_7 = arith.constant 9.99999974E-6 : f32
    %15 = vector.broadcast %cst_7 : f32 to vector<49x1xf32>
    %16 = arith.addf %14, %15 : vector<49x1xf32>
    %17 = math.rsqrt %16 : vector<49x1xf32>
    %18 = vector.broadcast %17 : vector<49x1xf32> to vector<49x768xf32>
    %19 = arith.mulf %9, %18 : vector<49x768xf32>
    %c0_8 = arith.constant 0 : index
    %c0_9 = arith.constant 0 : index
    %20 = vector.load %arg2[%c0_8, %c0_9] : memref<1x768xf32, #tpu.memory_space<vmem>>, vector<1x768xf32>
    %21 = vector.broadcast %20 : vector<1x768xf32> to vector<49x768xf32>
    %22 = arith.mulf %19, %21 : vector<49x768xf32>
    %c0_10 = arith.constant 0 : index
    %c0_11 = arith.constant 0 : index
    %23 = vector.load %arg3[%c0_10, %c0_11] : memref<1x768xf32, #tpu.memory_space<vmem>>, vector<1x768xf32>
    %24 = vector.broadcast %23 : vector<1x768xf32> to vector<49x768xf32>
    %25 = arith.addf %22, %24 : vector<49x768xf32>
    %c0_12 = arith.constant 0 : index
    %c0_13 = arith.constant 0 : index
    %26 = vector.load %arg4[%c0_12, %c0_13] : memref<49x768xf32, #tpu.memory_space<vmem>>, vector<49x768xf32>
    tpu.vector_store %arg4[%c0_12, %c0_13], %25 {strides = array<i32>} : memref<49x768xf32, #tpu.memory_space<vmem>>, vector<49x768xf32>,
    return
  }
}

</mosaic_0001>

<bundles_post_ra>
// kernel: linear_layernorm.1
= control target key start
LH: loop header
LB: loop body
LE: loop exit
PB: predicated region body
PF: predicated region fallthrough
CT: control target
= control target key end

     0   :  { %9 = vsyncpa [#allocation3], 0  ;;  %s8338_s0 = inlined_call_operand.vmem [shape: f32[49,1536], index: 0, kind: input, shape index: {}]   ;;  %s8339_s1 = inlined_call_operand.hbm [shape: bf16[1536,768], index: 1, kind: input, shape index: {}]   ;;  %s8340_s2 = inlined_call_operand.hbm [shape: f32[1,768], index: 2, kind: input, shape index: {}]   ;;  %s8341_s3 = inlined_call_operand.hbm [shape: f32[1,768], index: 3, kind: input, shape index: {}]   ;;  %s8342_s4 = inlined_call_operand.vmem [shape: f32[49,768], index: 4, kind: output, shape index: {}]  }
   0x1   :  { %10 = vsyncpa [#allocation5], 0  ;;  %s7149_s15 = smov [#allocation4]   ;;  %s7150_s17 = smov [#allocation2]  }
   0x2   :  { %s31_s16 = sshll.u32 %s7149_s15, 4  ;;  %s18_s18 = sshll.u32 %s7150_s17, 4  ;;  %s32_s16 = int_to_ptr.vmem [resolvable:$true] %s31_s16  ;;  %s7179_s18 = int_to_ptr.vmem [resolvable:$true] %s18_s18 }
   0x3   :  { %s7079_s21 = scalar_lea.hbm %s8340_s2, 96 }
   0x4   :  { %p7080_p0 = scmp.ne.s32.totalorder %s8340_s2, %s7079_s21  ;;  %p7083_p1 = scmp.lt.u32.totalorder %s7079_s21, %s8340_s2 }
   0x6   :  { %p7085_p2 = pnand %p7083_p1, %p7080_p0 }
   0x8   :  { %7088 = shalt.err (!%p7085_p2)
}
   0x9   :  { %s7089_s26 = scalar_lea.vmem %s32_s16, 96  ;;  %p7094_p4 = scmp.lt.s32.totalorder %s32_s16, %s32_s16 }
   0xa   :  { %p7090_p3 = scmp.ne.s32.totalorder %s32_s16, %s7089_s26  ;;  %p7095_p5 = scmp.lt.s32.totalorder %s7089_s26, %s7089_s26 }
   0xc   :  { %p7096_p6 = por %p7095_p5, %p7094_p4 }
   0xe   :  { %p7097_p7 = pnand %p7096_p6, %p7090_p3 }
  0x10   :  { %7100 = shalt.err (!%p7097_p7)
}
  0x11   :  { %34 = dma.hbm_to_vmem [thread:$0]  %s8340_s2, 96, %s32_s16, [#allocation5]  }
  0x12   :  { %s7101_s5 = scalar_lea.hbm %s8339_s1, 73728 }
  0x13   :  { %p7102_p8 = scmp.ne.s32.totalorder %s8339_s1, %s7101_s5  ;;  %p7105_p9 = scmp.lt.u32.totalorder %s7101_s5, %s8339_s1 }
  0x15   :  { %p7107_p10 = pnand %p7105_p9, %p7102_p8 }
  0x17   :  { %7110 = shalt.err (!%p7107_p10)
}
  0x18   :  { %s7111_s10 = scalar_lea.vmem %s7179_s18, 73728  ;;  %p7116_p12 = scmp.lt.s32.totalorder %s7179_s18, %s7179_s18 }
  0x19   :  { %p7112_p11 = scmp.ne.s32.totalorder %s7179_s18, %s7111_s10  ;;  %p7117_p13 = scmp.lt.s32.totalorder %s7111_s10, %s7111_s10 }
  0x1b   :  { %p7118_p0 = por %p7117_p13, %p7116_p12 }
  0x1d   :  { %p7119_p1 = pnand %p7118_p0, %p7112_p11 }
  0x1f   :  { %7122 = shalt.err (!%p7119_p1)
}
  0x20   :  { %s7151_s2 = smov 384   ;;  %s7152_s11 = smov 24  }
  0x21   :  { %24 = dma.hbm_to_vmem [thread:$0]  %s8339_s1, 73728, %s7179_s18, [#allocation3], %s7151_s2, %s7151_s2, %s7152_s11  }
  0x22   :  { %s7153_s14 = smov [#allocation6]   ;;  %s7123_s19 = scalar_lea.hbm %s8341_s3, 96 }
  0x23   :  { %s41_s15 = sshll.u32 %s7153_s14, 4  ;;  %p7124_p2 = scmp.ne.s32.totalorder %s8341_s3, %s7123_s19  ;;  %s42_s15 = int_to_ptr.vmem [resolvable:$true] %s41_s15 }
  0x24   :  { %p7127_p3 = scmp.lt.u32.totalorder %s7123_s19, %s8341_s3 }
  0x26   :  { %p7129_p4 = pnand %p7127_p3, %p7124_p2 }
  0x28   :  { %7132 = shalt.err (!%p7129_p4)
}
  0x29   :  { %s7133_s24 = scalar_lea.vmem %s42_s15, 96  ;;  %p7138_p6 = scmp.lt.s32.totalorder %s42_s15, %s42_s15 }
  0x2a   :  { %p7134_p5 = scmp.ne.s32.totalorder %s42_s15, %s7133_s24  ;;  %p7139_p7 = scmp.lt.s32.totalorder %s7133_s24, %s7133_s24 }
  0x2c   :  { %p7140_p8 = por %p7139_p7, %p7138_p6 }
  0x2e   :  { %p7141_p9 = pnand %p7140_p8, %p7134_p5 }
  0x30   :  { %7144 = shalt.err (!%p7141_p9)
}
  0x31   :  { %44 = dma.hbm_to_vmem [thread:$0]  %s8341_s3, 96, %s42_s15, [#allocation5]  }
  0x32   :  { %7145 = dma.done.wait [#allocation3], 73728  }
  0x33   :  { %7146 = vsyncadd [#allocation3], 4294893568 }
  0x34   :  { %7147 = dma.done.wait [#allocation5], 192  }
  0x35   :  { %7148 = vsyncadd [#allocation5], 4294967104  ;;  %v6201_v0 = vld [vmem:[#allocation2 + $0x4] ss:$24 sps:$4 sm:$0xff]   ;;  %v6205_v2 = vld [vmem:[#allocation2] ss:$24 sps:$4 sm:$0xff]  }
  0x36   :  { %v6203_v1 = vld [vmem:[#allocation2 + $0x904] ss:$24 sps:$4 sm:$0xff]   ;;  %3642 = vmatprep.subr.bf16.mxu1 %v6201_v0  ;;  %v6206_v3 = vld [vmem:[#allocation2 + $0x900] ss:$24 sps:$4 sm:$0xff]   ;;  %v6207_v4 = vld [vmem:[#allocation2 + $0x34] ss:$24 sps:$4 sm:$0xff]  }
  0x37   :  { %3855 = vmatprep.subr.bf16.mxu0 %v6203_v1  ;;  %3643 = vmatpush1.bf16.msra.mxu1 %v6205_v2  ;;  %v6209_v5 = vld [vmem:[#allocation2 + $0x934] ss:$24 sps:$4 sm:$0xff]   ;;  %v6211_v6 = vld [vmem:[#allocation2 + $0x30] ss:$24 sps:$4 sm:$0xff]   ;;  %v6213_v8 = vld [vmem:[#allocation2 + $0x64] ss:$24 sps:$4 sm:$0xff]  }
  0x38   :  { %3856 = vmatpush1.bf16.msra.mxu0 %v6206_v3  ;;  %3644 = vmatprep.subr.bf16.mxu1 %v6207_v4  ;;  %v6212_v7 = vld [vmem:[#allocation2 + $0x930] ss:$24 sps:$4 sm:$0xff]   ;;  %v6215_v9 = vld [vmem:[#allocation2 + $0x964] ss:$24 sps:$4 sm:$0xff]   ;;  %v6217_v10 = vld [vmem:[#allocation2 + $0x60] ss:$24 sps:$4 sm:$0xff]  }
  0x39   :  { %3857 = vmatprep.subr.bf16.mxu0 %v6209_v5  ;;  %v6218_v11 = vld [vmem:[#allocation2 + $0x960] ss:$24 sps:$4 sm:$0xff]   ;;  %v6219_v12 = vld [vmem:[#allocation2 + $0x94] ss:$24 sps:$4 sm:$0xff]   ;;  %v6223_v14 = vld [vmem:[#allocation2 + $0x90] ss:$24 sps:$4 sm:$0xff]  }
  0x3a   :  { %v6221_v13 = vld [vmem:[#allocation2 + $0x994] ss:$24 sps:$4 sm:$0xff]   ;;  %v6224_v15 = vld [vmem:[#allocation2 + $0x990] ss:$24 sps:$4 sm:$0xff]   ;;  %v6225_v16 = vld [vmem:[#allocation2 + $0xc4] ss:$24 sps:$4 sm:$0xff]  }
  0x3b   :  { %3645 = vmatpush1.bf16.msra.mxu1 %v6211_v6  ;;  %v6227_v17 = vld [vmem:[#allocation2 + $0x9c4] ss:$24 sps:$4 sm:$0xff]   ;;  %v6229_v18 = vld [vmem:[#allocation2 + $0xc0] ss:$24 sps:$4 sm:$0xff]   ;;  %v6231_v20 = vld [vmem:[#allocation2 + $0xf4] ss:$24 sps:$4 sm:$0xff]  }
  0x3c   :  { %3858 = vmatpush1.bf16.msra.mxu0 %v6212_v7  ;;  %3646 = vmatprep.subr.bf16.mxu1 %v6213_v8  ;;  %v6230_v19 = vld [vmem:[#allocation2 + $0x9c0] ss:$24 sps:$4 sm:$0xff]   ;;  %v6233_v21 = vld [vmem:[#allocation2 + $0x9f4] ss:$24 sps:$4 sm:$0xff]   ;;  %v6235_v22 = vld [vmem:[#allocation2 + $0xf0] ss:$24 sps:$4 sm:$0xff]  }
  0x3d   :  { %3859 = vmatprep.subr.bf16.mxu0 %v6215_v9  ;;  %v6236_v23 = vld [vmem:[#allocation2 + $0x9f0] ss:$24 sps:$4 sm:$0xff]   ;;  %v6237_v24 = vld [vmem:[#allocation2 + $0x124] ss:$24 sps:$4 sm:$0xff]   ;;  %v6241_v26 = vld [vmem:[#allocation2 + $0x120] ss:$24 sps:$4 sm:$0xff]  }
  0x3e   :  { %v6239_v25 = vld [vmem:[#allocation2 + $0xa24] ss:$24 sps:$4 sm:$0xff]   ;;  %v6242_v27 = vld [vmem:[#allocation2 + $0xa20] ss:$24 sps:$4 sm:$0xff]   ;;  %v6243_v28 = vld [vmem:[#allocation2 + $0x154] ss:$24 sps:$4 sm:$0xff]  }
  0x3f   :  { %3647 = vmatpush1.bf16.msra.mxu1 %v6217_v10  ;;  %v6245_v29 = vld [vmem:[#allocation2 + $0xa54] ss:$24 sps:$4 sm:$0xff]   ;;  %v6247_v30 = vld [vmem:[#allocation2 + $0x150] ss:$24 sps:$4 sm:$0xff]   ;;  %v6249_v32 = vld [vmem:[#allocation2 + $0x184] ss:$24 sps:$4 sm:$0xff]  }
  0x40   :  { %3860 = vmatpush1.bf16.msra.mxu0 %v6218_v11  ;;  %3648 = vmatprep.subr.bf16.mxu1 %v6219_v12  ;;  %v6248_v31 = vld [vmem:[#allocation2 + $0xa50] ss:$24 sps:$4 sm:$0xff]   ;;  %v6251_v33 = vld [vmem:[#allocation2 + $0xa84] ss:$24 sps:$4 sm:$0xff]   ;;  %v6253_v34 = vld [vmem:[#allocation2 + $0x180] ss:$24 sps:$4 sm:$0xff]  }
  0x41   :  { %3861 = vmatprep.subr.bf16.mxu0 %v6221_v13  ;;  %v6254_v35 = vld [vmem:[#allocation2 + $0xa80] ss:$24 sps:$4 sm:$0xff]   ;;  %v6255_v36 = vld [vmem:[#allocation2 + $0x1b4] ss:$24 sps:$4 sm:$0xff]   ;;  %v6259_v38 = vld [vmem:[#allocation2 + $0x1b0] ss:$24 sps:$4 sm:$0xff]  }
  0x42   :  { %v6257_v37 = vld [vmem:[#allocation2 + $0xab4] ss:$24 sps:$4 sm:$0xff]   ;;  %v6260_v39 = vld [vmem:[#allocation2 + $0xab0] ss:$24 sps:$4 sm:$0xff]   ;;  %v6261_v40 = vld [vmem:[#allocation2 + $0x1e4] ss:$24 sps:$4 sm:$0xff]  }
  0x43   :  { %3649 = vmatpush1.bf16.msra.mxu1 %v6223_v14  ;;  %v6263_v41 = vld [vmem:[#allocation2 + $0xae4] ss:$24 sps:$4 sm:$0xff]   ;;  %v6265_v42 = vld [vmem:[#allocation2 + $0x1e0] ss:$24 sps:$4 sm:$0xff]   ;;  %v6267_v44 = vld [vmem:[#allocation2 + $0x214] ss:$24 sps:$4 sm:$0xff]  }
  0x44   :  { %3862 = vmatpush1.bf16.msra.mxu0 %v6224_v15  ;;  %3650 = vmatprep.subr.bf16.mxu1 %v6225_v16  ;;  %v6266_v43 = vld [vmem:[#allocation2 + $0xae0] ss:$24 sps:$4 sm:$0xff]   ;;  %v6269_v45 = vld [vmem:[#allocation2 + $0xb14] ss:$24 sps:$4 sm:$0xff]   ;;  %v6271_v46 = vld [vmem:[#allocation2 + $0x210] ss:$24 sps:$4 sm:$0xff]  }
  0x45   :  { %3863 = vmatprep.subr.bf16.mxu0 %v6227_v17  ;;  %v6272_v47 = vld [vmem:[#allocation2 + $0xb10] ss:$24 sps:$4 sm:$0xff]   ;;  %v6273_v50 = vld [vmem:[#allocation2 + $0x244] ss:$24 sps:$4 sm:$0xff]   ;;  %v6277_v56 = vld [vmem:[#allocation2 + $0x240] ss:$24 sps:$4 sm:$0xff]  }
  0x46   :  { %v55_v48 = vld [vmem:[%s8338_s0 + $0x8] sm:$0xff]  ;;  %v6275_v51 = vld [vmem:[#allocation2 + $0xb44] ss:$24 sps:$4 sm:$0xff]   ;;  %v6278_v57 = vld [vmem:[#allocation2 + $0xb40] ss:$24 sps:$4 sm:$0xff]   ;;  %vm4962_vm0 = vcmask 1040384  }
  0x47   :  { %3651 = vmatpush1.bf16.msra.mxu1 %v6229_v18  ;;  %v67_v49 = vld [vmem:[%s8338_s0 + $0x68] sm:$0xff]  ;;  %v61_v53 = vld [vmem:[%s8338_s0 + $0x38] sm:$0xff]  ;;  %v54_v6 = vld [vmem:[%s8338_s0] sm:$0xff] }
  0x48   :  { %3864 = vmatpush1.bf16.msra.mxu0 %v6230_v19  ;;  %3652 = vmatprep.subr.bf16.mxu1 %v6231_v20  ;;  %v7228_v52 = vpack.c.bf16 %v67_v49, %v55_v48  ;;  %v73_v54 = vld [vmem:[%s8338_s0 + $0x98] sm:$0xff]  ;;  %v6279_v58 = vld [vmem:[#allocation2 + $0x274] ss:$24 sps:$4 sm:$0xff]   ;;  %v6283_v60 = vld [vmem:[#allocation2 + $0x270] ss:$24 sps:$4 sm:$0xff]  }
  0x49   :  { %3865 = vmatprep.subr.bf16.mxu0 %v6233_v21  ;;  %v7237_v55 = vpack.c.bf16 %v73_v54, %v61_v53  ;;  %v6281_v59 = vld [vmem:[#allocation2 + $0xb74] ss:$24 sps:$4 sm:$0xff]   ;;  %v6284_v61 = vld [vmem:[#allocation2 + $0xb70] ss:$24 sps:$4 sm:$0xff]   ;;  %v6285_v62 = vld [vmem:[#allocation2 + $0x2a4] ss:$24 sps:$4 sm:$0xff]  }
  0x4a   :  { %3674 = vmatprep.mubr.bf16.mxu1 %v7228_v52  ;;  %v6287_v63 = vld [vmem:[#allocation2 + $0xba4] ss:$24 sps:$4 sm:$0xff]   ;;  %v6289_v0 = vld [vmem:[#allocation2 + $0x2a0] ss:$24 sps:$4 sm:$0xff]   ;;  %v6291_v2 = vld [vmem:[#allocation2 + $0x2d4] ss:$24 sps:$4 sm:$0xff]  }
  0x4b   :  { %3653 = vmatpush1.bf16.msra.mxu1 %v6235_v22  ;;  %3887 = vmatprep.mubr.bf16.mxu0 %v7237_v55  ;;  %v6290_v1 = vld [vmem:[#allocation2 + $0xba0] ss:$24 sps:$4 sm:$0xff]   ;;  %v6293_v3 = vld [vmem:[#allocation2 + $0xbd4] ss:$24 sps:$4 sm:$0xff]   ;;  %v6295_v4 = vld [vmem:[#allocation2 + $0x2d0] ss:$24 sps:$4 sm:$0xff]  }
  0x4c   :  { %3866 = vmatpush1.bf16.msra.mxu0 %v6236_v23  ;;  %3654 = vmatprep.subr.bf16.mxu1 %v6237_v24  ;;  %v6296_v5 = vld [vmem:[#allocation2 + $0xbd0] ss:$24 sps:$4 sm:$0xff]   ;;  %v6299_v7 = vld [vmem:[#allocation2 + $0x304] ss:$24 sps:$4 sm:$0xff]   ;;  %v6297_v12 = vld [vmem:[#allocation2 + $0x300] ss:$24 sps:$4 sm:$0xff]  }
  0x4d   :  { %3867 = vmatprep.subr.bf16.mxu0 %v6239_v25  ;;  %v66_v8 = vld [vmem:[%s8338_s0 + $0x60] sm:$0xff]  ;;  %v60_v9 = vld [vmem:[%s8338_s0 + $0x30] sm:$0xff]  ;;  %v79_v24 = vld [vmem:[%s8338_s0 + $0xc8] sm:$0xff] }
  0x4e   :  { %v72_v10 = vld [vmem:[%s8338_s0 + $0x90] sm:$0xff]  ;;  %v6302_v11 = vld [vmem:[#allocation2 + $0xc04] ss:$24 sps:$4 sm:$0xff]   ;;  %v6300_v13 = vld [vmem:[#allocation2 + $0xc00] ss:$24 sps:$4 sm:$0xff]   ;;  %v7252_v14 = vpack.c.bf16 %v66_v8, %v54_v6 }
  0x4f   :  { %3655 = vmatpush1.bf16.msra.mxu1 %v6241_v26  ;;  %v7254_v15 = vpack.c.bf16 %v72_v10, %v60_v9  ;;  %v6305_v16 = vld [vmem:[#allocation2 + $0x334] ss:$24 sps:$4 sm:$0xff]   ;;  %v6303_v18 = vld [vmem:[#allocation2 + $0x330] ss:$24 sps:$4 sm:$0xff]   ;;  %v6311_v20 = vld [vmem:[#allocation2 + $0x364] ss:$24 sps:$4 sm:$0xff]  }
  0x50   :  { %3868 = vmatpush1.bf16.msra.mxu0 %v6242_v27  ;;  %3656 = vmatprep.subr.bf16.mxu1 %v6243_v28  ;;  %v6308_v17 = vld [vmem:[#allocation2 + $0xc34] ss:$24 sps:$4 sm:$0xff]   ;;  %v6306_v19 = vld [vmem:[#allocation2 + $0xc30] ss:$24 sps:$4 sm:$0xff]   ;;  %v6314_v21 = vld [vmem:[#allocation2 + $0xc64] ss:$24 sps:$4 sm:$0xff]  }
  0x51   :  { %3869 = vmatprep.subr.bf16.mxu0 %v6245_v29  ;;  %v6309_v22 = vld [vmem:[#allocation2 + $0x360] ss:$24 sps:$4 sm:$0xff]   ;;  %v91_v25 = vld [vmem:[%s8338_s0 + $0x128] sm:$0xff]  ;;  %v6335_v54 = vld [vmem:[#allocation2 + $0x424] ss:$24 sps:$4 sm:$0xff]  }
  0x52   :  { %v6312_v23 = vld [vmem:[#allocation2 + $0xc60] ss:$24 sps:$4 sm:$0xff]   ;;  %v6317_v26 = vld [vmem:[#allocation2 + $0x394] ss:$24 sps:$4 sm:$0xff]   ;;  %v7264_v28 = vpack.c.bf16 %v91_v25, %v79_v24  ;;  %v6315_v29 = vld [vmem:[#allocation2 + $0x390] ss:$24 sps:$4 sm:$0xff]  }
  0x53   :  { %3657 = vmatpush1.bf16.msra.mxu1 %v6247_v30  ;;  %v6320_v27 = vld [vmem:[#allocation2 + $0xc94] ss:$24 sps:$4 sm:$0xff]   ;;  %v6318_v30 = vld [vmem:[#allocation2 + $0xc90] ss:$24 sps:$4 sm:$0xff]   ;;  %v121_v53 = vld [vmem:[%s8338_s0 + $0x218] sm:$0xff] }
  0x54   :  { %3870 = vmatpush1.bf16.msra.mxu0 %v6248_v31  ;;  %3658 = vmatprep.subr.bf16.mxu1 %v6249_v32  ;;  %v85_v31 = vld [vmem:[%s8338_s0 + $0xf8] sm:$0xff]  ;;  %v6327_v49 = vld [vmem:[#allocation2 + $0x3f0] ss:$24 sps:$4 sm:$0xff]   ;;  %v126_v10 = vld [vmem:[%s8338_s0 + $0x240] sm:$0x1] }
  0x55   :  { %3871 = vmatprep.subr.bf16.mxu0 %v6251_v33  ;;  %v97_v32 = vld [vmem:[%s8338_s0 + $0x158] sm:$0xff]  ;;  %v6342_v9 = vld [vmem:[#allocation2 + $0xd50] ss:$24 sps:$4 sm:$0xff]  }
  0x56   :  { %v6323_v33 = vld [vmem:[#allocation2 + $0x3c4] ss:$24 sps:$4 sm:$0xff]   ;;  %v133_v6 = vld [vmem:[%s8338_s0 + $0x278] sm:$0x1]  ;;  %v63_v25 = vld [vmem:[%s8338_s0 + $0x48] sm:$0xff] }
  0x57   :  { %3659 = vmatpush1.bf16.msra.mxu1 %v6253_v34  ;;  %v6326_v34 = vld [vmem:[#allocation2 + $0xcc4] ss:$24 sps:$4 sm:$0xff]   ;;  %v7338_v8 = vpack.c.bf16 %v133_v6, %v133_v6 }
  0x58   :  { %3872 = vmatpush1.bf16.msra.mxu0 %v6254_v35  ;;  %3660 = vmatprep.subr.bf16.mxu1 %v6255_v36  ;;  %v7273_v35 = vpack.c.bf16 %v97_v32, %v85_v31  ;;  %v78_v36 = vld [vmem:[%s8338_s0 + $0xc0] sm:$0xff] }
  0x59   :  { %3873 = vmatprep.subr.bf16.mxu0 %v6257_v37  ;;  %v90_v37 = vld [vmem:[%s8338_s0 + $0x120] sm:$0xff] }
  0x5a   :  { %v6359_v31 = vld [vmem:[#allocation2 + $0x4e4] ss:$24 sps:$4 sm:$0xff]  }
  0x5b   :  { %3661 = vmatpush1.bf16.msra.mxu1 %v6259_v38  ;;  %v84_v38 = vld [vmem:[%s8338_s0 + $0xf0] sm:$0xff]  ;;  %v6362_v32 = vld [vmem:[#allocation2 + $0xde4] ss:$24 sps:$4 sm:$0xff]  }
  0x5c   :  { %3874 = vmatpush1.bf16.msra.mxu0 %v6260_v39  ;;  %3662 = vmatprep.subr.bf16.mxu1 %v6261_v40  ;;  %v7284_v39 = vpack.c.bf16 %v90_v37, %v78_v36  ;;  %v96_v40 = vld [vmem:[%s8338_s0 + $0x150] sm:$0xff]  ;;  %v6398_v6 = vld [vmem:[#allocation2 + $0xf04] ss:$24 sps:$4 sm:$0xff]  }
  0x5d   :  { %3875 = vmatprep.subr.bf16.mxu0 %v6263_v41  ;;  %v7290_v41 = vpack.c.bf16 %v96_v40, %v84_v38  ;;  %v6365_v36 = vld [vmem:[#allocation2 + $0x514] ss:$24 sps:$4 sm:$0xff]   ;;  %v6363_v38 = vld [vmem:[#allocation2 + $0x510] ss:$24 sps:$4 sm:$0xff]  }
  0x5e   :  { %v6368_v37 = vld [vmem:[#allocation2 + $0xe14] ss:$24 sps:$4 sm:$0xff]   ;;  %v6366_v40 = vld [vmem:[#allocation2 + $0xe10] ss:$24 sps:$4 sm:$0xff]  }
  0x5f   :  { %3663 = vmatpush1.bf16.msra.mxu1 %v6265_v42  ;;  %v6321_v42 = vld [vmem:[#allocation2 + $0x3c0] ss:$24 sps:$4 sm:$0xff]  }
  0x60   :  { %3876 = vmatpush1.bf16.msra.mxu0 %v6266_v43  ;;  %3664 = vmatprep.subr.bf16.mxu1 %v6267_v44  ;;  %v6324_v43 = vld [vmem:[#allocation2 + $0xcc0] ss:$24 sps:$4 sm:$0xff]   ;;  %v103_v44 = vld [vmem:[%s8338_s0 + $0x188] sm:$0xff] }
  0x61   :  { %3877 = vmatprep.subr.bf16.mxu0 %v6269_v45  ;;  %v115_v45 = vld [vmem:[%s8338_s0 + $0x1e8] sm:$0xff] }
  0x62   :  { %v7299_v48 = vpack.c.bf16 %v115_v45, %v103_v44  ;;  %v6369_v44 = vld [vmem:[#allocation2 + $0x540] ss:$24 sps:$4 sm:$0xff]  }
  0x63   :  { %3665 = vmatpush1.bf16.msra.mxu1 %v6271_v46  ;;  %v6329_v46 = vld [vmem:[#allocation2 + $0x3f4] ss:$24 sps:$4 sm:$0xff]   ;;  %v6372_v45 = vld [vmem:[#allocation2 + $0xe40] ss:$24 sps:$4 sm:$0xff]  }
  0x64   :  { %3878 = vmatpush1.bf16.msra.mxu0 %v6272_v47  ;;  %3666 = vmatprep.subr.bf16.mxu1 %v6273_v50  ;;  %v6332_v47 = vld [vmem:[#allocation2 + $0xcf4] ss:$24 sps:$4 sm:$0xff]   ;;  %v6330_v50 = vld [vmem:[#allocation2 + $0xcf0] ss:$24 sps:$4 sm:$0xff]  }
  0x65   :  { %3879 = vmatprep.subr.bf16.mxu0 %v6275_v51  ;;  %v109_v51 = vld [vmem:[%s8338_s0 + $0x1b8] sm:$0xff] }
  0x67   :  { %3667 = vmatpush1.bf16.msra.mxu1 %v6277_v56  ;;  %v6338_v56 = vld [vmem:[#allocation2 + $0xd24] ss:$24 sps:$4 sm:$0xff]  }
  0x68   :  { %3880 = vmatpush1.bf16.msra.mxu0 %v6278_v57  ;;  %3668 = vmatprep.subr.bf16.mxu1 %v6279_v58  ;;  %v7309_v57 = vpack.c.bf16 %v121_v53, %v109_v51  ;;  %v102_v58 = vld [vmem:[%s8338_s0 + $0x180] sm:$0xff] }
  0x69   :  { %3881 = vmatprep.subr.bf16.mxu0 %v6281_v59  ;;  %v114_v59 = vld [vmem:[%s8338_s0 + $0x1e0] sm:$0xff] }
  0x6a   :  { %v6383_v51 = vld [vmem:[#allocation2 + $0x5a4] ss:$24 sps:$4 sm:$0xff]  }
  0x6b   :  { %3669 = vmatpush1.bf16.msra.mxu1 %v6283_v60  ;;  %v108_v60 = vld [vmem:[%s8338_s0 + $0x1b0] sm:$0xff]  ;;  %v6386_v53 = vld [vmem:[#allocation2 + $0xea4] ss:$24 sps:$4 sm:$0xff]  }
  0x6c   :  { %3882 = vmatpush1.bf16.msra.mxu0 %v6284_v61  ;;  %3670 = vmatprep.subr.bf16.mxu1 %v6285_v62  ;;  %v7320_v61 = vpack.c.bf16 %v114_v59, %v102_v58  ;;  %v120_v62 = vld [vmem:[%s8338_s0 + $0x210] sm:$0xff] }
  0x6d   :  { %3883 = vmatprep.subr.bf16.mxu0 %v6287_v63  ;;  %v7326_v63 = vpack.c.bf16 %v120_v62, %v108_v60  ;;  %v6389_v58 = vld [vmem:[#allocation2 + $0x5d4] ss:$24 sps:$4 sm:$0xff]   ;;  %v6387_v60 = vld [vmem:[#allocation2 + $0x5d0] ss:$24 sps:$4 sm:$0xff]  }
  0x6e   :  { %v6392_v59 = vld [vmem:[#allocation2 + $0xed4] ss:$24 sps:$4 sm:$0xff]   ;;  %v6390_v62 = vld [vmem:[#allocation2 + $0xed0] ss:$24 sps:$4 sm:$0xff]  }
  0x6f   :  { %3671 = vmatpush1.bf16.msra.mxu1 %v6289_v0  ;;  %v6333_v0 = vld [vmem:[#allocation2 + $0x420] ss:$24 sps:$4 sm:$0xff]  }
  0x70   :  { %3884 = vmatpush1.bf16.msra.mxu0 %v6290_v1  ;;  %3672 = vmatprep.subr.bf16.mxu1 %v6291_v2  ;;  %v6336_v1 = vld [vmem:[#allocation2 + $0xd20] ss:$24 sps:$4 sm:$0xff]   ;;  %v127_v2 = vld [vmem:[%s8338_s0 + $0x248] sm:$0x1] }
  0x71   :  { %3885 = vmatprep.subr.bf16.mxu0 %v6293_v3  ;;  %v6341_v3 = vld [vmem:[#allocation2 + $0x454] ss:$24 sps:$4 sm:$0xff]  }
  0x73   :  { %3673 = vmatpush1.bf16.msra.mxu1 %v6295_v4  ;;  %v6344_v4 = vld [vmem:[#allocation2 + $0xd54] ss:$24 sps:$4 sm:$0xff]  }
  0x74   :  { %3886 = vmatpush1.bf16.msra.mxu0 %v6296_v5  ;;  %3713 = vmatprep.subr.bf16.mxu1 %v6299_v7  ;;  %v7332_v5 = vpack.c.bf16 %v127_v2, %v127_v2  ;;  %v6339_v7 = vld [vmem:[#allocation2 + $0x450] ss:$24 sps:$4 sm:$0xff]   ;;  %v62_v2 = vld [vmem:[%s8338_s0 + $0x40] sm:$0xff] }
  0x75   :  { %3926 = vmatprep.subr.bf16.mxu0 %v6302_v11  ;;  %v132_v11 = vld [vmem:[%s8338_s0 + $0x270] sm:$0x1] }
  0x76   :  { %3675 = vmatmul.mubr.bf16.vlgmr.msra.gmra.mrb[0].mxu1 %v7252_v14 }
  0x77   :  { %3888 = vmatmul.mubr.bf16.vlgmr.msra.gmra.mrb[0].mxu0 %v7254_v15  ;;  %3714 = vmatpush1.bf16.msra.mxu1 %v6297_v12  ;;  %v6347_v12 = vld [vmem:[#allocation2 + $0x484] ss:$24 sps:$4 sm:$0xff]  }
  0x78   :  { %3927 = vmatpush1.bf16.msra.mxu0 %v6300_v13  ;;  %3715 = vmatprep.subr.bf16.mxu1 %v6305_v16  ;;  %v7347_v13 = vpack.c.bf16 %v126_v10, %v126_v10  ;;  %v6350_v16 = vld [vmem:[#allocation2 + $0xd84] ss:$24 sps:$4 sm:$0xff]  }
  0x79   :  { %3928 = vmatprep.subr.bf16.mxu0 %v6308_v17  ;;  %3684 = vmatprep.mubr.bf16.mxu1 %v7264_v28  ;;  %v6345_v17 = vld [vmem:[#allocation2 + $0x480] ss:$24 sps:$4 sm:$0xff]  }
  0x7a   :  { %3897 = vmatprep.mubr.bf16.mxu0 %v7273_v35  ;;  %v81_v10 = vld [vmem:[%s8338_s0 + $0xd8] sm:$0xff] }
  0x7b   :  { %3716 = vmatpush1.bf16.msra.mxu1 %v6303_v18  ;;  %v6348_v18 = vld [vmem:[#allocation2 + $0xd80] ss:$24 sps:$4 sm:$0xff]  }
  0x7c   :  { %3929 = vmatpush1.bf16.msra.mxu0 %v6306_v19  ;;  %3717 = vmatprep.subr.bf16.mxu1 %v6311_v20  ;;  %v7350_v19 = vpack.c.bf16 %v132_v11, %v132_v11  ;;  %v57_v20 = vld [vmem:[%s8338_s0 + $0x18] sm:$0xff] }
  0x7d   :  { %3930 = vmatprep.subr.bf16.mxu0 %v6314_v21  ;;  %v69_v21 = vld [vmem:[%s8338_s0 + $0x78] sm:$0xff] }
  0x7e   :  { %3685 = vmatmul.mubr.bf16.gmra.mrb[4].mxu1 %v7284_v39  ;;  %v7359_v24 = vpack.c.bf16 %v69_v21, %v57_v20  ;;  %v6401_v20 = vld [vmem:[#allocation2 + $0x634] ss:$24 sps:$4 sm:$0xff]  }
  0x7f   :  { %3718 = vmatpush1.bf16.msra.mxu1 %v6309_v22  ;;  %3898 = vmatmul.mubr.bf16.gmra.mrb[4].mxu0 %v7290_v41  ;;  %v6353_v22 = vld [vmem:[#allocation2 + $0x4b4] ss:$24 sps:$4 sm:$0xff]  }
  0x80   :  { %3931 = vmatpush1.bf16.msra.mxu0 %v6312_v23  ;;  %3719 = vmatprep.subr.bf16.mxu1 %v6317_v26  ;;  %v6356_v23 = vld [vmem:[#allocation2 + $0xdb4] ss:$24 sps:$4 sm:$0xff]  }
  0x81   :  { %3932 = vmatprep.subr.bf16.mxu0 %v6320_v27  ;;  %3694 = vmatprep.mubr.bf16.mxu1 %v7299_v48  ;;  %v75_v26 = vld [vmem:[%s8338_s0 + $0xa8] sm:$0xff] }
  0x82   :  { %3907 = vmatprep.mubr.bf16.mxu0 %v7309_v57  ;;  %v7369_v27 = vpack.c.bf16 %v75_v26, %v63_v25  ;;  %v6404_v21 = vld [vmem:[#allocation2 + $0xf34] ss:$24 sps:$4 sm:$0xff]   ;;  %v6402_v26 = vld [vmem:[#allocation2 + $0xf30] ss:$24 sps:$4 sm:$0xff]  }
  0x83   :  { %3720 = vmatpush1.bf16.msra.mxu1 %v6315_v29  ;;  %v6351_v29 = vld [vmem:[#allocation2 + $0x4b0] ss:$24 sps:$4 sm:$0xff]  }
  0x84   :  { %3933 = vmatpush1.bf16.msra.mxu0 %v6318_v30  ;;  %3721 = vmatprep.subr.bf16.mxu1 %v6323_v33  ;;  %v6354_v30 = vld [vmem:[#allocation2 + $0xdb0] ss:$24 sps:$4 sm:$0xff]   ;;  %v6357_v33 = vld [vmem:[#allocation2 + $0x4e0] ss:$24 sps:$4 sm:$0xff]  }
  0x85   :  { %3934 = vmatprep.subr.bf16.mxu0 %v6326_v34  ;;  %v6360_v34 = vld [vmem:[#allocation2 + $0xde0] ss:$24 sps:$4 sm:$0xff]  }
  0x86   :  { %3695 = vmatmul.mubr.bf16.gmra.mrb[8].mxu1 %v7320_v61 }
  0x87   :  { %3722 = vmatpush1.bf16.msra.mxu1 %v6321_v42  ;;  %3908 = vmatmul.mubr.bf16.gmra.mrb[8].mxu0 %v7326_v63  ;;  %v6371_v42 = vld [vmem:[#allocation2 + $0x544] ss:$24 sps:$4 sm:$0xff]  }
  0x88   :  { %3935 = vmatpush1.bf16.msra.mxu0 %v6324_v43  ;;  %3723 = vmatprep.subr.bf16.mxu1 %v6329_v46  ;;  %v6374_v43 = vld [vmem:[#allocation2 + $0xe44] ss:$24 sps:$4 sm:$0xff]   ;;  %v6377_v46 = vld [vmem:[#allocation2 + $0x574] ss:$24 sps:$4 sm:$0xff]  }
  0x89   :  { %3936 = vmatprep.subr.bf16.mxu0 %v6332_v47  ;;  %3704 = vmatprep.mubr.bf16.mxu1 %v7332_v5  ;;  %v6380_v47 = vld [vmem:[#allocation2 + $0xe74] ss:$24 sps:$4 sm:$0xff]  }
  0x8a   :  { %3917 = vmatprep.mubr.bf16.mxu0 %v7338_v8 }
  0x8b   :  { %3724 = vmatpush1.bf16.msra.mxu1 %v6327_v49  ;;  %v6375_v49 = vld [vmem:[#allocation2 + $0x570] ss:$24 sps:$4 sm:$0xff]  }
  0x8c   :  { %3937 = vmatpush1.bf16.msra.mxu0 %v6330_v50  ;;  %3725 = vmatprep.subr.bf16.mxu1 %v6335_v54  ;;  %v6378_v50 = vld [vmem:[#allocation2 + $0xe70] ss:$24 sps:$4 sm:$0xff]   ;;  %v6381_v54 = vld [vmem:[#allocation2 + $0x5a0] ss:$24 sps:$4 sm:$0xff]  }
  0x8d   :  { %3938 = vmatprep.subr.bf16.mxu0 %v6338_v56  ;;  %v6384_v56 = vld [vmem:[#allocation2 + $0xea0] ss:$24 sps:$4 sm:$0xff]  }
  0x8e   :  { %3705 = vmatmul.mubr.bf16.gmra.mrb[12].mxu1 %v7347_v13 }
  0x8f   :  { %3726 = vmatpush1.bf16.msra.mxu1 %v6333_v0  ;;  %3918 = vmatmul.mubr.bf16.gmra.mrb[12].mxu0 %v7350_v19  ;;  %v56_v0 = vld [vmem:[%s8338_s0 + $0x10] sm:$0xff] }
  0x90   :  { %3939 = vmatpush1.bf16.msra.mxu0 %v6336_v1  ;;  %3727 = vmatprep.subr.bf16.mxu1 %v6341_v3  ;;  %v68_v1 = vld [vmem:[%s8338_s0 + $0x70] sm:$0xff]  ;;  %v74_v3 = vld [vmem:[%s8338_s0 + $0xa0] sm:$0xff] }
  0x91   :  { %3940 = vmatprep.subr.bf16.mxu0 %v6344_v4  ;;  %3745 = vmatprep.mubr.bf16.mxu1 %v7359_v24  ;;  %v6395_v4 = vld [vmem:[#allocation2 + $0x604] ss:$24 sps:$4 sm:$0xff]   ;;  %v7387_v11 = vpack.c.bf16 %v68_v1, %v56_v0  ;;  %v6417_v0 = vld [vmem:[#allocation2 + $0x6c0] ss:$24 sps:$4 sm:$0xff]  }
  0x92   :  { %3958 = vmatprep.mubr.bf16.mxu0 %v7369_v27  ;;  %v6420_v1 = vld [vmem:[#allocation2 + $0xfc0] ss:$24 sps:$4 sm:$0xff]  }
  0x93   :  { %3728 = vmatpush1.bf16.msra.mxu1 %v6339_v7  ;;  %v6393_v7 = vld [vmem:[#allocation2 + $0x600] ss:$24 sps:$4 sm:$0xff]  }
  0x94   :  { %3941 = vmatpush1.bf16.msra.mxu0 %v6342_v9  ;;  %3729 = vmatprep.subr.bf16.mxu1 %v6347_v12  ;;  %v6396_v9 = vld [vmem:[#allocation2 + $0xf00] ss:$24 sps:$4 sm:$0xff]   ;;  %v7389_v12 = vpack.c.bf16 %v74_v3, %v62_v2 }
  0x95   :  { %3942 = vmatprep.subr.bf16.mxu0 %v6350_v16  ;;  %v93_v16 = vld [vmem:[%s8338_s0 + $0x138] sm:$0xff] }
  0x97   :  { %3730 = vmatpush1.bf16.msra.mxu1 %v6345_v17  ;;  %v87_v17 = vld [vmem:[%s8338_s0 + $0x108] sm:$0xff] }
  0x98   :  { %3943 = vmatpush1.bf16.msra.mxu0 %v6348_v18  ;;  %3731 = vmatprep.subr.bf16.mxu1 %v6353_v22  ;;  %v99_v18 = vld [vmem:[%s8338_s0 + $0x168] sm:$0xff] }
  0x99   :  { %3944 = vmatprep.subr.bf16.mxu0 %v6356_v23  ;;  %v6399_v22 = vld [vmem:[#allocation2 + $0x630] ss:$24 sps:$4 sm:$0xff]   ;;  %v7400_v23 = vpack.c.bf16 %v93_v16, %v81_v10  ;;  %v7402_v25 = vpack.c.bf16 %v99_v18, %v87_v17 }
  0x9a   :  { %v6423_v17 = vld [vmem:[#allocation2 + $0x6f0] ss:$24 sps:$4 sm:$0xff]  }
  0x9b   :  { %3732 = vmatpush1.bf16.msra.mxu1 %v6351_v29  ;;  %v80_v29 = vld [vmem:[%s8338_s0 + $0xd0] sm:$0xff] }
  0x9c   :  { %3945 = vmatpush1.bf16.msra.mxu0 %v6354_v30  ;;  %3733 = vmatprep.subr.bf16.mxu1 %v6359_v31  ;;  %v92_v30 = vld [vmem:[%s8338_s0 + $0x130] sm:$0xff]  ;;  %v86_v31 = vld [vmem:[%s8338_s0 + $0x100] sm:$0xff] }
  0x9d   :  { %3946 = vmatprep.subr.bf16.mxu0 %v6362_v32  ;;  %v98_v32 = vld [vmem:[%s8338_s0 + $0x160] sm:$0xff]  ;;  %v6426_v18 = vld [vmem:[#allocation2 + $0xff0] ss:$24 sps:$4 sm:$0xff]  }
  0x9f   :  { %3734 = vmatpush1.bf16.msra.mxu1 %v6357_v33  ;;  %v6407_v33 = vld [vmem:[#allocation2 + $0x664] ss:$24 sps:$4 sm:$0xff]  }
  0xa0   :  { %3947 = vmatpush1.bf16.msra.mxu0 %v6360_v34  ;;  %3735 = vmatprep.subr.bf16.mxu1 %v6365_v36  ;;  %v6410_v34 = vld [vmem:[#allocation2 + $0xf64] ss:$24 sps:$4 sm:$0xff]   ;;  %v6405_v36 = vld [vmem:[#allocation2 + $0x660] ss:$24 sps:$4 sm:$0xff]  }
  0xa1   :  { %3948 = vmatprep.subr.bf16.mxu0 %v6368_v37  ;;  %v6408_v37 = vld [vmem:[#allocation2 + $0xf60] ss:$24 sps:$4 sm:$0xff]  }
  0xa3   :  { %3736 = vmatpush1.bf16.msra.mxu1 %v6363_v38  ;;  %v105_v38 = vld [vmem:[%s8338_s0 + $0x198] sm:$0xff] }
  0xa4   :  { %3949 = vmatpush1.bf16.msra.mxu0 %v6366_v40  ;;  %3737 = vmatprep.subr.bf16.mxu1 %v6371_v42  ;;  %v7423_v40 = vpack.c.bf16 %v92_v30, %v80_v29  ;;  %v7425_v42 = vpack.c.bf16 %v98_v32, %v86_v31  ;;  %v6429_v29 = vld [vmem:[#allocation2 + $0x720] ss:$24 sps:$4 sm:$0xff]   ;;  %v59_v31 = vld [vmem:[%s8338_s0 + $0x28] sm:$0xff] }
  0xa5   :  { %3950 = vmatprep.subr.bf16.mxu0 %v6374_v43  ;;  %v117_v43 = vld [vmem:[%s8338_s0 + $0x1f8] sm:$0xff]  ;;  %v71_v32 = vld [vmem:[%s8338_s0 + $0x88] sm:$0xff] }
  0xa6   :  { %v6432_v30 = vld [vmem:[#allocation2 + $0x1020] ss:$24 sps:$4 sm:$0xff]  }
  0xa7   :  { %3738 = vmatpush1.bf16.msra.mxu1 %v6369_v44  ;;  %v111_v44 = vld [vmem:[%s8338_s0 + $0x1c8] sm:$0xff] }
  0xa8   :  { %3951 = vmatpush1.bf16.msra.mxu0 %v6372_v45  ;;  %3739 = vmatprep.subr.bf16.mxu1 %v6377_v46  ;;  %v123_v45 = vld [vmem:[%s8338_s0 + $0x228] sm:$0xff] }
  0xa9   :  { %3952 = vmatprep.subr.bf16.mxu0 %v6380_v47  ;;  %v6413_v46 = vld [vmem:[#allocation2 + $0x694] ss:$24 sps:$4 sm:$0xff]  }
  0xaa   :  { %v6416_v47 = vld [vmem:[#allocation2 + $0xf94] ss:$24 sps:$4 sm:$0xff]  }
  0xab   :  { %3740 = vmatpush1.bf16.msra.mxu1 %v6375_v49  ;;  %v6411_v49 = vld [vmem:[#allocation2 + $0x690] ss:$24 sps:$4 sm:$0xff]  }
  0xac   :  { %3953 = vmatpush1.bf16.msra.mxu0 %v6378_v50  ;;  %3741 = vmatprep.subr.bf16.mxu1 %v6383_v51  ;;  %v6414_v50 = vld [vmem:[#allocation2 + $0xf90] ss:$24 sps:$4 sm:$0xff]   ;;  %v7436_v51 = vpack.c.bf16 %v117_v43, %v105_v38  ;;  %v6437_v38 = vld [vmem:[#allocation2 + $0x754] ss:$24 sps:$4 sm:$0xff]  }
  0xad   :  { %3954 = vmatprep.subr.bf16.mxu0 %v6386_v53  ;;  %v7438_v53 = vpack.c.bf16 %v123_v45, %v111_v44  ;;  %v6440_v43 = vld [vmem:[#allocation2 + $0x1054] ss:$24 sps:$4 sm:$0xff]   ;;  %v7496_v44 = vpack.c.bf16 %v71_v32, %v59_v31  ;;  %v6471_v31 = vld [vmem:[#allocation2 + $0x870] ss:$24 sps:$4 sm:$0xff]  }
  0xae   :  { %v6474_v32 = vld [vmem:[#allocation2 + $0x1170] ss:$24 sps:$4 sm:$0xff]  }
  0xaf   :  { %3742 = vmatpush1.bf16.msra.mxu1 %v6381_v54  ;;  %v6419_v54 = vld [vmem:[#allocation2 + $0x6c4] ss:$24 sps:$4 sm:$0xff]  }
  0xb0   :  { %3955 = vmatpush1.bf16.msra.mxu0 %v6384_v56  ;;  %3743 = vmatprep.subr.bf16.mxu1 %v6389_v58  ;;  %v104_v56 = vld [vmem:[%s8338_s0 + $0x190] sm:$0xff] }
  0xb1   :  { %3956 = vmatprep.subr.bf16.mxu0 %v6392_v59  ;;  %v116_v58 = vld [vmem:[%s8338_s0 + $0x1f0] sm:$0xff]  ;;  %v110_v59 = vld [vmem:[%s8338_s0 + $0x1c0] sm:$0xff] }
  0xb2   :  { %v7456_v2 = vpack.c.bf16 %v116_v58, %v104_v56  ;;  %v6444_v56 = vld [vmem:[#allocation2 + $0x1080] ss:$24 sps:$4 sm:$0xff]   ;;  %v6449_v58 = vld [vmem:[#allocation2 + $0x7b4] ss:$24 sps:$4 sm:$0xff]  }
  0xb3   :  { %3744 = vmatpush1.bf16.msra.mxu1 %v6387_v60  ;;  %v122_v60 = vld [vmem:[%s8338_s0 + $0x220] sm:$0xff] }
  0xb4   :  { %3957 = vmatpush1.bf16.msra.mxu0 %v6390_v62  ;;  %3784 = vmatprep.subr.bf16.mxu1 %v6395_v4  ;;  %v6422_v62 = vld [vmem:[#allocation2 + $0xfc4] ss:$24 sps:$4 sm:$0xff]   ;;  %v7458_v3 = vpack.c.bf16 %v122_v60, %v110_v59  ;;  %v129_v4 = vld [vmem:[%s8338_s0 + $0x258] sm:$0x1]  ;;  %v6452_v59 = vld [vmem:[#allocation2 + $0x10b4] ss:$24 sps:$4 sm:$0xff]  }
  0xb5   :  { %3997 = vmatprep.subr.bf16.mxu0 %v6398_v6  ;;  %v135_v6 = vld [vmem:[%s8338_s0 + $0x288] sm:$0x1]  ;;  %v7466_v10 = vpack.c.bf16 %v129_v4, %v129_v4  ;;  %v6453_v4 = vld [vmem:[#allocation2 + $0x7e0] ss:$24 sps:$4 sm:$0xff]  }
  0xb6   :  { %3746 = vmatmul.mubr.bf16.vlgmr.msra.gmra.mrb[0].mxu1 %v7387_v11  ;;  %v7468_v16 = vpack.c.bf16 %v135_v6, %v135_v6  ;;  %v6447_v60 = vld [vmem:[#allocation2 + $0x7b0] ss:$24 sps:$4 sm:$0xff]   ;;  %v6456_v6 = vld [vmem:[#allocation2 + $0x10e0] ss:$24 sps:$4 sm:$0xff]  }
  0xb7   :  { %3959 = vmatmul.mubr.bf16.vlgmr.msra.gmra.mrb[0].mxu0 %v7389_v12  ;;  %3785 = vmatpush1.bf16.msra.mxu1 %v6393_v7  ;;  %v6425_v7 = vld [vmem:[#allocation2 + $0x6f4] ss:$24 sps:$4 sm:$0xff]  }
  0xb8   :  { %3998 = vmatpush1.bf16.msra.mxu0 %v6396_v9  ;;  %3786 = vmatprep.subr.bf16.mxu1 %v6401_v20  ;;  %v6428_v9 = vld [vmem:[#allocation2 + $0xff4] ss:$24 sps:$4 sm:$0xff]   ;;  %v6431_v20 = vld [vmem:[#allocation2 + $0x724] ss:$24 sps:$4 sm:$0xff]  }
  0xb9   :  { %3999 = vmatprep.subr.bf16.mxu0 %v6404_v21  ;;  %3755 = vmatprep.mubr.bf16.mxu1 %v7400_v23  ;;  %v128_v21 = vld [vmem:[%s8338_s0 + $0x250] sm:$0x1] }
  0xba   :  { %3968 = vmatprep.mubr.bf16.mxu0 %v7402_v25 }
  0xbb   :  { %3787 = vmatpush1.bf16.msra.mxu1 %v6399_v22  ;;  %v134_v22 = vld [vmem:[%s8338_s0 + $0x280] sm:$0x1] }
  0xbc   :  { %4000 = vmatpush1.bf16.msra.mxu0 %v6402_v26  ;;  %3788 = vmatprep.subr.bf16.mxu1 %v6407_v33  ;;  %v6434_v26 = vld [vmem:[#allocation2 + $0x1024] ss:$24 sps:$4 sm:$0xff]   ;;  %v7486_v33 = vpack.c.bf16 %v128_v21, %v128_v21 }
  0xbd   :  { %4001 = vmatprep.subr.bf16.mxu0 %v6410_v34  ;;  %v7488_v34 = vpack.c.bf16 %v134_v22, %v134_v22  ;;  %v6470_v21 = vld [vmem:[#allocation2 + $0x1144] ss:$24 sps:$4 sm:$0xff]   ;;  %v6465_v22 = vld [vmem:[#allocation2 + $0x840] ss:$24 sps:$4 sm:$0xff]  }
  0xbe   :  { %3756 = vmatmul.mubr.bf16.gmra.mrb[4].mxu1 %v7423_v40 }
  0xbf   :  { %3969 = vmatmul.mubr.bf16.gmra.mrb[4].mxu0 %v7425_v42  ;;  %3789 = vmatpush1.bf16.msra.mxu1 %v6405_v36  ;;  %v65_v36 = vld [vmem:[%s8338_s0 + $0x58] sm:$0xff] }
  0xc0   :  { %4002 = vmatpush1.bf16.msra.mxu0 %v6408_v37  ;;  %3790 = vmatprep.subr.bf16.mxu1 %v6413_v46  ;;  %v77_v37 = vld [vmem:[%s8338_s0 + $0xb8] sm:$0xff]  ;;  %v6435_v46 = vld [vmem:[#allocation2 + $0x750] ss:$24 sps:$4 sm:$0xff]  }
  0xc1   :  { %4003 = vmatprep.subr.bf16.mxu0 %v6416_v47  ;;  %3765 = vmatprep.mubr.bf16.mxu1 %v7436_v51  ;;  %v7498_v45 = vpack.c.bf16 %v77_v37, %v65_v36  ;;  %v6438_v47 = vld [vmem:[#allocation2 + $0x1050] ss:$24 sps:$4 sm:$0xff]   ;;  %v6479_v36 = vld [vmem:[#allocation2 + $0x8a4] ss:$24 sps:$4 sm:$0xff]  }
  0xc2   :  { %3978 = vmatprep.mubr.bf16.mxu0 %v7438_v53  ;;  %v6482_v37 = vld [vmem:[#allocation2 + $0x11a4] ss:$24 sps:$4 sm:$0xff]  }
  0xc3   :  { %3791 = vmatpush1.bf16.msra.mxu1 %v6411_v49  ;;  %v6443_v49 = vld [vmem:[#allocation2 + $0x784] ss:$24 sps:$4 sm:$0xff]  }
  0xc4   :  { %4004 = vmatpush1.bf16.msra.mxu0 %v6414_v50  ;;  %3792 = vmatprep.subr.bf16.mxu1 %v6419_v54  ;;  %v6446_v50 = vld [vmem:[#allocation2 + $0x1084] ss:$24 sps:$4 sm:$0xff]   ;;  %v6441_v54 = vld [vmem:[#allocation2 + $0x780] ss:$24 sps:$4 sm:$0xff]  }
  0xc5   :  { %4005 = vmatprep.subr.bf16.mxu0 %v6422_v62  ;;  %v6450_v62 = vld [vmem:[#allocation2 + $0x10b0] ss:$24 sps:$4 sm:$0xff]  }
  0xc6   :  { %3766 = vmatmul.mubr.bf16.gmra.mrb[8].mxu1 %v7456_v2 }
  0xc7   :  { %3979 = vmatmul.mubr.bf16.gmra.mrb[8].mxu0 %v7458_v3  ;;  %3793 = vmatpush1.bf16.msra.mxu1 %v6417_v0  ;;  %v6455_v0 = vld [vmem:[#allocation2 + $0x7e4] ss:$24 sps:$4 sm:$0xff]  }
  0xc8   :  { %4006 = vmatpush1.bf16.msra.mxu0 %v6420_v1  ;;  %3794 = vmatprep.subr.bf16.mxu1 %v6425_v7  ;;  %v6458_v1 = vld [vmem:[#allocation2 + $0x10e4] ss:$24 sps:$4 sm:$0xff]   ;;  %v6461_v7 = vld [vmem:[#allocation2 + $0x814] ss:$24 sps:$4 sm:$0xff]  }
  0xc9   :  { %4007 = vmatprep.subr.bf16.mxu0 %v6428_v9  ;;  %3775 = vmatprep.mubr.bf16.mxu1 %v7466_v10  ;;  %v6464_v9 = vld [vmem:[#allocation2 + $0x1114] ss:$24 sps:$4 sm:$0xff]  }
  0xca   :  { %3988 = vmatprep.mubr.bf16.mxu0 %v7468_v16 }
  0xcb   :  { %3795 = vmatpush1.bf16.msra.mxu1 %v6423_v17  ;;  %v6459_v17 = vld [vmem:[#allocation2 + $0x810] ss:$24 sps:$4 sm:$0xff]  }
  0xcc   :  { %4008 = vmatpush1.bf16.msra.mxu0 %v6426_v18  ;;  %3796 = vmatprep.subr.bf16.mxu1 %v6431_v20  ;;  %v6462_v18 = vld [vmem:[#allocation2 + $0x1110] ss:$24 sps:$4 sm:$0xff]   ;;  %v6467_v20 = vld [vmem:[#allocation2 + $0x844] ss:$24 sps:$4 sm:$0xff]  }
  0xcd   :  { %4009 = vmatprep.subr.bf16.mxu0 %v6434_v26  ;;  %v6468_v26 = vld [vmem:[#allocation2 + $0x1140] ss:$24 sps:$4 sm:$0xff]  }
  0xce   :  { %3776 = vmatmul.mubr.bf16.gmra.mrb[12].mxu1 %v7486_v33 }
  0xcf   :  { %3989 = vmatmul.mubr.bf16.gmra.mrb[12].mxu0 %v7488_v34  ;;  %3797 = vmatpush1.bf16.msra.mxu1 %v6429_v29  ;;  %v6473_v29 = vld [vmem:[#allocation2 + $0x874] ss:$24 sps:$4 sm:$0xff]  }
  0xd0   :  { %4010 = vmatpush1.bf16.msra.mxu0 %v6432_v30  ;;  %3798 = vmatprep.subr.bf16.mxu1 %v6437_v38  ;;  %v6476_v30 = vld [vmem:[#allocation2 + $0x1174] ss:$24 sps:$4 sm:$0xff]   ;;  %v6477_v38 = vld [vmem:[#allocation2 + $0x8a0] ss:$24 sps:$4 sm:$0xff]  }
  0xd1   :  { %4011 = vmatprep.subr.bf16.mxu0 %v6440_v43  ;;  %3816 = vmatprep.mubr.bf16.mxu1 %v7496_v44  ;;  %v6480_v43 = vld [vmem:[#allocation2 + $0x11a0] ss:$24 sps:$4 sm:$0xff]  }
  0xd2   :  { %4029 = vmatprep.mubr.bf16.mxu0 %v7498_v45 }
  0xd3   :  { %3799 = vmatpush1.bf16.msra.mxu1 %v6435_v46  ;;  %v6485_v46 = vld [vmem:[#allocation2 + $0x8d4] ss:$24 sps:$4 sm:$0xff]  }
  0xd4   :  { %4012 = vmatpush1.bf16.msra.mxu0 %v6438_v47  ;;  %3800 = vmatprep.subr.bf16.mxu1 %v6443_v49  ;;  %v6488_v47 = vld [vmem:[#allocation2 + $0x11d4] ss:$24 sps:$4 sm:$0xff]   ;;  %v6483_v49 = vld [vmem:[#allocation2 + $0x8d0] ss:$24 sps:$4 sm:$0xff]  }
  0xd5   :  { %4013 = vmatprep.subr.bf16.mxu0 %v6446_v50  ;;  %v6486_v50 = vld [vmem:[#allocation2 + $0x11d0] ss:$24 sps:$4 sm:$0xff]  }
  0xd7   :  { %3801 = vmatpush1.bf16.msra.mxu1 %v6441_v54  ;;  %v58_v54 = vld [vmem:[%s8338_s0 + $0x20] sm:$0xff] }
  0xd8   :  { %4014 = vmatpush1.bf16.msra.mxu0 %v6444_v56  ;;  %3802 = vmatprep.subr.bf16.mxu1 %v6449_v58  ;;  %v70_v56 = vld [vmem:[%s8338_s0 + $0x80] sm:$0xff]  ;;  %v64_v58 = vld [vmem:[%s8338_s0 + $0x50] sm:$0xff] }
  0xd9   :  { %4015 = vmatprep.subr.bf16.mxu0 %v6452_v59  ;;  %v76_v59 = vld [vmem:[%s8338_s0 + $0xb0] sm:$0xff] }
  0xdb   :  { %3803 = vmatpush1.bf16.msra.mxu1 %v6447_v60  ;;  %v6491_v60 = vld [vmem:[#allocation2 + $0xc] ss:$24 sps:$4 sm:$0xff]  }
  0xdc   :  { %4016 = vmatpush1.bf16.msra.mxu0 %v6450_v62  ;;  %3804 = vmatprep.subr.bf16.mxu1 %v6455_v0  ;;  %v6494_v62 = vld [vmem:[#allocation2 + $0x14] ss:$24 sps:$4 sm:$0xff]   ;;  %v6489_v0 = vld [vmem:[#allocation2 + $0x8] ss:$24 sps:$4 sm:$0xff]  }
  0xdd   :  { %4017 = vmatprep.subr.bf16.mxu0 %v6458_v1  ;;  %v6492_v1 = vld [vmem:[#allocation2 + $0x10] ss:$24 sps:$4 sm:$0xff]  }
  0xdf   :  { %3805 = vmatpush1.bf16.msra.mxu1 %v6453_v4  ;;  %v83_v4 = vld [vmem:[%s8338_s0 + $0xe8] sm:$0xff] }
  0xe0   :  { %4018 = vmatpush1.bf16.msra.mxu0 %v6456_v6  ;;  %3806 = vmatprep.subr.bf16.mxu1 %v6461_v7  ;;  %v95_v6 = vld [vmem:[%s8338_s0 + $0x148] sm:$0xff]  ;;  %v7522_v7 = vpack.c.bf16 %v70_v56, %v58_v54 }
  0xe1   :  { %4019 = vmatprep.subr.bf16.mxu0 %v6464_v9  ;;  %v7524_v9 = vpack.c.bf16 %v76_v59, %v64_v58  ;;  %v113_v58 = vld [vmem:[%s8338_s0 + $0x1d8] sm:$0xff] }
  0xe2   :  { %v125_v59 = vld [vmem:[%s8338_s0 + $0x238] sm:$0xff] }
  0xe3   :  { %3807 = vmatpush1.bf16.msra.mxu1 %v6459_v17  ;;  %v89_v17 = vld [vmem:[%s8338_s0 + $0x118] sm:$0xff] }
  0xe4   :  { %4020 = vmatpush1.bf16.msra.mxu0 %v6462_v18  ;;  %3808 = vmatprep.subr.bf16.mxu1 %v6467_v20  ;;  %v101_v18 = vld [vmem:[%s8338_s0 + $0x178] sm:$0xff] }
  0xe5   :  { %4021 = vmatprep.subr.bf16.mxu0 %v6470_v21  ;;  %v6497_v20 = vld [vmem:[#allocation2 + $0x3c] ss:$24 sps:$4 sm:$0xff]  }
  0xe6   :  { %v6500_v21 = vld [vmem:[#allocation2 + $0x44] ss:$24 sps:$4 sm:$0xff]  }
  0xe7   :  { %3809 = vmatpush1.bf16.msra.mxu1 %v6465_v22  ;;  %v6495_v22 = vld [vmem:[#allocation2 + $0x38] ss:$24 sps:$4 sm:$0xff]  }
  0xe8   :  { %4022 = vmatpush1.bf16.msra.mxu0 %v6468_v26  ;;  %3810 = vmatprep.subr.bf16.mxu1 %v6473_v29  ;;  %v6498_v26 = vld [vmem:[#allocation2 + $0x40] ss:$24 sps:$4 sm:$0xff]   ;;  %v7532_v29 = vpack.c.bf16 %v95_v6, %v83_v4  ;;  %v7570_v6 = vpack.c.bf16 %v125_v59, %v113_v58 }
  0xe9   :  { %4023 = vmatprep.subr.bf16.mxu0 %v6476_v30  ;;  %v7534_v30 = vpack.c.bf16 %v101_v18, %v89_v17  ;;  %v106_v17 = vld [vmem:[%s8338_s0 + $0x1a0] sm:$0xff] }
  0xea   :  { %v118_v18 = vld [vmem:[%s8338_s0 + $0x200] sm:$0xff] }
  0xeb   :  { %3811 = vmatpush1.bf16.msra.mxu1 %v6471_v31  ;;  %v82_v31 = vld [vmem:[%s8338_s0 + $0xe0] sm:$0xff] }
  0xec   :  { %4024 = vmatpush1.bf16.msra.mxu0 %v6474_v32  ;;  %3812 = vmatprep.subr.bf16.mxu1 %v6479_v36  ;;  %v94_v32 = vld [vmem:[%s8338_s0 + $0x140] sm:$0xff]  ;;  %v88_v36 = vld [vmem:[%s8338_s0 + $0x110] sm:$0xff] }
  0xed   :  { %4025 = vmatprep.subr.bf16.mxu0 %v6482_v37  ;;  %v100_v37 = vld [vmem:[%s8338_s0 + $0x170] sm:$0xff]  ;;  %v7558_v54 = vpack.c.bf16 %v94_v32, %v82_v31  ;;  %v6513_v31 = vld [vmem:[#allocation2 + $0xc8] ss:$24 sps:$4 sm:$0xff]  }
  0xee   :  { %v7560_v56 = vpack.c.bf16 %v100_v37, %v88_v36  ;;  %v6516_v32 = vld [vmem:[#allocation2 + $0xd0] ss:$24 sps:$4 sm:$0xff]   ;;  %v7588_v36 = vpack.c.bf16 %v118_v18, %v106_v17 }
  0xef   :  { %3813 = vmatpush1.bf16.msra.mxu1 %v6477_v38  ;;  %v6503_v38 = vld [vmem:[#allocation2 + $0x6c] ss:$24 sps:$4 sm:$0xff]  }
  0xf0   :  { %4026 = vmatpush1.bf16.msra.mxu0 %v6480_v43  ;;  %3814 = vmatprep.subr.bf16.mxu1 %v6485_v46  ;;  %v6506_v43 = vld [vmem:[#allocation2 + $0x74] ss:$24 sps:$4 sm:$0xff]   ;;  %v6501_v46 = vld [vmem:[#allocation2 + $0x68] ss:$24 sps:$4 sm:$0xff]  }
  0xf1   :  { %4027 = vmatprep.subr.bf16.mxu0 %v6488_v47  ;;  %v6504_v47 = vld [vmem:[#allocation2 + $0x70] ss:$24 sps:$4 sm:$0xff]  }
  0xf3   :  { %3815 = vmatpush1.bf16.msra.mxu1 %v6483_v49  ;;  %v107_v49 = vld [vmem:[%s8338_s0 + $0x1a8] sm:$0xff] }
  0xf4   :  { %4028 = vmatpush1.bf16.msra.mxu0 %v6486_v50  ;;  %4068 = vmatprep.subr.bf16.mxu1 %v6491_v60  ;;  %v119_v50 = vld [vmem:[%s8338_s0 + $0x208] sm:$0xff]  ;;  %v6509_v60 = vld [vmem:[#allocation2 + $0x9c] ss:$24 sps:$4 sm:$0xff]  }
  0xf5   :  { %4494 = vmatprep.subr.bf16.mxu0 %v6494_v62  ;;  %v6512_v62 = vld [vmem:[#allocation2 + $0xa4] ss:$24 sps:$4 sm:$0xff]   ;;  %v7568_v4 = vpack.c.bf16 %v119_v50, %v107_v49  ;;  %v6519_v49 = vld [vmem:[#allocation2 + $0xf8] ss:$24 sps:$4 sm:$0xff]  }
  0xf6   :  { %3817 = vmatmul.mubr.bf16.vlgmr.msra.gmra.mrb[0].mxu1 %v7522_v7  ;;  %v6522_v50 = vld [vmem:[#allocation2 + $0x100] ss:$24 sps:$4 sm:$0xff]  }
  0xf7   :  { %4030 = vmatmul.mubr.bf16.vlgmr.msra.gmra.mrb[0].mxu0 %v7524_v9  ;;  %4069 = vmatpush1.bf16.msra.mxu1 %v6489_v0  ;;  %v6507_v0 = vld [vmem:[#allocation2 + $0x98] ss:$24 sps:$4 sm:$0xff]  }
  0xf8   :  { %4495 = vmatpush1.bf16.msra.mxu0 %v6492_v1  ;;  %4070 = vmatprep.subr.bf16.mxu1 %v6497_v20  ;;  %v6510_v1 = vld [vmem:[#allocation2 + $0xa0] ss:$24 sps:$4 sm:$0xff]   ;;  %v112_v20 = vld [vmem:[%s8338_s0 + $0x1d0] sm:$0xff] }
  0xf9   :  { %4496 = vmatprep.subr.bf16.mxu0 %v6500_v21  ;;  %3826 = vmatprep.mubr.bf16.mxu1 %v7532_v29  ;;  %v124_v21 = vld [vmem:[%s8338_s0 + $0x230] sm:$0xff] }
  0xfa   :  { %4039 = vmatprep.mubr.bf16.mxu0 %v7534_v30  ;;  %v7590_v37 = vpack.c.bf16 %v124_v21, %v112_v20  ;;  %v6525_v20 = vld [vmem:[#allocation2 + $0x128] ss:$24 sps:$4 sm:$0xff]  }
  0xfb   :  { %4071 = vmatpush1.bf16.msra.mxu1 %v6495_v22  ;;  %v6515_v22 = vld [vmem:[#allocation2 + $0xcc] ss:$24 sps:$4 sm:$0xff]   ;;  %v6528_v21 = vld [vmem:[#allocation2 + $0x130] ss:$24 sps:$4 sm:$0xff]  }
  0xfc   :  { %4497 = vmatpush1.bf16.msra.mxu0 %v6498_v26  ;;  %4072 = vmatprep.subr.bf16.mxu1 %v6503_v38  ;;  %v6518_v26 = vld [vmem:[#allocation2 + $0xd4] ss:$24 sps:$4 sm:$0xff]   ;;  %v131_v38 = vld [vmem:[%s8338_s0 + $0x268] sm:$0x1] }
  0xfd   :  { %4498 = vmatprep.subr.bf16.mxu0 %v6506_v43  ;;  %v137_v43 = vld [vmem:[%s8338_s0 + $0x298] sm:$0x1]  ;;  %v7598_v58 = vpack.c.bf16 %v131_v38, %v131_v38  ;;  %v6539_v38 = vld [vmem:[#allocation2 + $0x18c] ss:$24 sps:$4 sm:$0xff]  }
  0xfe   :  { %3827 = vmatmul.mubr.bf16.gmra.mrb[4].mxu1 %v7558_v54  ;;  %v7600_v59 = vpack.c.bf16 %v137_v43, %v137_v43  ;;  %v6542_v43 = vld [vmem:[#allocation2 + $0x194] ss:$24 sps:$4 sm:$0xff]  }
  0xff   :  { %4040 = vmatmul.mubr.bf16.gmra.mrb[4].mxu0 %v7560_v56  ;;  %4073 = vmatpush1.bf16.msra.mxu1 %v6501_v46  ;;  %v6521_v46 = vld [vmem:[#allocation2 + $0xfc] ss:$24 sps:$4 sm:$0xff]  }
 0x100   :  { %4499 = vmatpush1.bf16.msra.mxu0 %v6504_v47  ;;  %4074 = vmatprep.subr.bf16.mxu1 %v6509_v60  ;;  %v6524_v47 = vld [vmem:[#allocation2 + $0x104] ss:$24 sps:$4 sm:$0xff]   ;;  %v130_v60 = vld [vmem:[%s8338_s0 + $0x260] sm:$0x1] }
 0x101   :  { %4500 = vmatprep.subr.bf16.mxu0 %v6512_v62  ;;  %3836 = vmatprep.mubr.bf16.mxu1 %v7568_v4  ;;  %v136_v62 = vld [vmem:[%s8338_s0 + $0x290] sm:$0x1]  ;;  %v7612_v17 = vpack.c.bf16 %v130_v60, %v130_v60 }
 0x102   :  { %4049 = vmatprep.mubr.bf16.mxu0 %v7570_v6  ;;  %v7614_v18 = vpack.c.bf16 %v136_v62, %v136_v62  ;;  %v6543_v60 = vld [vmem:[#allocation2 + $0x1b8] ss:$24 sps:$4 sm:$0xff]  }
 0x103   :  { %4075 = vmatpush1.bf16.msra.mxu1 %v6507_v0  ;;  %v6527_v0 = vld [vmem:[#allocation2 + $0x12c] ss:$24 sps:$4 sm:$0xff]   ;;  %v6546_v62 = vld [vmem:[#allocation2 + $0x1c0] ss:$24 sps:$4 sm:$0xff]  }
 0x104   :  { %4501 = vmatpush1.bf16.msra.mxu0 %v6510_v1  ;;  %4076 = vmatprep.subr.bf16.mxu1 %v6515_v22  ;;  %v6530_v1 = vld [vmem:[#allocation2 + $0x134] ss:$24 sps:$4 sm:$0xff]  }
 0x105   :  { %4502 = vmatprep.subr.bf16.mxu0 %v6518_v26  ;;  %v6533_v22 = vld [vmem:[#allocation2 + $0x15c] ss:$24 sps:$4 sm:$0xff]  }
 0x106   :  { %3837 = vmatmul.mubr.bf16.gmra.mrb[8].mxu1 %v7588_v36  ;;  %v6536_v26 = vld [vmem:[#allocation2 + $0x164] ss:$24 sps:$4 sm:$0xff]  }
 0x107   :  { %4050 = vmatmul.mubr.bf16.gmra.mrb[8].mxu0 %v7590_v37  ;;  %4077 = vmatpush1.bf16.msra.mxu1 %v6513_v31  ;;  %v6531_v31 = vld [vmem:[#allocation2 + $0x158] ss:$24 sps:$4 sm:$0xff]  }
 0x108   :  { %4503 = vmatpush1.bf16.msra.mxu0 %v6516_v32  ;;  %4078 = vmatprep.subr.bf16.mxu1 %v6521_v46  ;;  %v6534_v32 = vld [vmem:[#allocation2 + $0x160] ss:$24 sps:$4 sm:$0xff]  }
 0x109   :  { %4504 = vmatprep.subr.bf16.mxu0 %v6524_v47  ;;  %3846 = vmatprep.mubr.bf16.mxu1 %v7598_v58  ;;  %v6537_v46 = vld [vmem:[#allocation2 + $0x188] ss:$24 sps:$4 sm:$0xff]  }
 0x10a   :  { %4059 = vmatprep.mubr.bf16.mxu0 %v7600_v59  ;;  %v6540_v47 = vld [vmem:[#allocation2 + $0x190] ss:$24 sps:$4 sm:$0xff]  }
 0x10b   :  { %4079 = vmatpush1.bf16.msra.mxu1 %v6519_v49  ;;  %v6545_v49 = vld [vmem:[#allocation2 + $0x1bc] ss:$24 sps:$4 sm:$0xff]  }
 0x10c   :  { %4505 = vmatpush1.bf16.msra.mxu0 %v6522_v50  ;;  %4080 = vmatprep.subr.bf16.mxu1 %v6527_v0  ;;  %v6548_v50 = vld [vmem:[#allocation2 + $0x1c4] ss:$24 sps:$4 sm:$0xff]  }
 0x10d   :  { %4506 = vmatprep.subr.bf16.mxu0 %v6530_v1  ;;  %v6551_v0 = vld [vmem:[#allocation2 + $0x1ec] ss:$24 sps:$4 sm:$0xff]  }
 0x10e   :  { %3847 = vmatmul.mubr.bf16.gmra.mrb[12].mxu1 %v7612_v17  ;;  %v6554_v1 = vld [vmem:[#allocation2 + $0x1f4] ss:$24 sps:$4 sm:$0xff]  }
 0x10f   :  { %4060 = vmatmul.mubr.bf16.gmra.mrb[12].mxu0 %v7614_v18  ;;  %4081 = vmatpush1.bf16.msra.mxu1 %v6525_v20  ;;  %v6549_v20 = vld [vmem:[#allocation2 + $0x1e8] ss:$24 sps:$4 sm:$0xff]  }
 0x110   :  { %4507 = vmatpush1.bf16.msra.mxu0 %v6528_v21  ;;  %4082 = vmatprep.subr.bf16.mxu1 %v6533_v22  ;;  %v6552_v21 = vld [vmem:[#allocation2 + $0x1f0] ss:$24 sps:$4 sm:$0xff]   ;;  %v6560_v22 = vld [vmem:[#allocation2 + $0x224] ss:$24 sps:$4 sm:$0xff]  }
 0x111   :  { %4508 = vmatprep.subr.bf16.mxu0 %v6536_v26  ;;  %4100 = vmatprep.mubr.bf16.mxu1 %v7228_v52  ;;  %v6555_v26 = vld [vmem:[#allocation2 + $0x218] ss:$24 sps:$4 sm:$0xff]  }
 0x112   :  { %4526 = vmatprep.mubr.bf16.mxu0 %v7228_v52  ;;  %v6557_v52 = vld [vmem:[#allocation2 + $0x21c] ss:$24 sps:$4 sm:$0xff]  }
 0x113   :  { %4083 = vmatpush1.bf16.msra.mxu1 %v6531_v31  ;;  %v6558_v31 = vld [vmem:[#allocation2 + $0x220] ss:$24 sps:$4 sm:$0xff]  }
 0x114   :  { %4509 = vmatpush1.bf16.msra.mxu0 %v6534_v32  ;;  %4084 = vmatprep.subr.bf16.mxu1 %v6539_v38  ;;  %v6563_v32 = vld [vmem:[#allocation2 + $0x24c] ss:$24 sps:$4 sm:$0xff]  }
 0x115   :  { %4510 = vmatprep.subr.bf16.mxu0 %v6542_v43  ;;  %v6566_v38 = vld [vmem:[#allocation2 + $0x254] ss:$24 sps:$4 sm:$0xff]   ;;  %v6561_v43 = vld [vmem:[#allocation2 + $0x248] ss:$24 sps:$4 sm:$0xff]  }
 0x117   :  { %4085 = vmatpush1.bf16.msra.mxu1 %v6537_v46  ;;  %v6564_v46 = vld [vmem:[#allocation2 + $0x250] ss:$24 sps:$4 sm:$0xff]  }
 0x118   :  { %4511 = vmatpush1.bf16.msra.mxu0 %v6540_v47  ;;  %4086 = vmatprep.subr.bf16.mxu1 %v6545_v49  ;;  %v6569_v47 = vld [vmem:[#allocation2 + $0x27c] ss:$24 sps:$4 sm:$0xff]  }
 0x119   :  { %4512 = vmatprep.subr.bf16.mxu0 %v6548_v50  ;;  %v6572_v49 = vld [vmem:[#allocation2 + $0x284] ss:$24 sps:$4 sm:$0xff]   ;;  %v6567_v50 = vld [vmem:[#allocation2 + $0x278] ss:$24 sps:$4 sm:$0xff]  }
 0x11b   :  { %4087 = vmatpush1.bf16.msra.mxu1 %v6543_v60  ;;  %v6570_v60 = vld [vmem:[#allocation2 + $0x280] ss:$24 sps:$4 sm:$0xff]  }
 0x11c   :  { %4513 = vmatpush1.bf16.msra.mxu0 %v6546_v62  ;;  %4088 = vmatprep.subr.bf16.mxu1 %v6551_v0  ;;  %v6575_v62 = vld [vmem:[#allocation2 + $0x2ac] ss:$24 sps:$4 sm:$0xff]  }
 0x11d   :  { %4514 = vmatprep.subr.bf16.mxu0 %v6554_v1  ;;  %v6578_v0 = vld [vmem:[#allocation2 + $0x2b4] ss:$24 sps:$4 sm:$0xff]   ;;  %v6573_v1 = vld [vmem:[#allocation2 + $0x2a8] ss:$24 sps:$4 sm:$0xff]  }
 0x11f   :  { %4089 = vmatpush1.bf16.msra.mxu1 %v6549_v20  ;;  %v6576_v20 = vld [vmem:[#allocation2 + $0x2b0] ss:$24 sps:$4 sm:$0xff]  }
 0x120   :  { %4515 = vmatpush1.bf16.msra.mxu0 %v6552_v21  ;;  %4090 = vmatprep.subr.bf16.mxu1 %v6557_v52  ;;  %v6581_v21 = vld [vmem:[#allocation2 + $0x2dc] ss:$24 sps:$4 sm:$0xff]  }
 0x121   :  { %4516 = vmatprep.subr.bf16.mxu0 %v6560_v22  ;;  %v6584_v52 = vld [vmem:[#allocation2 + $0x2e4] ss:$24 sps:$4 sm:$0xff]   ;;  %v6579_v22 = vld [vmem:[#allocation2 + $0x2d8] ss:$24 sps:$4 sm:$0xff]  }
 0x123   :  { %4091 = vmatpush1.bf16.msra.mxu1 %v6555_v26  ;;  %v6582_v26 = vld [vmem:[#allocation2 + $0x2e0] ss:$24 sps:$4 sm:$0xff]  }
 0x124   :  { %4517 = vmatpush1.bf16.msra.mxu0 %v6558_v31  ;;  %4092 = vmatprep.subr.bf16.mxu1 %v6563_v32  ;;  %v6587_v31 = vld [vmem:[#allocation2 + $0x30c] ss:$24 sps:$4 sm:$0xff]  }
 0x125   :  { %4518 = vmatprep.subr.bf16.mxu0 %v6566_v38  ;;  %v6590_v32 = vld [vmem:[#allocation2 + $0x314] ss:$24 sps:$4 sm:$0xff]   ;;  %v6585_v38 = vld [vmem:[#allocation2 + $0x308] ss:$24 sps:$4 sm:$0xff]  }
 0x127   :  { %4093 = vmatpush1.bf16.msra.mxu1 %v6561_v43  ;;  %v6588_v43 = vld [vmem:[#allocation2 + $0x310] ss:$24 sps:$4 sm:$0xff]  }
 0x128   :  { %4519 = vmatpush1.bf16.msra.mxu0 %v6564_v46  ;;  %4094 = vmatprep.subr.bf16.mxu1 %v6569_v47  ;;  %v6593_v46 = vld [vmem:[#allocation2 + $0x33c] ss:$24 sps:$4 sm:$0xff]  }
 0x129   :  { %4520 = vmatprep.subr.bf16.mxu0 %v6572_v49  ;;  %v6596_v47 = vld [vmem:[#allocation2 + $0x344] ss:$24 sps:$4 sm:$0xff]   ;;  %v6591_v49 = vld [vmem:[#allocation2 + $0x338] ss:$24 sps:$4 sm:$0xff]  }
 0x12b   :  { %4095 = vmatpush1.bf16.msra.mxu1 %v6567_v50  ;;  %v6594_v50 = vld [vmem:[#allocation2 + $0x340] ss:$24 sps:$4 sm:$0xff]  }
 0x12c   :  { %4521 = vmatpush1.bf16.msra.mxu0 %v6570_v60  ;;  %4096 = vmatprep.subr.bf16.mxu1 %v6575_v62  ;;  %v6599_v60 = vld [vmem:[#allocation2 + $0x36c] ss:$24 sps:$4 sm:$0xff]  }
 0x12d   :  { %4522 = vmatprep.subr.bf16.mxu0 %v6578_v0  ;;  %v6602_v62 = vld [vmem:[#allocation2 + $0x374] ss:$24 sps:$4 sm:$0xff]   ;;  %v6597_v0 = vld [vmem:[#allocation2 + $0x368] ss:$24 sps:$4 sm:$0xff]  }
 0x12f   :  { %4097 = vmatpush1.bf16.msra.mxu1 %v6573_v1  ;;  %v6600_v1 = vld [vmem:[#allocation2 + $0x370] ss:$24 sps:$4 sm:$0xff]  }
 0x130   :  { %4523 = vmatpush1.bf16.msra.mxu0 %v6576_v20  ;;  %4098 = vmatprep.subr.bf16.mxu1 %v6581_v21  ;;  %v6605_v20 = vld [vmem:[#allocation2 + $0x39c] ss:$24 sps:$4 sm:$0xff]   ;;  %v6603_v21 = vld [vmem:[#allocation2 + $0x398] ss:$24 sps:$4 sm:$0xff]  }
 0x131   :  { %4524 = vmatprep.subr.bf16.mxu0 %v6584_v52  ;;  %v6606_v52 = vld [vmem:[#allocation2 + $0x3a0] ss:$24 sps:$4 sm:$0xff]  }
 0x133   :  { %4099 = vmatpush1.bf16.msra.mxu1 %v6579_v22  ;;  %v6611_v22 = vld [vmem:[#allocation2 + $0x3cc] ss:$24 sps:$4 sm:$0xff]  }
 0x134   :  { %4525 = vmatpush1.bf16.msra.mxu0 %v6582_v26  ;;  %4139 = vmatprep.subr.bf16.mxu1 %v6587_v31  ;;  %v6609_v26 = vld [vmem:[#allocation2 + $0x3c8] ss:$24 sps:$4 sm:$0xff]  }
 0x135   :  { %4565 = vmatprep.subr.bf16.mxu0 %v6590_v32  ;;  %v6612_v31 = vld [vmem:[#allocation2 + $0x3d0] ss:$24 sps:$4 sm:$0xff]   ;;  %v6617_v32 = vld [vmem:[#allocation2 + $0x3fc] ss:$24 sps:$4 sm:$0xff]  }
 0x136   :  { %4101 = vmatmul.mubr.bf16.vlgmr.msra.gmra.mrb[16].mxu1 %v7252_v14 }
 0x137   :  { %4527 = vmatmul.mubr.bf16.vlgmr.msra.gmra.mrb[16].mxu0 %v7252_v14  ;;  %4140 = vmatpush1.bf16.msra.mxu1 %v6585_v38  ;;  %v6608_v14 = vld [vmem:[#allocation2 + $0x3a4] ss:$24 sps:$4 sm:$0xff]  }
 0x138   :  { %4566 = vmatpush1.bf16.msra.mxu0 %v6588_v43  ;;  %4141 = vmatprep.subr.bf16.mxu1 %v6593_v46  ;;  %v6620_v38 = vld [vmem:[#allocation2 + $0x404] ss:$24 sps:$4 sm:$0xff]   ;;  %v6615_v43 = vld [vmem:[#allocation2 + $0x3f8] ss:$24 sps:$4 sm:$0xff]  }
 0x139   :  { %4567 = vmatprep.subr.bf16.mxu0 %v6596_v47  ;;  %4110 = vmatprep.mubr.bf16.mxu1 %v7264_v28  ;;  %v6623_v46 = vld [vmem:[#allocation2 + $0x42c] ss:$24 sps:$4 sm:$0xff]   ;;  %v6621_v47 = vld [vmem:[#allocation2 + $0x428] ss:$24 sps:$4 sm:$0xff]  }
 0x13a   :  { %4536 = vmatprep.mubr.bf16.mxu0 %v7264_v28  ;;  %v6614_v28 = vld [vmem:[#allocation2 + $0x3d4] ss:$24 sps:$4 sm:$0xff]  }
 0x13b   :  { %4142 = vmatpush1.bf16.msra.mxu1 %v6591_v49  ;;  %v6624_v49 = vld [vmem:[#allocation2 + $0x430] ss:$24 sps:$4 sm:$0xff]  }
 0x13c   :  { %4568 = vmatpush1.bf16.msra.mxu0 %v6594_v50  ;;  %4143 = vmatprep.subr.bf16.mxu1 %v6599_v60  ;;  %v6629_v50 = vld [vmem:[#allocation2 + $0x45c] ss:$24 sps:$4 sm:$0xff]  }
 0x13d   :  { %4569 = vmatprep.subr.bf16.mxu0 %v6602_v62  ;;  %v6632_v60 = vld [vmem:[#allocation2 + $0x464] ss:$24 sps:$4 sm:$0xff]   ;;  %v6627_v62 = vld [vmem:[#allocation2 + $0x458] ss:$24 sps:$4 sm:$0xff]  }
 0x13e   :  { %4111 = vmatmul.mubr.bf16.gmra.mrb[20].mxu1 %v7284_v39 }
 0x13f   :  { %4537 = vmatmul.mubr.bf16.gmra.mrb[20].mxu0 %v7284_v39  ;;  %4144 = vmatpush1.bf16.msra.mxu1 %v6597_v0  ;;  %v6618_v39 = vld [vmem:[#allocation2 + $0x400] ss:$24 sps:$4 sm:$0xff]   ;;  %v6635_v0 = vld [vmem:[#allocation2 + $0x48c] ss:$24 sps:$4 sm:$0xff]  }
 0x140   :  { %4570 = vmatpush1.bf16.msra.mxu0 %v6600_v1  ;;  %4145 = vmatprep.subr.bf16.mxu1 %v6605_v20  ;;  %v6633_v1 = vld [vmem:[#allocation2 + $0x488] ss:$24 sps:$4 sm:$0xff]  }
 0x141   :  { %4571 = vmatprep.subr.bf16.mxu0 %v6608_v14  ;;  %4120 = vmatprep.mubr.bf16.mxu1 %v7299_v48  ;;  %v6636_v20 = vld [vmem:[#allocation2 + $0x490] ss:$24 sps:$4 sm:$0xff]   ;;  %v6641_v14 = vld [vmem:[#allocation2 + $0x4bc] ss:$24 sps:$4 sm:$0xff]  }
 0x142   :  { %4546 = vmatprep.mubr.bf16.mxu0 %v7299_v48  ;;  %v6626_v48 = vld [vmem:[#allocation2 + $0x434] ss:$24 sps:$4 sm:$0xff]  }
 0x143   :  { %4146 = vmatpush1.bf16.msra.mxu1 %v6603_v21  ;;  %v6644_v21 = vld [vmem:[#allocation2 + $0x4c4] ss:$24 sps:$4 sm:$0xff]  }
 0x144   :  { %4572 = vmatpush1.bf16.msra.mxu0 %v6606_v52  ;;  %4147 = vmatprep.subr.bf16.mxu1 %v6611_v22  ;;  %v6639_v52 = vld [vmem:[#allocation2 + $0x4b8] ss:$24 sps:$4 sm:$0xff]   ;;  %v6647_v22 = vld [vmem:[#allocation2 + $0x4ec] ss:$24 sps:$4 sm:$0xff]  }
 0x145   :  { %4573 = vmatprep.subr.bf16.mxu0 %v6614_v28  ;;  %v6650_v28 = vld [vmem:[#allocation2 + $0x4f4] ss:$24 sps:$4 sm:$0xff]  }
 0x146   :  { %4121 = vmatmul.mubr.bf16.gmra.mrb[24].mxu1 %v7320_v61 }
 0x147   :  { %4547 = vmatmul.mubr.bf16.gmra.mrb[24].mxu0 %v7320_v61  ;;  %4148 = vmatpush1.bf16.msra.mxu1 %v6609_v26  ;;  %v6630_v61 = vld [vmem:[#allocation2 + $0x460] ss:$24 sps:$4 sm:$0xff]  }
 0x148   :  { %4574 = vmatpush1.bf16.msra.mxu0 %v6612_v31  ;;  %4149 = vmatprep.subr.bf16.mxu1 %v6617_v32  ;;  %v6645_v26 = vld [vmem:[#allocation2 + $0x4e8] ss:$24 sps:$4 sm:$0xff]   ;;  %v6656_v32 = vld [vmem:[#allocation2 + $0x524] ss:$24 sps:$4 sm:$0xff]  }
 0x149   :  { %4575 = vmatprep.subr.bf16.mxu0 %v6620_v38  ;;  %4130 = vmatprep.mubr.bf16.mxu1 %v7332_v5  ;;  %v6648_v31 = vld [vmem:[#allocation2 + $0x4f0] ss:$24 sps:$4 sm:$0xff]  }
 0x14a   :  { %4556 = vmatprep.mubr.bf16.mxu0 %v7332_v5  ;;  %v6638_v5 = vld [vmem:[#allocation2 + $0x494] ss:$24 sps:$4 sm:$0xff]   ;;  %v6651_v38 = vld [vmem:[#allocation2 + $0x518] ss:$24 sps:$4 sm:$0xff]  }
 0x14b   :  { %4150 = vmatpush1.bf16.msra.mxu1 %v6615_v43  ;;  %v6654_v43 = vld [vmem:[#allocation2 + $0x520] ss:$24 sps:$4 sm:$0xff]  }
 0x14c   :  { %4576 = vmatpush1.bf16.msra.mxu0 %v6618_v39  ;;  %4151 = vmatprep.subr.bf16.mxu1 %v6623_v46  ;;  %v6659_v39 = vld [vmem:[#allocation2 + $0x54c] ss:$24 sps:$4 sm:$0xff]  }
 0x14d   :  { %4577 = vmatprep.subr.bf16.mxu0 %v6626_v48  ;;  %v6662_v46 = vld [vmem:[#allocation2 + $0x554] ss:$24 sps:$4 sm:$0xff]   ;;  %v6657_v48 = vld [vmem:[#allocation2 + $0x548] ss:$24 sps:$4 sm:$0xff]  }
 0x14e   :  { %4131 = vmatmul.mubr.bf16.gmra.mrb[28].mxu1 %v7347_v13 }
 0x14f   :  { %4557 = vmatmul.mubr.bf16.gmra.mrb[28].mxu0 %v7347_v13  ;;  %4152 = vmatpush1.bf16.msra.mxu1 %v6621_v47  ;;  %v6642_v13 = vld [vmem:[#allocation2 + $0x4c0] ss:$24 sps:$4 sm:$0xff]   ;;  %v6660_v47 = vld [vmem:[#allocation2 + $0x550] ss:$24 sps:$4 sm:$0xff]  }
 0x150   :  { %4578 = vmatpush1.bf16.msra.mxu0 %v6624_v49  ;;  %4153 = vmatprep.subr.bf16.mxu1 %v6629_v50  ;;  %v6665_v49 = vld [vmem:[#allocation2 + $0x57c] ss:$24 sps:$4 sm:$0xff]  }
 0x151   :  { %4579 = vmatprep.subr.bf16.mxu0 %v6632_v60  ;;  %4171 = vmatprep.mubr.bf16.mxu1 %v7359_v24  ;;  %v6668_v50 = vld [vmem:[#allocation2 + $0x584] ss:$24 sps:$4 sm:$0xff]   ;;  %v6663_v60 = vld [vmem:[#allocation2 + $0x578] ss:$24 sps:$4 sm:$0xff]  }
 0x152   :  { %4597 = vmatprep.mubr.bf16.mxu0 %v7359_v24  ;;  %v6653_v24 = vld [vmem:[#allocation2 + $0x51c] ss:$24 sps:$4 sm:$0xff]  }
 0x153   :  { %4154 = vmatpush1.bf16.msra.mxu1 %v6627_v62  ;;  %v6666_v62 = vld [vmem:[#allocation2 + $0x580] ss:$24 sps:$4 sm:$0xff]  }
 0x154   :  { %4580 = vmatpush1.bf16.msra.mxu0 %v6630_v61  ;;  %4155 = vmatprep.subr.bf16.mxu1 %v6635_v0  ;;  %v6671_v61 = vld [vmem:[#allocation2 + $0x5ac] ss:$24 sps:$4 sm:$0xff]  }
 0x155   :  { %4581 = vmatprep.subr.bf16.mxu0 %v6638_v5  ;;  %v6674_v0 = vld [vmem:[#allocation2 + $0x5b4] ss:$24 sps:$4 sm:$0xff]   ;;  %v6669_v5 = vld [vmem:[#allocation2 + $0x5a8] ss:$24 sps:$4 sm:$0xff]  }
 0x157   :  { %4156 = vmatpush1.bf16.msra.mxu1 %v6633_v1  ;;  %v6672_v1 = vld [vmem:[#allocation2 + $0x5b0] ss:$24 sps:$4 sm:$0xff]  }
 0x158   :  { %4582 = vmatpush1.bf16.msra.mxu0 %v6636_v20  ;;  %4157 = vmatprep.subr.bf16.mxu1 %v6641_v14  ;;  %v6677_v20 = vld [vmem:[#allocation2 + $0x5dc] ss:$24 sps:$4 sm:$0xff]  }
 0x159   :  { %4583 = vmatprep.subr.bf16.mxu0 %v6644_v21  ;;  %v6680_v14 = vld [vmem:[#allocation2 + $0x5e4] ss:$24 sps:$4 sm:$0xff]   ;;  %v6675_v21 = vld [vmem:[#allocation2 + $0x5d8] ss:$24 sps:$4 sm:$0xff]  }
 0x15b   :  { %4158 = vmatpush1.bf16.msra.mxu1 %v6639_v52  ;;  %v6678_v52 = vld [vmem:[#allocation2 + $0x5e0] ss:$24 sps:$4 sm:$0xff]  }
 0x15c   :  { %4584 = vmatpush1.bf16.msra.mxu0 %v6642_v13  ;;  %4159 = vmatprep.subr.bf16.mxu1 %v6647_v22  ;;  %v6683_v13 = vld [vmem:[#allocation2 + $0x60c] ss:$24 sps:$4 sm:$0xff]  }
 0x15d   :  { %4585 = vmatprep.subr.bf16.mxu0 %v6650_v28  ;;  %v6686_v22 = vld [vmem:[#allocation2 + $0x614] ss:$24 sps:$4 sm:$0xff]   ;;  %v6681_v28 = vld [vmem:[#allocation2 + $0x608] ss:$24 sps:$4 sm:$0xff]  }
 0x15f   :  { %4160 = vmatpush1.bf16.msra.mxu1 %v6645_v26  ;;  %v6684_v26 = vld [vmem:[#allocation2 + $0x610] ss:$24 sps:$4 sm:$0xff]  }
 0x160   :  { %4586 = vmatpush1.bf16.msra.mxu0 %v6648_v31  ;;  %4161 = vmatprep.subr.bf16.mxu1 %v6653_v24  ;;  %v6689_v31 = vld [vmem:[#allocation2 + $0x63c] ss:$24 sps:$4 sm:$0xff]  }
 0x161   :  { %4587 = vmatprep.subr.bf16.mxu0 %v6656_v32  ;;  %v6692_v24 = vld [vmem:[#allocation2 + $0x644] ss:$24 sps:$4 sm:$0xff]   ;;  %v6687_v32 = vld [vmem:[#allocation2 + $0x638] ss:$24 sps:$4 sm:$0xff]  }
 0x163   :  { %4162 = vmatpush1.bf16.msra.mxu1 %v6651_v38  ;;  %v6690_v38 = vld [vmem:[#allocation2 + $0x640] ss:$24 sps:$4 sm:$0xff]  }
 0x164   :  { %4588 = vmatpush1.bf16.msra.mxu0 %v6654_v43  ;;  %4163 = vmatprep.subr.bf16.mxu1 %v6659_v39  ;;  %v6695_v43 = vld [vmem:[#allocation2 + $0x66c] ss:$24 sps:$4 sm:$0xff]  }
 0x165   :  { %4589 = vmatprep.subr.bf16.mxu0 %v6662_v46  ;;  %v6698_v39 = vld [vmem:[#allocation2 + $0x674] ss:$24 sps:$4 sm:$0xff]   ;;  %v6693_v46 = vld [vmem:[#allocation2 + $0x668] ss:$24 sps:$4 sm:$0xff]  }
 0x167   :  { %4164 = vmatpush1.bf16.msra.mxu1 %v6657_v48  ;;  %v6696_v48 = vld [vmem:[#allocation2 + $0x670] ss:$24 sps:$4 sm:$0xff]  }
 0x168   :  { %4590 = vmatpush1.bf16.msra.mxu0 %v6660_v47  ;;  %4165 = vmatprep.subr.bf16.mxu1 %v6665_v49  ;;  %v6701_v47 = vld [vmem:[#allocation2 + $0x69c] ss:$24 sps:$4 sm:$0xff]   ;;  %v6699_v49 = vld [vmem:[#allocation2 + $0x698] ss:$24 sps:$4 sm:$0xff]  }
 0x169   :  { %4591 = vmatprep.subr.bf16.mxu0 %v6668_v50  ;;  %v6702_v50 = vld [vmem:[#allocation2 + $0x6a0] ss:$24 sps:$4 sm:$0xff]  }
 0x16b   :  { %4166 = vmatpush1.bf16.msra.mxu1 %v6663_v60  ;;  %v6707_v60 = vld [vmem:[#allocation2 + $0x6cc] ss:$24 sps:$4 sm:$0xff]  }
 0x16c   :  { %4592 = vmatpush1.bf16.msra.mxu0 %v6666_v62  ;;  %4167 = vmatprep.subr.bf16.mxu1 %v6671_v61  ;;  %v6705_v62 = vld [vmem:[#allocation2 + $0x6c8] ss:$24 sps:$4 sm:$0xff]  }
 0x16d   :  { %4593 = vmatprep.subr.bf16.mxu0 %v6674_v0  ;;  %v6708_v61 = vld [vmem:[#allocation2 + $0x6d0] ss:$24 sps:$4 sm:$0xff]   ;;  %v6713_v0 = vld [vmem:[#allocation2 + $0x6fc] ss:$24 sps:$4 sm:$0xff]  }
 0x16f   :  { %4168 = vmatpush1.bf16.msra.mxu1 %v6669_v5  ;;  %v6716_v5 = vld [vmem:[#allocation2 + $0x704] ss:$24 sps:$4 sm:$0xff]  }
 0x170   :  { %4594 = vmatpush1.bf16.msra.mxu0 %v6672_v1  ;;  %4169 = vmatprep.subr.bf16.mxu1 %v6677_v20  ;;  %v6711_v1 = vld [vmem:[#allocation2 + $0x6f8] ss:$24 sps:$4 sm:$0xff]   ;;  %v6719_v20 = vld [vmem:[#allocation2 + $0x72c] ss:$24 sps:$4 sm:$0xff]  }
 0x171   :  { %4595 = vmatprep.subr.bf16.mxu0 %v6680_v14  ;;  %v6717_v14 = vld [vmem:[#allocation2 + $0x728] ss:$24 sps:$4 sm:$0xff]  }
 0x173   :  { %4170 = vmatpush1.bf16.msra.mxu1 %v6675_v21  ;;  %v6720_v21 = vld [vmem:[#allocation2 + $0x730] ss:$24 sps:$4 sm:$0xff]  }
 0x174   :  { %4596 = vmatpush1.bf16.msra.mxu0 %v6678_v52  ;;  %4210 = vmatprep.subr.bf16.mxu1 %v6683_v13  ;;  %v6725_v52 = vld [vmem:[#allocation2 + $0x75c] ss:$24 sps:$4 sm:$0xff]  }
 0x175   :  { %4636 = vmatprep.subr.bf16.mxu0 %v6686_v22  ;;  %v6728_v13 = vld [vmem:[#allocation2 + $0x764] ss:$24 sps:$4 sm:$0xff]   ;;  %v6726_v22 = vld [vmem:[#allocation2 + $0x760] ss:$24 sps:$4 sm:$0xff]  }
 0x176   :  { %4172 = vmatmul.mubr.bf16.vlgmr.msra.gmra.mrb[16].mxu1 %v7387_v11 }
 0x177   :  { %4598 = vmatmul.mubr.bf16.vlgmr.msra.gmra.mrb[16].mxu0 %v7387_v11  ;;  %4211 = vmatpush1.bf16.msra.mxu1 %v6681_v28  ;;  %v6704_v11 = vld [vmem:[#allocation2 + $0x6a4] ss:$24 sps:$4 sm:$0xff]  }
 0x178   :  { %4637 = vmatpush1.bf16.msra.mxu0 %v6684_v26  ;;  %4212 = vmatprep.subr.bf16.mxu1 %v6689_v31  ;;  %v6731_v28 = vld [vmem:[#allocation2 + $0x78c] ss:$24 sps:$4 sm:$0xff]   ;;  %v6729_v26 = vld [vmem:[#allocation2 + $0x788] ss:$24 sps:$4 sm:$0xff]  }
 0x179   :  { %4638 = vmatprep.subr.bf16.mxu0 %v6692_v24  ;;  %4181 = vmatprep.mubr.bf16.mxu1 %v7400_v23  ;;  %v6732_v31 = vld [vmem:[#allocation2 + $0x790] ss:$24 sps:$4 sm:$0xff]   ;;  %v6737_v24 = vld [vmem:[#allocation2 + $0x7bc] ss:$24 sps:$4 sm:$0xff]  }
 0x17a   :  { %4607 = vmatprep.mubr.bf16.mxu0 %v7400_v23  ;;  %v6710_v23 = vld [vmem:[#allocation2 + $0x6d4] ss:$24 sps:$4 sm:$0xff]  }
 0x17b   :  { %4213 = vmatpush1.bf16.msra.mxu1 %v6687_v32  ;;  %v6735_v32 = vld [vmem:[#allocation2 + $0x7b8] ss:$24 sps:$4 sm:$0xff]  }
 0x17c   :  { %4639 = vmatpush1.bf16.msra.mxu0 %v6690_v38  ;;  %4214 = vmatprep.subr.bf16.mxu1 %v6695_v43  ;;  %v6738_v38 = vld [vmem:[#allocation2 + $0x7c0] ss:$24 sps:$4 sm:$0xff]   ;;  %v6743_v43 = vld [vmem:[#allocation2 + $0x7ec] ss:$24 sps:$4 sm:$0xff]  }
 0x17d   :  { %4640 = vmatprep.subr.bf16.mxu0 %v6698_v39  ;;  %v6746_v39 = vld [vmem:[#allocation2 + $0x7f4] ss:$24 sps:$4 sm:$0xff]  }
 0x17e   :  { %4182 = vmatmul.mubr.bf16.gmra.mrb[20].mxu1 %v7423_v40 }
 0x17f   :  { %4608 = vmatmul.mubr.bf16.gmra.mrb[20].mxu0 %v7423_v40  ;;  %4215 = vmatpush1.bf16.msra.mxu1 %v6693_v46  ;;  %v6714_v40 = vld [vmem:[#allocation2 + $0x700] ss:$24 sps:$4 sm:$0xff]  }
 0x180   :  { %4641 = vmatpush1.bf16.msra.mxu0 %v6696_v48  ;;  %4216 = vmatprep.subr.bf16.mxu1 %v6701_v47  ;;  %v6741_v46 = vld [vmem:[#allocation2 + $0x7e8] ss:$24 sps:$4 sm:$0xff]   ;;  %v6749_v48 = vld [vmem:[#allocation2 + $0x81c] ss:$24 sps:$4 sm:$0xff]  }
 0x181   :  { %4642 = vmatprep.subr.bf16.mxu0 %v6704_v11  ;;  %4191 = vmatprep.mubr.bf16.mxu1 %v7436_v51  ;;  %v6752_v47 = vld [vmem:[#allocation2 + $0x824] ss:$24 sps:$4 sm:$0xff]   ;;  %v6747_v11 = vld [vmem:[#allocation2 + $0x818] ss:$24 sps:$4 sm:$0xff]  }
 0x182   :  { %4617 = vmatprep.mubr.bf16.mxu0 %v7436_v51  ;;  %v6722_v51 = vld [vmem:[#allocation2 + $0x734] ss:$24 sps:$4 sm:$0xff]  }
 0x183   :  { %4217 = vmatpush1.bf16.msra.mxu1 %v6699_v49  ;;  %v6750_v49 = vld [vmem:[#allocation2 + $0x820] ss:$24 sps:$4 sm:$0xff]  }
 0x184   :  { %4643 = vmatpush1.bf16.msra.mxu0 %v6702_v50  ;;  %4218 = vmatprep.subr.bf16.mxu1 %v6707_v60  ;;  %v6755_v50 = vld [vmem:[#allocation2 + $0x84c] ss:$24 sps:$4 sm:$0xff]  }
 0x185   :  { %4644 = vmatprep.subr.bf16.mxu0 %v6710_v23  ;;  %v6758_v60 = vld [vmem:[#allocation2 + $0x854] ss:$24 sps:$4 sm:$0xff]   ;;  %v6753_v23 = vld [vmem:[#allocation2 + $0x848] ss:$24 sps:$4 sm:$0xff]  }
 0x186   :  { %4192 = vmatmul.mubr.bf16.gmra.mrb[24].mxu1 %v7456_v2 }
 0x187   :  { %4618 = vmatmul.mubr.bf16.gmra.mrb[24].mxu0 %v7456_v2  ;;  %4219 = vmatpush1.bf16.msra.mxu1 %v6705_v62  ;;  %v6723_v2 = vld [vmem:[#allocation2 + $0x758] ss:$24 sps:$4 sm:$0xff]  }
 0x188   :  { %4645 = vmatpush1.bf16.msra.mxu0 %v6708_v61  ;;  %4220 = vmatprep.subr.bf16.mxu1 %v6713_v0  ;;  %v6756_v62 = vld [vmem:[#allocation2 + $0x850] ss:$24 sps:$4 sm:$0xff]   ;;  %v6761_v61 = vld [vmem:[#allocation2 + $0x87c] ss:$24 sps:$4 sm:$0xff]  }
 0x189   :  { %4646 = vmatprep.subr.bf16.mxu0 %v6716_v5  ;;  %4201 = vmatprep.mubr.bf16.mxu1 %v7466_v10  ;;  %v6764_v0 = vld [vmem:[#allocation2 + $0x884] ss:$24 sps:$4 sm:$0xff]   ;;  %v6759_v5 = vld [vmem:[#allocation2 + $0x878] ss:$24 sps:$4 sm:$0xff]  }
 0x18a   :  { %4627 = vmatprep.mubr.bf16.mxu0 %v7466_v10  ;;  %v6734_v10 = vld [vmem:[#allocation2 + $0x794] ss:$24 sps:$4 sm:$0xff]  }
 0x18b   :  { %4221 = vmatpush1.bf16.msra.mxu1 %v6711_v1  ;;  %v6762_v1 = vld [vmem:[#allocation2 + $0x880] ss:$24 sps:$4 sm:$0xff]  }
 0x18c   :  { %4647 = vmatpush1.bf16.msra.mxu0 %v6714_v40  ;;  %4222 = vmatprep.subr.bf16.mxu1 %v6719_v20  ;;  %v6767_v40 = vld [vmem:[#allocation2 + $0x8ac] ss:$24 sps:$4 sm:$0xff]  }
 0x18d   :  { %4648 = vmatprep.subr.bf16.mxu0 %v6722_v51  ;;  %v6770_v20 = vld [vmem:[#allocation2 + $0x8b4] ss:$24 sps:$4 sm:$0xff]   ;;  %v6765_v51 = vld [vmem:[#allocation2 + $0x8a8] ss:$24 sps:$4 sm:$0xff]  }
 0x18e   :  { %4202 = vmatmul.mubr.bf16.gmra.mrb[28].mxu1 %v7486_v33 }
 0x18f   :  { %4628 = vmatmul.mubr.bf16.gmra.mrb[28].mxu0 %v7486_v33  ;;  %4223 = vmatpush1.bf16.msra.mxu1 %v6717_v14  ;;  %v6740_v33 = vld [vmem:[#allocation2 + $0x7c4] ss:$24 sps:$4 sm:$0xff]   ;;  %v6768_v14 = vld [vmem:[#allocation2 + $0x8b0] ss:$24 sps:$4 sm:$0xff]  }
 0x190   :  { %4649 = vmatpush1.bf16.msra.mxu0 %v6720_v21  ;;  %4224 = vmatprep.subr.bf16.mxu1 %v6725_v52  ;;  %v6773_v21 = vld [vmem:[#allocation2 + $0x8dc] ss:$24 sps:$4 sm:$0xff]  }
 0x191   :  { %4650 = vmatprep.subr.bf16.mxu0 %v6728_v13  ;;  %4242 = vmatprep.mubr.bf16.mxu1 %v7496_v44  ;;  %v6776_v52 = vld [vmem:[#allocation2 + $0x8e4] ss:$24 sps:$4 sm:$0xff]   ;;  %v6771_v13 = vld [vmem:[#allocation2 + $0x8d8] ss:$24 sps:$4 sm:$0xff]  }
 0x192   :  { %4668 = vmatprep.mubr.bf16.mxu0 %v7496_v44  ;;  %v6744_v44 = vld [vmem:[#allocation2 + $0x7f0] ss:$24 sps:$4 sm:$0xff]  }
 0x193   :  { %4225 = vmatpush1.bf16.msra.mxu1 %v6723_v2  ;;  %v6774_v2 = vld [vmem:[#allocation2 + $0x8e0] ss:$24 sps:$4 sm:$0xff]  }
 0x194   :  { %4651 = vmatpush1.bf16.msra.mxu0 %v6726_v22  ;;  %4226 = vmatprep.subr.bf16.mxu1 %v6731_v28  ;;  %v6779_v22 = vld [vmem:[#allocation2 + $0x90c] ss:$24 sps:$4 sm:$0xff]  }
 0x195   :  { %4652 = vmatprep.subr.bf16.mxu0 %v6734_v10  ;;  %v6782_v28 = vld [vmem:[#allocation2 + $0x914] ss:$24 sps:$4 sm:$0xff]   ;;  %v6777_v10 = vld [vmem:[#allocation2 + $0x908] ss:$24 sps:$4 sm:$0xff]  }
 0x197   :  { %4227 = vmatpush1.bf16.msra.mxu1 %v6729_v26  ;;  %v6780_v26 = vld [vmem:[#allocation2 + $0x910] ss:$24 sps:$4 sm:$0xff]  }
 0x198   :  { %4653 = vmatpush1.bf16.msra.mxu0 %v6732_v31  ;;  %4228 = vmatprep.subr.bf16.mxu1 %v6737_v24  ;;  %v6785_v31 = vld [vmem:[#allocation2 + $0x93c] ss:$24 sps:$4 sm:$0xff]  }
 0x199   :  { %4654 = vmatprep.subr.bf16.mxu0 %v6740_v33  ;;  %v6788_v24 = vld [vmem:[#allocation2 + $0x944] ss:$24 sps:$4 sm:$0xff]   ;;  %v6783_v33 = vld [vmem:[#allocation2 + $0x938] ss:$24 sps:$4 sm:$0xff]  }
 0x19b   :  { %4229 = vmatpush1.bf16.msra.mxu1 %v6735_v32  ;;  %v6786_v32 = vld [vmem:[#allocation2 + $0x940] ss:$24 sps:$4 sm:$0xff]  }
 0x19c   :  { %4655 = vmatpush1.bf16.msra.mxu0 %v6738_v38  ;;  %4230 = vmatprep.subr.bf16.mxu1 %v6743_v43  ;;  %v6791_v38 = vld [vmem:[#allocation2 + $0x96c] ss:$24 sps:$4 sm:$0xff]  }
 0x19d   :  { %4656 = vmatprep.subr.bf16.mxu0 %v6746_v39  ;;  %v6794_v43 = vld [vmem:[#allocation2 + $0x974] ss:$24 sps:$4 sm:$0xff]   ;;  %v6789_v39 = vld [vmem:[#allocation2 + $0x968] ss:$24 sps:$4 sm:$0xff]  }
 0x19f   :  { %4231 = vmatpush1.bf16.msra.mxu1 %v6741_v46  ;;  %v6792_v46 = vld [vmem:[#allocation2 + $0x970] ss:$24 sps:$4 sm:$0xff]  }
 0x1a0   :  { %4657 = vmatpush1.bf16.msra.mxu0 %v6744_v44  ;;  %4232 = vmatprep.subr.bf16.mxu1 %v6749_v48  ;;  %v6797_v44 = vld [vmem:[#allocation2 + $0x99c] ss:$24 sps:$4 sm:$0xff]   ;;  %v6795_v48 = vld [vmem:[#allocation2 + $0x998] ss:$24 sps:$4 sm:$0xff]  }
 0x1a1   :  { %4658 = vmatprep.subr.bf16.mxu0 %v6752_v47  ;;  %v6798_v47 = vld [vmem:[#allocation2 + $0x9a0] ss:$24 sps:$4 sm:$0xff]  }
 0x1a3   :  { %4233 = vmatpush1.bf16.msra.mxu1 %v6747_v11  ;;  %v6803_v11 = vld [vmem:[#allocation2 + $0x9cc] ss:$24 sps:$4 sm:$0xff]  }
 0x1a4   :  { %4659 = vmatpush1.bf16.msra.mxu0 %v6750_v49  ;;  %4234 = vmatprep.subr.bf16.mxu1 %v6755_v50  ;;  %v6801_v49 = vld [vmem:[#allocation2 + $0x9c8] ss:$24 sps:$4 sm:$0xff]  }
 0x1a5   :  { %4660 = vmatprep.subr.bf16.mxu0 %v6758_v60  ;;  %v6804_v50 = vld [vmem:[#allocation2 + $0x9d0] ss:$24 sps:$4 sm:$0xff]   ;;  %v6809_v60 = vld [vmem:[#allocation2 + $0x9fc] ss:$24 sps:$4 sm:$0xff]  }
 0x1a7   :  { %4235 = vmatpush1.bf16.msra.mxu1 %v6753_v23  ;;  %v6807_v23 = vld [vmem:[#allocation2 + $0x9f8] ss:$24 sps:$4 sm:$0xff]  }
 0x1a8   :  { %4661 = vmatpush1.bf16.msra.mxu0 %v6756_v62  ;;  %4236 = vmatprep.subr.bf16.mxu1 %v6761_v61  ;;  %v6810_v62 = vld [vmem:[#allocation2 + $0xa00] ss:$24 sps:$4 sm:$0xff]   ;;  %v6815_v61 = vld [vmem:[#allocation2 + $0xa2c] ss:$24 sps:$4 sm:$0xff]  }
 0x1a9   :  { %4662 = vmatprep.subr.bf16.mxu0 %v6764_v0 }
 0x1ab   :  { %4237 = vmatpush1.bf16.msra.mxu1 %v6759_v5 }
 0x1ac   :  { %4663 = vmatpush1.bf16.msra.mxu0 %v6762_v1  ;;  %4238 = vmatprep.subr.bf16.mxu1 %v6767_v40 }
 0x1ad   :  { %4664 = vmatprep.subr.bf16.mxu0 %v6770_v20 }
 0x1af   :  { %4239 = vmatpush1.bf16.msra.mxu1 %v6765_v51 }
 0x1b0   :  { %4665 = vmatpush1.bf16.msra.mxu0 %v6768_v14  ;;  %4240 = vmatprep.subr.bf16.mxu1 %v6773_v21  ;;  %v6813_v21 = vld [vmem:[#allocation2 + $0xa28] ss:$24 sps:$4 sm:$0xff]  }
 0x1b1   :  { %4666 = vmatprep.subr.bf16.mxu0 %v6776_v52  ;;  %v6816_v52 = vld [vmem:[#allocation2 + $0xa30] ss:$24 sps:$4 sm:$0xff]  }
 0x1b3   :  { %4241 = vmatpush1.bf16.msra.mxu1 %v6771_v13 }
 0x1b4   :  { %4667 = vmatpush1.bf16.msra.mxu0 %v6774_v2  ;;  %4281 = vmatprep.subr.bf16.mxu1 %v6779_v22 }
 0x1b5   :  { %4707 = vmatprep.subr.bf16.mxu0 %v6782_v28  ;;  %v6821_v28 = vld [vmem:[#allocation2 + $0xa5c] ss:$24 sps:$4 sm:$0xff]  }
 0x1b6   :  { %4243 = vmatmul.mubr.bf16.vlgmr.msra.gmra.mrb[16].mxu1 %v7522_v7 }
 0x1b7   :  { %4669 = vmatmul.mubr.bf16.vlgmr.msra.gmra.mrb[16].mxu0 %v7522_v7  ;;  %4282 = vmatpush1.bf16.msra.mxu1 %v6777_v10  ;;  %v6800_v7 = vld [vmem:[#allocation2 + $0x9a4] ss:$24 sps:$4 sm:$0xff]  }
 0x1b8   :  { %4708 = vmatpush1.bf16.msra.mxu0 %v6780_v26  ;;  %4283 = vmatprep.subr.bf16.mxu1 %v6785_v31  ;;  %v6819_v26 = vld [vmem:[#allocation2 + $0xa58] ss:$24 sps:$4 sm:$0xff]  }
 0x1b9   :  { %4709 = vmatprep.subr.bf16.mxu0 %v6788_v24  ;;  %4252 = vmatprep.mubr.bf16.mxu1 %v7532_v29  ;;  %v6822_v31 = vld [vmem:[#allocation2 + $0xa60] ss:$24 sps:$4 sm:$0xff]   ;;  %v6827_v24 = vld [vmem:[#allocation2 + $0xa8c] ss:$24 sps:$4 sm:$0xff]  }
 0x1ba   :  { %4678 = vmatprep.mubr.bf16.mxu0 %v7532_v29  ;;  %v6806_v29 = vld [vmem:[#allocation2 + $0x9d4] ss:$24 sps:$4 sm:$0xff]  }
 0x1bb   :  { %4284 = vmatpush1.bf16.msra.mxu1 %v6783_v33  ;;  %v6830_v33 = vld [vmem:[#allocation2 + $0xa94] ss:$24 sps:$4 sm:$0xff]  }
 0x1bc   :  { %4710 = vmatpush1.bf16.msra.mxu0 %v6786_v32  ;;  %4285 = vmatprep.subr.bf16.mxu1 %v6791_v38 }
 0x1bd   :  { %4711 = vmatprep.subr.bf16.mxu0 %v6794_v43 }
 0x1be   :  { %4253 = vmatmul.mubr.bf16.gmra.mrb[20].mxu1 %v7558_v54 }
 0x1bf   :  { %4679 = vmatmul.mubr.bf16.gmra.mrb[20].mxu0 %v7558_v54  ;;  %4286 = vmatpush1.bf16.msra.mxu1 %v6789_v39  ;;  %v6812_v54 = vld [vmem:[#allocation2 + $0xa04] ss:$24 sps:$4 sm:$0xff]  }
 0x1c0   :  { %4712 = vmatpush1.bf16.msra.mxu0 %v6792_v46  ;;  %4287 = vmatprep.subr.bf16.mxu1 %v6797_v44 }
 0x1c1   :  { %4713 = vmatprep.subr.bf16.mxu0 %v6800_v7  ;;  %4262 = vmatprep.mubr.bf16.mxu1 %v7568_v4 }
 0x1c2   :  { %4688 = vmatprep.mubr.bf16.mxu0 %v7568_v4  ;;  %v6818_v4 = vld [vmem:[#allocation2 + $0xa34] ss:$24 sps:$4 sm:$0xff]  }
 0x1c3   :  { %4288 = vmatpush1.bf16.msra.mxu1 %v6795_v48  ;;  %v6825_v48 = vld [vmem:[#allocation2 + $0xa88] ss:$24 sps:$4 sm:$0xff]  }
 0x1c4   :  { %4714 = vmatpush1.bf16.msra.mxu0 %v6798_v47  ;;  %4289 = vmatprep.subr.bf16.mxu1 %v6803_v11  ;;  %v6828_v47 = vld [vmem:[#allocation2 + $0xa90] ss:$24 sps:$4 sm:$0xff]  }
 0x1c5   :  { %4715 = vmatprep.subr.bf16.mxu0 %v6806_v29 }
 0x1c6   :  { %4263 = vmatmul.mubr.bf16.gmra.mrb[24].mxu1 %v7588_v36 }
 0x1c7   :  { %4689 = vmatmul.mubr.bf16.gmra.mrb[24].mxu0 %v7588_v36  ;;  %4290 = vmatpush1.bf16.msra.mxu1 %v6801_v49 }
 0x1c8   :  { %4716 = vmatpush1.bf16.msra.mxu0 %v6804_v50  ;;  %4291 = vmatprep.subr.bf16.mxu1 %v6809_v60  ;;  %v6833_v50 = vld [vmem:[#allocation2 + $0xabc] ss:$24 sps:$4 sm:$0xff]  }
 0x1c9   :  { %4717 = vmatprep.subr.bf16.mxu0 %v6812_v54  ;;  %v3818_v0 = vpop.f32.mrb[0].mxu1  ;;  %4272 = vmatprep.mubr.bf16.mxu1 %v7598_v58  ;;  %v6831_v54 = vld [vmem:[#allocation2 + $0xab8] ss:$24 sps:$4 sm:$0xff]  }
 0x1ca   :  { %v4031_v5 = vpop.f32.mrb[0].mxu0  ;;  %4698 = vmatprep.mubr.bf16.mxu0 %v7598_v58  ;;  %v3820_v40 = vpop.f32.mrb[1].mxu1  ;;  %v6824_v58 = vld [vmem:[#allocation2 + $0xa64] ss:$24 sps:$4 sm:$0xff]  }
 0x1cb   :  { %v7664_v1 = vadd.f32 %v4031_v5, %v3818_v0  ;;  %v4033_v20 = vpop.f32.mrb[1].mxu0  ;;  %v3822_v36 = vpop.f32.mrb[2].mxu1  ;;  %4292 = vmatpush1.bf16.msra.mxu1 %v6807_v23  ;;  %v6834_v23 = vld [vmem:[#allocation2 + $0xac0] ss:$24 sps:$4 sm:$0xff]  }
 0x1cc   :  { %v7666_v51 = vadd.f32 %v4033_v20, %v3820_v40  ;;  %v4035_v14 = vpop.f32.mrb[2].mxu0  ;;  %4718 = vmatpush1.bf16.msra.mxu0 %v6810_v62  ;;  %v3824_v2 = vpop.f32.mrb[3].mxu1  ;;  %4293 = vmatprep.subr.bf16.mxu1 %v6815_v61  ;;  %v6839_v62 = vld [vmem:[#allocation2 + $0xaec] ss:$24 sps:$4 sm:$0xff]  }
 0x1cd   :  { %v7668_v13 = vadd.f32 %v4035_v14, %v3822_v36  ;;  %v4037_v22 = vpop.f32.mrb[3].mxu0  ;;  %4719 = vmatprep.subr.bf16.mxu0 %v6818_v4  ;;  %v6842_v61 = vld [vmem:[#allocation2 + $0xaf4] ss:$24 sps:$4 sm:$0xff]  }
 0x1ce   :  { %v7670_v10 = vadd.f32 %v4037_v22, %v3824_v2  ;;  %4273 = vmatmul.mubr.bf16.gmra.mrb[28].mxu1 %v7612_v17  ;;  %v6840_v2 = vld [vmem:[#allocation2 + $0xaf0] ss:$24 sps:$4 sm:$0xff]  }
 0x1cf   :  { %4699 = vmatmul.mubr.bf16.gmra.mrb[28].mxu0 %v7612_v17  ;;  %4294 = vmatpush1.bf16.msra.mxu1 %v6813_v21 }
 0x1d0   :  { %4720 = vmatpush1.bf16.msra.mxu0 %v6816_v52  ;;  %4295 = vmatprep.subr.bf16.mxu1 %v6821_v28  ;;  %v6837_v52 = vld [vmem:[#allocation2 + $0xae8] ss:$24 sps:$4 sm:$0xff]  }
 0x1d1   :  { %4721 = vmatprep.subr.bf16.mxu0 %v6824_v58  ;;  %v3828_v32 = vpop.f32.mrb[4].mxu1  ;;  %4313 = vmatprep.mubr.bf16.mxu1 %v7237_v55 }
 0x1d2   :  { %v4041_v38 = vpop.f32.mrb[4].mxu0  ;;  %4739 = vmatprep.mubr.bf16.mxu0 %v7237_v55  ;;  %v3830_v39 = vpop.f32.mrb[5].mxu1  ;;  %v6836_v55 = vld [vmem:[#allocation2 + $0xac4] ss:$24 sps:$4 sm:$0xff]  }
 0x1d3   :  { %v7676_v43 = vadd.f32 %v4041_v38, %v3828_v32  ;;  %v4043_v46 = vpop.f32.mrb[5].mxu0  ;;  %v3832_v17 = vpop.f32.mrb[6].mxu1  ;;  %4296 = vmatpush1.bf16.msra.mxu1 %v6819_v26  ;;  %v6845_v26 = vld [vmem:[#allocation2 + $0xb1c] ss:$24 sps:$4 sm:$0xff]   ;;  %v6846_v32 = vld [vmem:[#allocation2 + $0xb20] ss:$24 sps:$4 sm:$0xff]  }
 0x1d4   :  { %v7678_v44 = vadd.f32 %v4043_v46, %v3830_v39  ;;  %v4045_v7 = vpop.f32.mrb[6].mxu0  ;;  %4722 = vmatpush1.bf16.msra.mxu0 %v6822_v31  ;;  %v3834_v29 = vpop.f32.mrb[7].mxu1  ;;  %4297 = vmatprep.subr.bf16.mxu1 %v6827_v24  ;;  %v6848_v31 = vld [vmem:[#allocation2 + $0xb24] ss:$24 sps:$4 sm:$0xff]   ;;  %v6854_v39 = vld [vmem:[#allocation2 + $0xb54] ss:$24 sps:$4 sm:$0xff]  }
 0x1d5   :  { %v7680_v11 = vadd.f32 %v4045_v7, %v3832_v17  ;;  %v4047_v49 = vpop.f32.mrb[7].mxu0  ;;  %4723 = vmatprep.subr.bf16.mxu0 %v6830_v33  ;;  %v6843_v33 = vld [vmem:[#allocation2 + $0xb18] ss:$24 sps:$4 sm:$0xff]   ;;  %v6851_v38 = vld [vmem:[#allocation2 + $0xb4c] ss:$24 sps:$4 sm:$0xff]  }
 0x1d6   :  { %v7682_v60 = vadd.f32 %v4047_v49, %v3834_v29 }
 0x1d7   :  { %4298 = vmatpush1.bf16.msra.mxu1 %v6825_v48 }
 0x1d8   :  { %4724 = vmatpush1.bf16.msra.mxu0 %v6828_v47  ;;  %4299 = vmatprep.subr.bf16.mxu1 %v6833_v50 }
 0x1d9   :  { %4725 = vmatprep.subr.bf16.mxu0 %v6836_v55  ;;  %v3838_v4 = vpop.f32.mrb[8].mxu1  ;;  %v6849_v55 = vld [vmem:[#allocation2 + $0xb48] ss:$24 sps:$4 sm:$0xff]  }
 0x1da   :  { %v4051_v0 = vpop.f32.mrb[8].mxu0  ;;  %v3840_v40 = vpop.f32.mrb[9].mxu1 }
 0x1db   :  { %v7684_v5 = vadd.f32 %v4051_v0, %v3838_v4  ;;  %v4053_v20 = vpop.f32.mrb[9].mxu0  ;;  %v3842_v14 = vpop.f32.mrb[10].mxu1  ;;  %4300 = vmatpush1.bf16.msra.mxu1 %v6831_v54  ;;  %v6852_v54 = vld [vmem:[#allocation2 + $0xb50] ss:$24 sps:$4 sm:$0xff]   ;;  %v6860_v4 = vld [vmem:[#allocation2 + $0xb84] ss:$24 sps:$4 sm:$0xff]  }
 0x1dc   :  { %v7686_v36 = vadd.f32 %v4053_v20, %v3840_v40  ;;  %v4055_v21 = vpop.f32.mrb[10].mxu0  ;;  %4726 = vmatpush1.bf16.msra.mxu0 %v6834_v23  ;;  %v3844_v28 = vpop.f32.mrb[11].mxu1  ;;  %4301 = vmatprep.subr.bf16.mxu1 %v6839_v62  ;;  %v6855_v0 = vld [vmem:[#allocation2 + $0xb78] ss:$24 sps:$4 sm:$0xff]   ;;  %v6863_v20 = vld [vmem:[#allocation2 + $0xbac] ss:$24 sps:$4 sm:$0xff]  }
 0x1dd   :  { %v7688_v22 = vadd.f32 %v4055_v21, %v3842_v14  ;;  %v4057_v58 = vpop.f32.mrb[11].mxu0  ;;  %4727 = vmatprep.subr.bf16.mxu0 %v6842_v61  ;;  %v6857_v61 = vld [vmem:[#allocation2 + $0xb7c] ss:$24 sps:$4 sm:$0xff]   ;;  %v6858_v40 = vld [vmem:[#allocation2 + $0xb80] ss:$24 sps:$4 sm:$0xff]  }
 0x1de   :  { %v7690_v24 = vadd.f32 %v4057_v58, %v3844_v28  ;;  %v6866_v14 = vld [vmem:[#allocation2 + $0xbb4] ss:$24 sps:$4 sm:$0xff]   ;;  %v6861_v21 = vld [vmem:[#allocation2 + $0xba8] ss:$24 sps:$4 sm:$0xff]   ;;  %v6872_v28 = vld [vmem:[#allocation2 + $0xbe4] ss:$24 sps:$4 sm:$0xff]  }
 0x1df   :  { %4302 = vmatpush1.bf16.msra.mxu1 %v6837_v52  ;;  %v6864_v52 = vld [vmem:[#allocation2 + $0xbb0] ss:$24 sps:$4 sm:$0xff]  }
 0x1e0   :  { %4728 = vmatpush1.bf16.msra.mxu0 %v6840_v2  ;;  %4303 = vmatprep.subr.bf16.mxu1 %v6845_v26  ;;  %v6869_v2 = vld [vmem:[#allocation2 + $0xbdc] ss:$24 sps:$4 sm:$0xff]   ;;  %v6867_v58 = vld [vmem:[#allocation2 + $0xbd8] ss:$24 sps:$4 sm:$0xff]  }
 0x1e1   :  { %4729 = vmatprep.subr.bf16.mxu0 %v6848_v31  ;;  %v3848_v46 = vpop.f32.mrb[12].mxu1  ;;  %v6870_v26 = vld [vmem:[#allocation2 + $0xbe0] ss:$24 sps:$4 sm:$0xff]   ;;  %v6875_v31 = vld [vmem:[#allocation2 + $0xc0c] ss:$24 sps:$4 sm:$0xff]  }
 0x1e2   :  { %v4061_v17 = vpop.f32.mrb[12].mxu0  ;;  %v3850_v48 = vpop.f32.mrb[13].mxu1 }
 0x1e3   :  { %v7692_v7 = vadd.f32 %v4061_v17, %v3848_v46  ;;  %v4063_v47 = vpop.f32.mrb[13].mxu0  ;;  %v3852_v49 = vpop.f32.mrb[14].mxu1  ;;  %4304 = vmatpush1.bf16.msra.mxu1 %v6843_v33  ;;  %v6878_v33 = vld [vmem:[#allocation2 + $0xc14] ss:$24 sps:$4 sm:$0xff]   ;;  %v6884_v46 = vld [vmem:[#allocation2 + $0xc44] ss:$24 sps:$4 sm:$0xff]  }
 0x1e4   :  { %v7694_v29 = vadd.f32 %v4063_v47, %v3850_v48  ;;  %v4065_v50 = vpop.f32.mrb[14].mxu0  ;;  %4730 = vmatpush1.bf16.msra.mxu0 %v6846_v32  ;;  %v3853_v23 = vpop.f32.mrb[15].mxu1  ;;  %4305 = vmatprep.subr.bf16.mxu1 %v6851_v38  ;;  %v6873_v32 = vld [vmem:[#allocation2 + $0xc08] ss:$24 sps:$4 sm:$0xff]   ;;  %v6879_v17 = vld [vmem:[#allocation2 + $0xc38] ss:$24 sps:$4 sm:$0xff]  }
 0x1e5   :  { %v4066_v62 = vpop.f32.mrb[15].mxu0  ;;  %4731 = vmatprep.subr.bf16.mxu0 %v6854_v39  ;;  %v6876_v38 = vld [vmem:[#allocation2 + $0xc10] ss:$24 sps:$4 sm:$0xff]   ;;  %v6881_v39 = vld [vmem:[#allocation2 + $0xc3c] ss:$24 sps:$4 sm:$0xff]  }
 0x1e6   :  { %v6882_v48 = vld [vmem:[#allocation2 + $0xc40] ss:$24 sps:$4 sm:$0xff]   ;;  %v6887_v47 = vld [vmem:[#allocation2 + $0xc6c] ss:$24 sps:$4 sm:$0xff]  }
 0x1e7   :  { %4306 = vmatpush1.bf16.msra.mxu1 %v6849_v55  ;;  %v6890_v49 = vld [vmem:[#allocation2 + $0xc74] ss:$24 sps:$4 sm:$0xff]   ;;  %v6885_v50 = vld [vmem:[#allocation2 + $0xc68] ss:$24 sps:$4 sm:$0xff]   ;;  %v6891_v23 = vld [vmem:[#allocation2 + $0xc98] ss:$24 sps:$4 sm:$0xff]  }
 0x1e8   :  { %4732 = vmatpush1.bf16.msra.mxu0 %v6852_v54  ;;  %4307 = vmatprep.subr.bf16.mxu1 %v6857_v61  ;;  %v6888_v55 = vld [vmem:[#allocation2 + $0xc70] ss:$24 sps:$4 sm:$0xff]   ;;  %v6893_v54 = vld [vmem:[#allocation2 + $0xc9c] ss:$24 sps:$4 sm:$0xff]   ;;  %v6894_v62 = vld [vmem:[#allocation2 + $0xca0] ss:$24 sps:$4 sm:$0xff]  }
 0x1e9   :  { %4733 = vmatprep.subr.bf16.mxu0 %v6860_v4  ;;  %v6899_v61 = vld [vmem:[#allocation2 + $0xccc] ss:$24 sps:$4 sm:$0xff]   ;;  %v6897_v4 = vld [vmem:[#allocation2 + $0xcc8] ss:$24 sps:$4 sm:$0xff]  }
 0x1eb   :  { %4308 = vmatpush1.bf16.msra.mxu1 %v6855_v0  ;;  %v6900_v0 = vld [vmem:[#allocation2 + $0xcd0] ss:$24 sps:$4 sm:$0xff]  }
 0x1ec   :  { %4734 = vmatpush1.bf16.msra.mxu0 %v6858_v40  ;;  %4309 = vmatprep.subr.bf16.mxu1 %v6863_v20  ;;  %v6905_v40 = vld [vmem:[#allocation2 + $0xcfc] ss:$24 sps:$4 sm:$0xff]   ;;  %v6903_v20 = vld [vmem:[#allocation2 + $0xcf8] ss:$24 sps:$4 sm:$0xff]  }
 0x1ed   :  { %4735 = vmatprep.subr.bf16.mxu0 %v6866_v14  ;;  %v6906_v14 = vld [vmem:[#allocation2 + $0xd00] ss:$24 sps:$4 sm:$0xff]  }
 0x1ef   :  { %4310 = vmatpush1.bf16.msra.mxu1 %v6861_v21  ;;  %v6911_v21 = vld [vmem:[#allocation2 + $0xd2c] ss:$24 sps:$4 sm:$0xff]  }
 0x1f0   :  { %4736 = vmatpush1.bf16.msra.mxu0 %v6864_v52  ;;  %4311 = vmatprep.subr.bf16.mxu1 %v6869_v2  ;;  %v6909_v52 = vld [vmem:[#allocation2 + $0xd28] ss:$24 sps:$4 sm:$0xff]  }
 0x1f1   :  { %4737 = vmatprep.subr.bf16.mxu0 %v6872_v28  ;;  %v6912_v2 = vld [vmem:[#allocation2 + $0xd30] ss:$24 sps:$4 sm:$0xff]   ;;  %v6917_v28 = vld [vmem:[#allocation2 + $0xd5c] ss:$24 sps:$4 sm:$0xff]  }
 0x1f3   :  { %4312 = vmatpush1.bf16.msra.mxu1 %v6867_v58  ;;  %v6915_v58 = vld [vmem:[#allocation2 + $0xd58] ss:$24 sps:$4 sm:$0xff]  }
 0x1f4   :  { %4738 = vmatpush1.bf16.msra.mxu0 %v6870_v26  ;;  %4352 = vmatprep.subr.bf16.mxu1 %v6875_v31  ;;  %v6918_v26 = vld [vmem:[#allocation2 + $0xd60] ss:$24 sps:$4 sm:$0xff]   ;;  %v6923_v31 = vld [vmem:[#allocation2 + $0xd8c] ss:$24 sps:$4 sm:$0xff]  }
 0x1f5   :  { %4778 = vmatprep.subr.bf16.mxu0 %v6878_v33  ;;  %v6921_v33 = vld [vmem:[#allocation2 + $0xd88] ss:$24 sps:$4 sm:$0xff]  }
 0x1f6   :  { %4314 = vmatmul.mubr.bf16.vlgmr.msra.gmra.mrb[16].mxu1 %v7254_v15 }
 0x1f7   :  { %4740 = vmatmul.mubr.bf16.vlgmr.msra.gmra.mrb[16].mxu0 %v7254_v15  ;;  %4353 = vmatpush1.bf16.msra.mxu1 %v6873_v32  ;;  %v6896_v15 = vld [vmem:[#allocation2 + $0xca4] ss:$24 sps:$4 sm:$0xff]   ;;  %v6924_v32 = vld [vmem:[#allocation2 + $0xd90] ss:$24 sps:$4 sm:$0xff]  }
 0x1f8   :  { %4779 = vmatpush1.bf16.msra.mxu0 %v6876_v38  ;;  %4354 = vmatprep.subr.bf16.mxu1 %v6881_v39  ;;  %v6929_v38 = vld [vmem:[#allocation2 + $0xdbc] ss:$24 sps:$4 sm:$0xff]   ;;  %v6927_v39 = vld [vmem:[#allocation2 + $0xdb8] ss:$24 sps:$4 sm:$0xff]  }
 0x1f9   :  { %4780 = vmatprep.subr.bf16.mxu0 %v6884_v46  ;;  %4323 = vmatprep.mubr.bf16.mxu1 %v7273_v35  ;;  %v6930_v46 = vld [vmem:[#allocation2 + $0xdc0] ss:$24 sps:$4 sm:$0xff]  }
 0x1fa   :  { %4749 = vmatprep.mubr.bf16.mxu0 %v7273_v35  ;;  %v6902_v35 = vld [vmem:[#allocation2 + $0xcd4] ss:$24 sps:$4 sm:$0xff]  }
 0x1fb   :  { %4355 = vmatpush1.bf16.msra.mxu1 %v6879_v17  ;;  %v6935_v17 = vld [vmem:[#allocation2 + $0xdec] ss:$24 sps:$4 sm:$0xff]  }
 0x1fc   :  { %4781 = vmatpush1.bf16.msra.mxu0 %v6882_v48  ;;  %4356 = vmatprep.subr.bf16.mxu1 %v6887_v47  ;;  %v6938_v48 = vld [vmem:[#allocation2 + $0xdf4] ss:$24 sps:$4 sm:$0xff]   ;;  %v6933_v47 = vld [vmem:[#allocation2 + $0xde8] ss:$24 sps:$4 sm:$0xff]  }
 0x1fd   :  { %4782 = vmatprep.subr.bf16.mxu0 %v6890_v49  ;;  %v6941_v49 = vld [vmem:[#allocation2 + $0xe1c] ss:$24 sps:$4 sm:$0xff]  }
 0x1fe   :  { %4324 = vmatmul.mubr.bf16.gmra.mrb[20].mxu1 %v7290_v41 }
 0x1ff   :  { %4750 = vmatmul.mubr.bf16.gmra.mrb[20].mxu0 %v7290_v41  ;;  %4357 = vmatpush1.bf16.msra.mxu1 %v6885_v50  ;;  %v6908_v41 = vld [vmem:[#allocation2 + $0xd04] ss:$24 sps:$4 sm:$0xff]  }
 0x200   :  { %4783 = vmatpush1.bf16.msra.mxu0 %v6888_v55  ;;  %4358 = vmatprep.subr.bf16.mxu1 %v6893_v54  ;;  %v6944_v50 = vld [vmem:[#allocation2 + $0xe24] ss:$24 sps:$4 sm:$0xff]   ;;  %v6939_v55 = vld [vmem:[#allocation2 + $0xe18] ss:$24 sps:$4 sm:$0xff]  }
 0x201   :  { %4784 = vmatprep.subr.bf16.mxu0 %v6896_v15  ;;  %4333 = vmatprep.mubr.bf16.mxu1 %v7309_v57  ;;  %v6942_v54 = vld [vmem:[#allocation2 + $0xe20] ss:$24 sps:$4 sm:$0xff]   ;;  %v6947_v15 = vld [vmem:[#allocation2 + $0xe4c] ss:$24 sps:$4 sm:$0xff]  }
 0x202   :  { %4759 = vmatprep.mubr.bf16.mxu0 %v7309_v57  ;;  %v6914_v57 = vld [vmem:[#allocation2 + $0xd34] ss:$24 sps:$4 sm:$0xff]  }
 0x203   :  { %4359 = vmatpush1.bf16.msra.mxu1 %v6891_v23  ;;  %v6950_v23 = vld [vmem:[#allocation2 + $0xe54] ss:$24 sps:$4 sm:$0xff]  }
 0x204   :  { %4785 = vmatpush1.bf16.msra.mxu0 %v6894_v62  ;;  %4360 = vmatprep.subr.bf16.mxu1 %v6899_v61  ;;  %v6945_v62 = vld [vmem:[#allocation2 + $0xe48] ss:$24 sps:$4 sm:$0xff]  }
 0x205   :  { %4786 = vmatprep.subr.bf16.mxu0 %v6902_v35  ;;  %v6948_v61 = vld [vmem:[#allocation2 + $0xe50] ss:$24 sps:$4 sm:$0xff]   ;;  %v6953_v35 = vld [vmem:[#allocation2 + $0xe7c] ss:$24 sps:$4 sm:$0xff]  }
 0x206   :  { %4334 = vmatmul.mubr.bf16.gmra.mrb[24].mxu1 %v7326_v63 }
 0x207   :  { %4760 = vmatmul.mubr.bf16.gmra.mrb[24].mxu0 %v7326_v63  ;;  %4361 = vmatpush1.bf16.msra.mxu1 %v6897_v4  ;;  %v6920_v63 = vld [vmem:[#allocation2 + $0xd64] ss:$24 sps:$4 sm:$0xff]  }
 0x208   :  { %4787 = vmatpush1.bf16.msra.mxu0 %v6900_v0  ;;  %4362 = vmatprep.subr.bf16.mxu1 %v6905_v40  ;;  %v6956_v4 = vld [vmem:[#allocation2 + $0xe84] ss:$24 sps:$4 sm:$0xff]   ;;  %v6951_v0 = vld [vmem:[#allocation2 + $0xe78] ss:$24 sps:$4 sm:$0xff]  }
 0x209   :  { %4788 = vmatprep.subr.bf16.mxu0 %v6908_v41  ;;  %4343 = vmatprep.mubr.bf16.mxu1 %v7338_v8  ;;  %v6954_v40 = vld [vmem:[#allocation2 + $0xe80] ss:$24 sps:$4 sm:$0xff]   ;;  %v6959_v41 = vld [vmem:[#allocation2 + $0xeac] ss:$24 sps:$4 sm:$0xff]  }
 0x20a   :  { %4769 = vmatprep.mubr.bf16.mxu0 %v7338_v8  ;;  %v6926_v8 = vld [vmem:[#allocation2 + $0xd94] ss:$24 sps:$4 sm:$0xff]  }
 0x20b   :  { %4363 = vmatpush1.bf16.msra.mxu1 %v6903_v20  ;;  %v6962_v20 = vld [vmem:[#allocation2 + $0xeb4] ss:$24 sps:$4 sm:$0xff]  }
 0x20c   :  { %4789 = vmatpush1.bf16.msra.mxu0 %v6906_v14  ;;  %4364 = vmatprep.subr.bf16.mxu1 %v6911_v21  ;;  %v6957_v14 = vld [vmem:[#allocation2 + $0xea8] ss:$24 sps:$4 sm:$0xff]  }
 0x20d   :  { %4790 = vmatprep.subr.bf16.mxu0 %v6914_v57  ;;  %v6960_v21 = vld [vmem:[#allocation2 + $0xeb0] ss:$24 sps:$4 sm:$0xff]   ;;  %v6965_v57 = vld [vmem:[#allocation2 + $0xedc] ss:$24 sps:$4 sm:$0xff]  }
 0x20e   :  { %4344 = vmatmul.mubr.bf16.gmra.mrb[28].mxu1 %v7350_v19 }
 0x20f   :  { %4770 = vmatmul.mubr.bf16.gmra.mrb[28].mxu0 %v7350_v19  ;;  %4365 = vmatpush1.bf16.msra.mxu1 %v6909_v52  ;;  %v6932_v19 = vld [vmem:[#allocation2 + $0xdc4] ss:$24 sps:$4 sm:$0xff]  }
 0x210   :  { %4791 = vmatpush1.bf16.msra.mxu0 %v6912_v2  ;;  %4366 = vmatprep.subr.bf16.mxu1 %v6917_v28  ;;  %v6968_v52 = vld [vmem:[#allocation2 + $0xee4] ss:$24 sps:$4 sm:$0xff]   ;;  %v6963_v2 = vld [vmem:[#allocation2 + $0xed8] ss:$24 sps:$4 sm:$0xff]  }
 0x211   :  { %4792 = vmatprep.subr.bf16.mxu0 %v6920_v63  ;;  %4384 = vmatprep.mubr.bf16.mxu1 %v7369_v27  ;;  %v6966_v28 = vld [vmem:[#allocation2 + $0xee0] ss:$24 sps:$4 sm:$0xff]   ;;  %v6971_v63 = vld [vmem:[#allocation2 + $0xf0c] ss:$24 sps:$4 sm:$0xff]  }
 0x212   :  { %4810 = vmatprep.mubr.bf16.mxu0 %v7369_v27  ;;  %v6936_v27 = vld [vmem:[#allocation2 + $0xdf0] ss:$24 sps:$4 sm:$0xff]  }
 0x213   :  { %4367 = vmatpush1.bf16.msra.mxu1 %v6915_v58  ;;  %v6974_v58 = vld [vmem:[#allocation2 + $0xf14] ss:$24 sps:$4 sm:$0xff]  }
 0x214   :  { %4793 = vmatpush1.bf16.msra.mxu0 %v6918_v26  ;;  %4368 = vmatprep.subr.bf16.mxu1 %v6923_v31  ;;  %v6969_v26 = vld [vmem:[#allocation2 + $0xf08] ss:$24 sps:$4 sm:$0xff]  }
 0x215   :  { %4794 = vmatprep.subr.bf16.mxu0 %v6926_v8  ;;  %v6972_v31 = vld [vmem:[#allocation2 + $0xf10] ss:$24 sps:$4 sm:$0xff]   ;;  %v6977_v8 = vld [vmem:[#allocation2 + $0xf3c] ss:$24 sps:$4 sm:$0xff]  }
 0x217   :  { %4369 = vmatpush1.bf16.msra.mxu1 %v6921_v33  ;;  %v6980_v33 = vld [vmem:[#allocation2 + $0xf44] ss:$24 sps:$4 sm:$0xff]  }
 0x218   :  { %4795 = vmatpush1.bf16.msra.mxu0 %v6924_v32  ;;  %4370 = vmatprep.subr.bf16.mxu1 %v6929_v38  ;;  %v6975_v32 = vld [vmem:[#allocation2 + $0xf38] ss:$24 sps:$4 sm:$0xff]  }
 0x219   :  { %4796 = vmatprep.subr.bf16.mxu0 %v6932_v19  ;;  %v6978_v38 = vld [vmem:[#allocation2 + $0xf40] ss:$24 sps:$4 sm:$0xff]   ;;  %v6983_v19 = vld [vmem:[#allocation2 + $0xf6c] ss:$24 sps:$4 sm:$0xff]  }
 0x21b   :  { %4371 = vmatpush1.bf16.msra.mxu1 %v6927_v39  ;;  %v6986_v39 = vld [vmem:[#allocation2 + $0xf74] ss:$24 sps:$4 sm:$0xff]  }
 0x21c   :  { %4797 = vmatpush1.bf16.msra.mxu0 %v6930_v46  ;;  %4372 = vmatprep.subr.bf16.mxu1 %v6935_v17  ;;  %v6981_v46 = vld [vmem:[#allocation2 + $0xf68] ss:$24 sps:$4 sm:$0xff]  }
 0x21d   :  { %4798 = vmatprep.subr.bf16.mxu0 %v6938_v48  ;;  %v6984_v17 = vld [vmem:[#allocation2 + $0xf70] ss:$24 sps:$4 sm:$0xff]   ;;  %v6989_v48 = vld [vmem:[#allocation2 + $0xf9c] ss:$24 sps:$4 sm:$0xff]  }
 0x21f   :  { %4373 = vmatpush1.bf16.msra.mxu1 %v6933_v47  ;;  %v6987_v47 = vld [vmem:[#allocation2 + $0xf98] ss:$24 sps:$4 sm:$0xff]  }
 0x220   :  { %4799 = vmatpush1.bf16.msra.mxu0 %v6936_v27  ;;  %4374 = vmatprep.subr.bf16.mxu1 %v6941_v49  ;;  %v6990_v27 = vld [vmem:[#allocation2 + $0xfa0] ss:$24 sps:$4 sm:$0xff]   ;;  %v6995_v49 = vld [vmem:[#allocation2 + $0xfcc] ss:$24 sps:$4 sm:$0xff]  }
 0x221   :  { %4800 = vmatprep.subr.bf16.mxu0 %v6944_v50  ;;  %v6993_v50 = vld [vmem:[#allocation2 + $0xfc8] ss:$24 sps:$4 sm:$0xff]  }
 0x223   :  { %4375 = vmatpush1.bf16.msra.mxu1 %v6939_v55  ;;  %v6996_v55 = vld [vmem:[#allocation2 + $0xfd0] ss:$24 sps:$4 sm:$0xff]  }
 0x224   :  { %4801 = vmatpush1.bf16.msra.mxu0 %v6942_v54  ;;  %4376 = vmatprep.subr.bf16.mxu1 %v6947_v15  ;;  %v7001_v54 = vld [vmem:[#allocation2 + $0xffc] ss:$24 sps:$4 sm:$0xff]   ;;  %v6999_v15 = vld [vmem:[#allocation2 + $0xff8] ss:$24 sps:$4 sm:$0xff]  }
 0x225   :  { %4802 = vmatprep.subr.bf16.mxu0 %v6950_v23  ;;  %v7002_v23 = vld [vmem:[#allocation2 + $0x1000] ss:$24 sps:$4 sm:$0xff]  }
 0x227   :  { %4377 = vmatpush1.bf16.msra.mxu1 %v6945_v62  ;;  %v7007_v62 = vld [vmem:[#allocation2 + $0x102c] ss:$24 sps:$4 sm:$0xff]  }
 0x228   :  { %4803 = vmatpush1.bf16.msra.mxu0 %v6948_v61  ;;  %4378 = vmatprep.subr.bf16.mxu1 %v6953_v35  ;;  %v7005_v61 = vld [vmem:[#allocation2 + $0x1028] ss:$24 sps:$4 sm:$0xff]  }
 0x229   :  { %4804 = vmatprep.subr.bf16.mxu0 %v6956_v4  ;;  %v7008_v35 = vld [vmem:[#allocation2 + $0x1030] ss:$24 sps:$4 sm:$0xff]   ;;  %v7013_v4 = vld [vmem:[#allocation2 + $0x105c] ss:$24 sps:$4 sm:$0xff]  }
 0x22b   :  { %4379 = vmatpush1.bf16.msra.mxu1 %v6951_v0  ;;  %v7011_v0 = vld [vmem:[#allocation2 + $0x1058] ss:$24 sps:$4 sm:$0xff]  }
 0x22c   :  { %4805 = vmatpush1.bf16.msra.mxu0 %v6954_v40  ;;  %4380 = vmatprep.subr.bf16.mxu1 %v6959_v41  ;;  %v7014_v40 = vld [vmem:[#allocation2 + $0x1060] ss:$24 sps:$4 sm:$0xff]   ;;  %v7019_v41 = vld [vmem:[#allocation2 + $0x108c] ss:$24 sps:$4 sm:$0xff]  }
 0x22d   :  { %4806 = vmatprep.subr.bf16.mxu0 %v6962_v20  ;;  %v7017_v20 = vld [vmem:[#allocation2 + $0x1088] ss:$24 sps:$4 sm:$0xff]  }
 0x22f   :  { %4381 = vmatpush1.bf16.msra.mxu1 %v6957_v14  ;;  %v7020_v14 = vld [vmem:[#allocation2 + $0x1090] ss:$24 sps:$4 sm:$0xff]  }
 0x230   :  { %4807 = vmatpush1.bf16.msra.mxu0 %v6960_v21  ;;  %4382 = vmatprep.subr.bf16.mxu1 %v6965_v57  ;;  %v7025_v21 = vld [vmem:[#allocation2 + $0x10bc] ss:$24 sps:$4 sm:$0xff]   ;;  %v7023_v57 = vld [vmem:[#allocation2 + $0x10b8] ss:$24 sps:$4 sm:$0xff]  }
 0x231   :  { %4808 = vmatprep.subr.bf16.mxu0 %v6968_v52  ;;  %v7026_v52 = vld [vmem:[#allocation2 + $0x10c0] ss:$24 sps:$4 sm:$0xff]  }
 0x233   :  { %4383 = vmatpush1.bf16.msra.mxu1 %v6963_v2  ;;  %v7031_v2 = vld [vmem:[#allocation2 + $0x10ec] ss:$24 sps:$4 sm:$0xff]  }
 0x234   :  { %4809 = vmatpush1.bf16.msra.mxu0 %v6966_v28  ;;  %4423 = vmatprep.subr.bf16.mxu1 %v6971_v63  ;;  %v7034_v28 = vld [vmem:[#allocation2 + $0x10f4] ss:$24 sps:$4 sm:$0xff]   ;;  %v7029_v63 = vld [vmem:[#allocation2 + $0x10e8] ss:$24 sps:$4 sm:$0xff]  }
 0x235   :  { %4849 = vmatprep.subr.bf16.mxu0 %v6974_v58  ;;  %v7037_v58 = vld [vmem:[#allocation2 + $0x111c] ss:$24 sps:$4 sm:$0xff]  }
 0x236   :  { %4385 = vmatmul.mubr.bf16.vlgmr.msra.gmra.mrb[16].mxu1 %v7389_v12 }
 0x237   :  { %4811 = vmatmul.mubr.bf16.vlgmr.msra.gmra.mrb[16].mxu0 %v7389_v12  ;;  %4424 = vmatpush1.bf16.msra.mxu1 %v6969_v26  ;;  %v6992_v12 = vld [vmem:[#allocation2 + $0xfa4] ss:$24 sps:$4 sm:$0xff]  }
 0x238   :  { %4850 = vmatpush1.bf16.msra.mxu0 %v6972_v31  ;;  %4425 = vmatprep.subr.bf16.mxu1 %v6977_v8  ;;  %v7040_v26 = vld [vmem:[#allocation2 + $0x1124] ss:$24 sps:$4 sm:$0xff]   ;;  %v7035_v31 = vld [vmem:[#allocation2 + $0x1118] ss:$24 sps:$4 sm:$0xff]  }
 0x239   :  { %4851 = vmatprep.subr.bf16.mxu0 %v6980_v33  ;;  %4394 = vmatprep.mubr.bf16.mxu1 %v7402_v25  ;;  %v7038_v8 = vld [vmem:[#allocation2 + $0x1120] ss:$24 sps:$4 sm:$0xff]   ;;  %v7043_v33 = vld [vmem:[#allocation2 + $0x114c] ss:$24 sps:$4 sm:$0xff]  }
 0x23a   :  { %4820 = vmatprep.mubr.bf16.mxu0 %v7402_v25  ;;  %v6998_v25 = vld [vmem:[#allocation2 + $0xfd4] ss:$24 sps:$4 sm:$0xff]  }
 0x23b   :  { %4426 = vmatpush1.bf16.msra.mxu1 %v6975_v32  ;;  %v7046_v32 = vld [vmem:[#allocation2 + $0x1154] ss:$24 sps:$4 sm:$0xff]  }
 0x23c   :  { %4852 = vmatpush1.bf16.msra.mxu0 %v6978_v38  ;;  %4427 = vmatprep.subr.bf16.mxu1 %v6983_v19  ;;  %v7041_v38 = vld [vmem:[#allocation2 + $0x1148] ss:$24 sps:$4 sm:$0xff]  }
 0x23d   :  { %4853 = vmatprep.subr.bf16.mxu0 %v6986_v39  ;;  %v7044_v19 = vld [vmem:[#allocation2 + $0x1150] ss:$24 sps:$4 sm:$0xff]   ;;  %v7049_v39 = vld [vmem:[#allocation2 + $0x117c] ss:$24 sps:$4 sm:$0xff]  }
 0x23e   :  { %4395 = vmatmul.mubr.bf16.gmra.mrb[20].mxu1 %v7425_v42 }
 0x23f   :  { %4821 = vmatmul.mubr.bf16.gmra.mrb[20].mxu0 %v7425_v42  ;;  %4428 = vmatpush1.bf16.msra.mxu1 %v6981_v46  ;;  %v7004_v42 = vld [vmem:[#allocation2 + $0x1004] ss:$24 sps:$4 sm:$0xff]  }
 0x240   :  { %4854 = vmatpush1.bf16.msra.mxu0 %v6984_v17  ;;  %4429 = vmatprep.subr.bf16.mxu1 %v6989_v48  ;;  %v7052_v46 = vld [vmem:[#allocation2 + $0x1184] ss:$24 sps:$4 sm:$0xff]   ;;  %v7047_v17 = vld [vmem:[#allocation2 + $0x1178] ss:$24 sps:$4 sm:$0xff]  }
 0x241   :  { %4855 = vmatprep.subr.bf16.mxu0 %v6992_v12  ;;  %4404 = vmatprep.mubr.bf16.mxu1 %v7438_v53  ;;  %v7050_v48 = vld [vmem:[#allocation2 + $0x1180] ss:$24 sps:$4 sm:$0xff]   ;;  %v7055_v12 = vld [vmem:[#allocation2 + $0x11ac] ss:$24 sps:$4 sm:$0xff]  }
 0x242   :  { %4830 = vmatprep.mubr.bf16.mxu0 %v7438_v53  ;;  %v7010_v53 = vld [vmem:[#allocation2 + $0x1034] ss:$24 sps:$4 sm:$0xff]  }
 0x243   :  { %4430 = vmatpush1.bf16.msra.mxu1 %v6987_v47  ;;  %v7058_v47 = vld [vmem:[#allocation2 + $0x11b4] ss:$24 sps:$4 sm:$0xff]  }
 0x244   :  { %4856 = vmatpush1.bf16.msra.mxu0 %v6990_v27  ;;  %4431 = vmatprep.subr.bf16.mxu1 %v6995_v49  ;;  %v7053_v27 = vld [vmem:[#allocation2 + $0x11a8] ss:$24 sps:$4 sm:$0xff]  }
 0x245   :  { %4857 = vmatprep.subr.bf16.mxu0 %v6998_v25  ;;  %v7056_v49 = vld [vmem:[#allocation2 + $0x11b0] ss:$24 sps:$4 sm:$0xff]   ;;  %v7061_v25 = vld [vmem:[#allocation2 + $0x11dc] ss:$24 sps:$4 sm:$0xff]  }
 0x246   :  { %4405 = vmatmul.mubr.bf16.gmra.mrb[24].mxu1 %v7458_v3 }
 0x247   :  { %4831 = vmatmul.mubr.bf16.gmra.mrb[24].mxu0 %v7458_v3  ;;  %4432 = vmatpush1.bf16.msra.mxu1 %v6993_v50  ;;  %v7016_v3 = vld [vmem:[#allocation2 + $0x1064] ss:$24 sps:$4 sm:$0xff]  }
 0x248   :  { %4858 = vmatpush1.bf16.msra.mxu0 %v6996_v55  ;;  %4433 = vmatprep.subr.bf16.mxu1 %v7001_v54  ;;  %v7064_v50 = vld [vmem:[#allocation2 + $0x11e4] ss:$24 sps:$4 sm:$0xff]   ;;  %v7059_v55 = vld [vmem:[#allocation2 + $0x11d8] ss:$24 sps:$4 sm:$0xff]  }
 0x249   :  { %4859 = vmatprep.subr.bf16.mxu0 %v7004_v42  ;;  %4414 = vmatprep.mubr.bf16.mxu1 %v7468_v16  ;;  %v7062_v54 = vld [vmem:[#allocation2 + $0x11e0] ss:$24 sps:$4 sm:$0xff]  }
 0x24a   :  { %4840 = vmatprep.mubr.bf16.mxu0 %v7468_v16  ;;  %v7022_v16 = vld [vmem:[#allocation2 + $0x1094] ss:$24 sps:$4 sm:$0xff]  }
 0x24b   :  { %4434 = vmatpush1.bf16.msra.mxu1 %v6999_v15 }
 0x24c   :  { %4860 = vmatpush1.bf16.msra.mxu0 %v7002_v23  ;;  %4435 = vmatprep.subr.bf16.mxu1 %v7007_v62 }
 0x24d   :  { %4861 = vmatprep.subr.bf16.mxu0 %v7010_v53 }
 0x24e   :  { %4415 = vmatmul.mubr.bf16.gmra.mrb[28].mxu1 %v7488_v34 }
 0x24f   :  { %4841 = vmatmul.mubr.bf16.gmra.mrb[28].mxu0 %v7488_v34  ;;  %4436 = vmatpush1.bf16.msra.mxu1 %v7005_v61  ;;  %v7028_v34 = vld [vmem:[#allocation2 + $0x10c4] ss:$24 sps:$4 sm:$0xff]  }
 0x250   :  { %4862 = vmatpush1.bf16.msra.mxu0 %v7008_v35  ;;  %4437 = vmatprep.subr.bf16.mxu1 %v7013_v4 }
 0x251   :  { %4863 = vmatprep.subr.bf16.mxu0 %v7016_v3  ;;  %4455 = vmatprep.mubr.bf16.mxu1 %v7498_v45  ;;  %v4934_v3 = vadd.f32 %v7678_v44, %v7676_v43 }
 0x252   :  { %4881 = vmatprep.mubr.bf16.mxu0 %v7498_v45  ;;  %v7032_v45 = vld [vmem:[#allocation2 + $0x10f0] ss:$24 sps:$4 sm:$0xff]  }
 0x253   :  { %4438 = vmatpush1.bf16.msra.mxu1 %v7011_v0 }
 0x254   :  { %4864 = vmatpush1.bf16.msra.mxu0 %v7014_v40  ;;  %4439 = vmatprep.subr.bf16.mxu1 %v7019_v41 }
 0x255   :  { %4865 = vmatprep.subr.bf16.mxu0 %v7022_v16 }
 0x257   :  { %4440 = vmatpush1.bf16.msra.mxu1 %v7017_v20  ;;  %v4941_v20 = vadd.f32 %v7682_v60, %v7680_v11 }
 0x258   :  { %4866 = vmatpush1.bf16.msra.mxu0 %v7020_v14  ;;  %4441 = vmatprep.subr.bf16.mxu1 %v7025_v21 }
 0x259   :  { %4867 = vmatprep.subr.bf16.mxu0 %v7028_v34 }
 0x25b   :  { %4442 = vmatpush1.bf16.msra.mxu1 %v7023_v57 }
 0x25c   :  { %4868 = vmatpush1.bf16.msra.mxu0 %v7026_v52  ;;  %4443 = vmatprep.subr.bf16.mxu1 %v7031_v2 }
 0x25d   :  { %4869 = vmatprep.subr.bf16.mxu0 %v7034_v28 }
 0x25f   :  { %4444 = vmatpush1.bf16.msra.mxu1 %v7029_v63 }
 0x260   :  { %4870 = vmatpush1.bf16.msra.mxu0 %v7032_v45  ;;  %4445 = vmatprep.subr.bf16.mxu1 %v7037_v58 }
 0x261   :  { %4871 = vmatprep.subr.bf16.mxu0 %v7040_v26 }
 0x263   :  { %4446 = vmatpush1.bf16.msra.mxu1 %v7035_v31 }
 0x264   :  { %4872 = vmatpush1.bf16.msra.mxu0 %v7038_v8  ;;  %4447 = vmatprep.subr.bf16.mxu1 %v7043_v33  ;;  %v4948_v8 = vadd.f32 %v7686_v36, %v7684_v5 }
 0x265   :  { %4873 = vmatprep.subr.bf16.mxu0 %v7046_v32 }
 0x267   :  { %4448 = vmatpush1.bf16.msra.mxu1 %v7041_v38 }
 0x268   :  { %4874 = vmatpush1.bf16.msra.mxu0 %v7044_v19  ;;  %4449 = vmatprep.subr.bf16.mxu1 %v7049_v39  ;;  %v4955_v39 = vadd.f32 %v7690_v24, %v7688_v22 }
 0x269   :  { %4875 = vmatprep.subr.bf16.mxu0 %v7052_v46 }
 0x26b   :  { %4450 = vmatpush1.bf16.msra.mxu1 %v7047_v17 }
 0x26c   :  { %4876 = vmatpush1.bf16.msra.mxu0 %v7050_v48  ;;  %4451 = vmatprep.subr.bf16.mxu1 %v7055_v12 }
 0x26d   :  { %4877 = vmatprep.subr.bf16.mxu0 %v7058_v47 }
 0x26f   :  { %4452 = vmatpush1.bf16.msra.mxu1 %v7053_v27 }
 0x270   :  { %4878 = vmatpush1.bf16.msra.mxu0 %v7056_v49  ;;  %4453 = vmatprep.subr.bf16.mxu1 %v7061_v25 }
 0x271   :  { %4879 = vmatprep.subr.bf16.mxu0 %v7064_v50 }
 0x273   :  { %4454 = vmatpush1.bf16.msra.mxu1 %v7059_v55 }
 0x274   :  { %4880 = vmatpush1.bf16.msra.mxu0 %v7062_v54  ;;  %v4963_v54 = vsel %vm4962_vm0, %v7692_v7, 0.0 }
 0x276   :  { %4456 = vmatmul.mubr.bf16.vlgmr.msra.gmra.mrb[16].mxu1 %v7524_v9 }
 0x277   :  { %4882 = vmatmul.mubr.bf16.vlgmr.msra.gmra.mrb[16].mxu0 %v7524_v9  ;;  %4465 = vmatprep.mubr.bf16.mxu1 %v7534_v30  ;;  %v4920_v9 = vadd.f32 %v7666_v51, %v7664_v1 }
 0x278   :  { %4891 = vmatprep.mubr.bf16.mxu0 %v7534_v30 }
 0x27e   :  { %4466 = vmatmul.mubr.bf16.gmra.mrb[20].mxu1 %v7560_v56 }
 0x27f   :  { %4892 = vmatmul.mubr.bf16.gmra.mrb[20].mxu0 %v7560_v56  ;;  %4475 = vmatprep.mubr.bf16.mxu1 %v7570_v6 }
 0x280   :  { %4901 = vmatprep.mubr.bf16.mxu0 %v7570_v6  ;;  %v4927_v6 = vadd.f32 %v7670_v10, %v7668_v13 }
 0x286   :  { %4476 = vmatmul.mubr.bf16.gmra.mrb[24].mxu1 %v7590_v37 }
 0x287   :  { %4902 = vmatmul.mubr.bf16.gmra.mrb[24].mxu0 %v7590_v37  ;;  %4485 = vmatprep.mubr.bf16.mxu1 %v7600_v59 }
 0x288   :  { %4911 = vmatprep.mubr.bf16.mxu0 %v7600_v59 }
 0x28e   :  { %4486 = vmatmul.mubr.bf16.gmra.mrb[28].mxu1 %v7614_v18 }
 0x28f   :  { %4912 = vmatmul.mubr.bf16.gmra.mrb[28].mxu0 %v7614_v18 }
 0x349   :  { %v7744_v30 = vpop.f32.mrb[16].mxu1 }
 0x34a   :  { %v7746_v56 = vpop.f32.mrb[16].mxu0  ;;  %v4921_v37 = vadd.f32 %v4920_v9, %v7744_v30  ;;  %v7751_v42 = vpop.f32.mrb[17].mxu1  ;;  %v4964_v9 = vsel %vm4962_vm0, %v7694_v29, 0.0 }
 0x34b   :  { %v7753_v15 = vpop.f32.mrb[17].mxu0  ;;  %v7755_v59 = vpop.f32.mrb[18].mxu1 }
 0x34c   :  { %v7757_v23 = vpop.f32.mrb[18].mxu0  ;;  %v4922_v18 = vadd.f32 %v4921_v37, %v7751_v42  ;;  %v4928_v62 = vadd.f32 %v4927_v6, %v7755_v59  ;;  %v7761_v53 = vpop.f32.mrb[19].mxu1 }
 0x34d   :  { %v7763_v61 = vpop.f32.mrb[19].mxu0 }
 0x34e   :  { %v4929_v35 = vadd.f32 %v4928_v62, %v7761_v53  ;;  %v4923_v4 = vadd.f32 %v4922_v18, %v7746_v56 }
 0x350   :  { %v4924_v0 = vadd.f32 %v4923_v4, %v7753_v15  ;;  %v4930_v40 = vadd.f32 %v4929_v35, %v7757_v23  ;;  %v4965_v35 = vadd.f32 %v4964_v9, %v4963_v54 }
 0x351   :  { %v7771_v41 = vpop.f32.mrb[20].mxu1 }
 0x352   :  { %v7773_v16 = vpop.f32.mrb[20].mxu0  ;;  %v4935_v14 = vadd.f32 %v4934_v3, %v7771_v41  ;;  %4925 = vadd.xlane.f32.xlu0 %v4924_v0  ;;  %v7780_v34 = vpop.f32.mrb[21].mxu1  ;;  %v4931_v57 = vadd.f32 %v4930_v40, %v7763_v61 }
 0x353   :  { %v7778_v21 = vpop.f32.mrb[21].mxu0  ;;  %v7783_v52 = vpop.f32.mrb[22].mxu1 }
 0x354   :  { %v7785_v2 = vpop.f32.mrb[22].mxu0  ;;  %v4936_v28 = vadd.f32 %v4935_v14, %v7780_v34  ;;  %v4942_v63 = vadd.f32 %v4941_v20, %v7783_v52  ;;  %4932 = vadd.xlane.f32.xlu1 %v4931_v57  ;;  %v7791_v58 = vpop.f32.mrb[23].mxu1 }
 0x355   :  { %v7789_v45 = vpop.f32.mrb[23].mxu0 }
 0x356   :  { %v4943_v26 = vadd.f32 %v4942_v63, %v7791_v58  ;;  %v4937_v31 = vadd.f32 %v4936_v28, %v7773_v16 }
 0x358   :  { %v4938_v33 = vadd.f32 %v4937_v31, %v7778_v21  ;;  %v4944_v32 = vadd.f32 %v4943_v26, %v7785_v2 }
 0x359   :  { %v7799_v38 = vpop.f32.mrb[24].mxu1 }
 0x35a   :  { %v7801_v19 = vpop.f32.mrb[24].mxu0  ;;  %v4949_v46 = vadd.f32 %v4948_v8, %v7799_v38  ;;  %4939 = vadd.xlane.f32.xlu1 %v4938_v33  ;;  %v7808_v48 = vpop.f32.mrb[25].mxu1  ;;  %v4945_v12 = vadd.f32 %v4944_v32, %v7789_v45 }
 0x35b   :  { %v7806_v17 = vpop.f32.mrb[25].mxu0  ;;  %v7811_v47 = vpop.f32.mrb[26].mxu1 }
 0x35c   :  { %v7813_v27 = vpop.f32.mrb[26].mxu0  ;;  %v4950_v49 = vadd.f32 %v4949_v46, %v7808_v48  ;;  %v4956_v25 = vadd.f32 %v4955_v39, %v7811_v47  ;;  %4946 = vadd.xlane.f32.xlu0 %v4945_v12  ;;  %v7819_v55 = vpop.f32.mrb[27].mxu1 }
 0x35d   :  { %v7817_v50 = vpop.f32.mrb[27].mxu0 }
 0x35e   :  { %v4957_v6 = vadd.f32 %v4956_v25, %v7819_v55  ;;  %v4951_v37 = vadd.f32 %v4950_v49, %v7801_v19 }
 0x360   :  { %v4952_v18 = vadd.f32 %v4951_v37, %v7806_v17  ;;  %v4958_v62 = vadd.f32 %v4957_v6, %v7813_v27 }
 0x361   :  { %v7829_v4 = vpop.f32.mrb[28].mxu1 }
 0x362   :  { %v7831_v3 = vpop.f32.mrb[28].mxu0  ;;  %v4966_v0 = vsel %vm4962_vm0, %v7829_v4, 0.0  ;;  %4953 = vadd.xlane.f32.xlu1 %v4952_v18  ;;  %v7837_v20 = vpop.f32.mrb[29].mxu1  ;;  %v4959_v14 = vadd.f32 %v4958_v62, %v7817_v50 }
 0x363   :  { %v7835_v40 = vpop.f32.mrb[29].mxu0  ;;  %v4967_v57 = vadd.f32 %v4966_v0, %v4965_v35  ;;  %v4968_v28 = vsel %vm4962_vm0, %v7837_v20, 0.0  ;;  %v4491_v63 = vpop.f32.mrb[30].mxu1  ;;  %v4970_v32 = vsel %vm4962_vm0, %v7831_v3, 0.0 }
 0x364   :  { %v4917_v26 = vpop.f32.mrb[30].mxu0  ;;  %v4492_v31 = vpop.f32.mrb[31].mxu1  ;;  %v4972_v46 = vsel %vm4962_vm0, %v7835_v40, 0.0 }
 0x365   :  { %v4918_v8 = vpop.f32.mrb[31].mxu0  ;;  %v4969_v33 = vadd.f32 %v4968_v28, %v4967_v57 }
 0x367   :  { %v4971_v39 = vadd.f32 %v4970_v32, %v4969_v33 }
 0x369   :  { %v4973_v12 = vadd.f32 %v4972_v46, %v4971_v39 }
 0x36b   :  { %4974 = vadd.xlane.f32.xlu0 %v4973_v12 }
 0x36f   :  { %4960 = vadd.xlane.f32.xlu0 %v4959_v14 }
 0x3df   :  { %v4926_v49 = vpop.xlane.xlu0 %4925 }
 0x3e0   :  { %v4977_v25 = vmul.f32 0.0013020834, %v4926_v49 }
 0x3e1   :  { %v4933_v54 = vpop.xlane.xlu1 %4932 }
 0x3e2   :  { %v4978_v9 = vmul.f32 0.0013020834, %v4933_v54  ;;  %v7847_v6 = vsub.f32 %v7664_v1, %v4977_v25  ;;  %v7850_v37 = vsub.f32 %v7666_v51, %v4977_v25  ;;  %v7853_v18 = vsub.f32 %v7744_v30, %v4977_v25 }
 0x3e3   :  { %v7856_v62 = vsub.f32 %v7751_v42, %v4977_v25  ;;  %v7859_v35 = vsub.f32 %v7746_v56, %v4977_v25  ;;  %v7877_v28 = vsub.f32 %v7753_v15, %v4977_v25 }
 0x3e4   :  { %v5026_v0 = vmul.f32 %v7847_v6, %v7847_v6  ;;  %v5027_v14 = vmul.f32 %v7850_v37, %v7850_v37  ;;  %v7866_v1 = vsub.f32 %v7668_v13, %v4978_v9  ;;  %v7869_v51 = vsub.f32 %v7670_v10, %v4978_v9 }
 0x3e5   :  { %v5028_v30 = vmul.f32 %v7853_v18, %v7853_v18  ;;  %v7874_v57 = vsub.f32 %v7755_v59, %v4978_v9  ;;  %v7880_v63 = vsub.f32 %v7761_v53, %v4978_v9  ;;  %v5029_v31 = vmul.f32 %v7856_v62, %v7856_v62 }
 0x3e6   :  { %v5068_v42 = vadd.f32 %v5027_v14, %v5026_v0  ;;  %v5032_v13 = vmul.f32 %v7866_v1, %v7866_v1  ;;  %v5033_v10 = vmul.f32 %v7869_v51, %v7869_v51  ;;  %v5030_v59 = vmul.f32 %v7859_v35, %v7859_v35 }
 0x3e7   :  { %v4940_v56 = vpop.xlane.xlu1 %4939  ;;  %v7891_v15 = vsub.f32 %v7757_v23, %v4978_v9  ;;  %v7894_v53 = vsub.f32 %v7763_v61, %v4978_v9  ;;  %v5034_v32 = vmul.f32 %v7874_v57, %v7874_v57  ;;  %v5031_v54 = vmul.f32 %v7877_v28, %v7877_v28 }
 0x3e8   :  { %v4979_v26 = vmul.f32 0.0013020834, %v4940_v56  ;;  %v5069_v8 = vadd.f32 %v5068_v42, %v5028_v30  ;;  %v5075_v39 = vadd.f32 %v5033_v10, %v5032_v13  ;;  %v5035_v23 = vmul.f32 %v7880_v63, %v7880_v63 }
 0x3e9   :  { %v4947_v33 = vpop.xlane.xlu0 %4946  ;;  %v5036_v30 = vmul.f32 %v7891_v15, %v7891_v15  ;;  %v5037_v42 = vmul.f32 %v7894_v53, %v7894_v53 }
 0x3ea   :  { %v4980_v46 = vmul.f32 0.0013020834, %v4947_v33  ;;  %v5070_v12 = vadd.f32 %v5069_v8, %v5029_v31  ;;  %v7899_v49 = vsub.f32 %v7676_v43, %v4979_v26  ;;  %v7902_v25 = vsub.f32 %v7678_v44, %v4979_v26 }
 0x3eb   :  { %v5076_v61 = vadd.f32 %v5075_v39, %v5034_v32  ;;  %v7909_v9 = vsub.f32 %v7771_v41, %v4979_v26  ;;  %v7912_v14 = vsub.f32 %v7780_v34, %v4979_v26  ;;  %v7923_v41 = vsub.f32 %v7773_v16, %v4979_v26 }
 0x3ec   :  { %v5071_v0 = vadd.f32 %v5070_v12, %v5030_v59  ;;  %v5038_v43 = vmul.f32 %v7899_v49, %v7899_v49  ;;  %v5039_v44 = vmul.f32 %v7902_v25, %v7902_v25  ;;  %v7928_v31 = vsub.f32 %v7680_v11, %v4980_v46 }
 0x3ed   :  { %v5077_v56 = vadd.f32 %v5076_v61, %v5035_v23  ;;  %v5040_v34 = vmul.f32 %v7909_v9, %v7909_v9  ;;  %v7931_v33 = vsub.f32 %v7778_v21, %v4979_v26  ;;  %v7934_v32 = vsub.f32 %v7682_v60, %v4980_v46 }
 0x3ee   :  { %v5072_v13 = vadd.f32 %v5071_v0, %v5031_v54  ;;  %v5082_v10 = vadd.f32 %v5039_v44, %v5038_v43  ;;  %v7937_v39 = vsub.f32 %v7783_v52, %v4980_v46  ;;  %v5041_v12 = vmul.f32 %v7912_v14, %v7912_v14 }
 0x3ef   :  { %v4954_v59 = vpop.xlane.xlu1 %4953  ;;  %v5078_v8 = vadd.f32 %v5077_v56, %v5036_v30  ;;  %v7942_v11 = vsub.f32 %v7791_v58, %v4980_v46  ;;  %v5044_v21 = vmul.f32 %v7928_v31, %v7928_v31  ;;  %v5045_v60 = vmul.f32 %v7934_v32, %v7934_v32 }
 0x3f0   :  { %v4981_v16 = vmul.f32 0.0013020834, %v4954_v59  ;;  %5073 = vadd.xlane.f32.xlu1 %v5072_v13  ;;  %v5083_v54 = vadd.f32 %v5082_v10, %v5040_v34  ;;  %v5042_v52 = vmul.f32 %v7923_v41, %v7923_v41  ;;  %v7951_v61 = vsub.f32 %v7785_v2, %v4980_v46 }
 0x3f1   :  { %v5079_v23 = vadd.f32 %v5078_v8, %v5037_v42  ;;  %v5046_v0 = vmul.f32 %v7937_v39, %v7937_v39  ;;  %v5089_v58 = vadd.f32 %v5045_v60, %v5044_v21  ;;  %v5043_v42 = vmul.f32 %v7931_v33, %v7931_v33 }
 0x3f2   :  { %v5084_v26 = vadd.f32 %v5083_v54, %v5041_v12  ;;  %v7956_v43 = vsub.f32 %v7684_v5, %v4981_v16  ;;  %v7959_v44 = vsub.f32 %v7686_v36, %v4981_v16  ;;  %v7962_v30 = vsub.f32 %v7799_v38, %v4981_v16 }
 0x3f3   :  { %5080 = vadd.xlane.f32.xlu0 %v5079_v23  ;;  %v7967_v2 = vsub.f32 %v7789_v45, %v4980_v46  ;;  %v5047_v13 = vmul.f32 %v7942_v11, %v7942_v11  ;;  %v5090_v34 = vadd.f32 %v5089_v58, %v5046_v0  ;;  %v7972_v5 = vsub.f32 %v7808_v48, %v4981_v16 }
 0x3f4   :  { %v5085_v56 = vadd.f32 %v5084_v26, %v5042_v52  ;;  %v5050_v36 = vmul.f32 %v7956_v43, %v7956_v43  ;;  %v5051_v38 = vmul.f32 %v7959_v44, %v7959_v44  ;;  %v7979_v59 = vsub.f32 %v7801_v19, %v4981_v16 }
 0x3f5   :  { %v5048_v45 = vmul.f32 %v7951_v61, %v7951_v61  ;;  %v5091_v46 = vadd.f32 %v5090_v34, %v5047_v13  ;;  %v5052_v8 = vmul.f32 %v7962_v30, %v7962_v30  ;;  %v5049_v54 = vmul.f32 %v7967_v2, %v7967_v2 }
 0x3f6   :  { %v5086_v10 = vadd.f32 %v5085_v56, %v5043_v42  ;;  %v5096_v12 = vadd.f32 %v5051_v38, %v5050_v36  ;;  %v7988_v23 = vsub.f32 %v7806_v17, %v4981_v16  ;;  %v5053_v19 = vmul.f32 %v7972_v5, %v7972_v5 }
 0x3f7   :  { %v5092_v60 = vadd.f32 %v5091_v46, %v5048_v45  ;;  %v5054_v26 = vmul.f32 %v7979_v59, %v7979_v59 }
 0x3f8   :  { %5087 = vadd.xlane.f32.xlu1 %v5086_v10  ;;  %v4975_v48 = vpop.xlane.xlu0 %4974  ;;  %v5097_v52 = vadd.f32 %v5096_v12, %v5052_v8  ;;  %v5055_v17 = vmul.f32 %v7988_v23, %v7988_v23 }
 0x3f9   :  { %v4983_v21 = vmul.f32 0.0013020834, %v4975_v48  ;;  %v5093_v0 = vadd.f32 %v5092_v60, %v5049_v54 }
 0x3fa   :  { %v5098_v58 = vadd.f32 %v5097_v52, %v5053_v19 }
 0x3fb   :  { %v7995_v42 = vsub.f32 %v7692_v7, %v4983_v21  ;;  %v7998_v56 = vsub.f32 %v7694_v29, %v4983_v21  ;;  %v8003_v16 = vsub.f32 %v7829_v4, %v4983_v21  ;;  %v8006_v34 = vsub.f32 %v7837_v20, %v4983_v21  ;;  %5094 = vadd.xlane.f32.xlu0 %v5093_v0 }
 0x3fc   :  { %v4961_v13 = vpop.xlane.xlu0 %4960  ;;  %v8009_v36 = vsub.f32 %v7831_v3, %v4983_v21  ;;  %v5099_v7 = vadd.f32 %v5098_v58, %v5054_v26  ;;  %v8016_v45 = vsub.f32 %v7835_v40, %v4983_v21 }
 0x3fd   :  { %v4982_v38 = vmul.f32 0.0013020834, %v4961_v13  ;;  %v5062_v29 = vmul.f32 %v7995_v42, %v7995_v42  ;;  %v5063_v10 = vmul.f32 %v7998_v56, %v7998_v56  ;;  %v5064_v4 = vmul.f32 %v8003_v16, %v8003_v16 }
 0x3fe   :  { %v5065_v20 = vmul.f32 %v8006_v34, %v8006_v34  ;;  %v5100_v3 = vadd.f32 %v5099_v7, %v5055_v17  ;;  %v5066_v40 = vmul.f32 %v8009_v36, %v8009_v36 }
 0x3ff   :  { %v5110_v46 = vsel %vm4962_vm0, %v5062_v29, 0.0  ;;  %v5111_v8 = vsel %vm4962_vm0, %v5063_v10, 0.0  ;;  %v8025_v12 = vsub.f32 %v7688_v22, %v4982_v38  ;;  %v5113_v54 = vsel %vm4962_vm0, %v5064_v4, 0.0 }
 0x400   :  { %v5112_v48 = vadd.f32 %v5111_v8, %v5110_v46  ;;  %5101 = vadd.xlane.f32.xlu1 %v5100_v3  ;;  %v8031_v21 = vsub.f32 %v7690_v24, %v4982_v38  ;;  %v8034_v60 = vsub.f32 %v7811_v47, %v4982_v38  ;;  %v5067_v22 = vmul.f32 %v8016_v45, %v8016_v45 }
 0x401   :  { %v5056_v52 = vmul.f32 %v8025_v12, %v8025_v12  ;;  %v5115_v26 = vsel %vm4962_vm0, %v5065_v20, 0.0  ;;  %v8042_v0 = vsub.f32 %v7819_v55, %v4982_v38  ;;  %v5117_v13 = vsel %vm4962_vm0, %v5066_v40, 0.0 }
 0x402   :  { %8347 = vst [vmem:[#allocation9_spill] sm:$0xff] %v8034_v60  ;;  %v5114_v19 = vadd.f32 %v5113_v54, %v5112_v48  ;;  %v5057_v58 = vmul.f32 %v8031_v21, %v8031_v21  ;;  %v8048_v47 = vsub.f32 %v7813_v27, %v4982_v38  ;;  %v5058_v17 = vmul.f32 %v8034_v60, %v8034_v60 }
 0x403   :  { %8348 = vst [vmem:[#allocation10_spill] sm:$0xff] %v8042_v0  ;;  %v5119_v10 = vsel %vm4962_vm0, %v5067_v22, 0.0  ;;  %v8054_v4 = vsub.f32 %v7817_v50, %v4982_v38  ;;  %v5059_v55 = vmul.f32 %v8042_v0, %v8042_v0  ;;  %v5188_v54 = vlaneseq }
 0x404   :  { %v5116_v24 = vadd.f32 %v5115_v26, %v5114_v19  ;;  %8349 = vst [vmem:[#allocation11_spill] sm:$0xff] %v8048_v47  ;;  %v5103_v7 = vadd.f32 %v5057_v58, %v5056_v52  ;;  %v5060_v46 = vmul.f32 %v8048_v47, %v8048_v47 }
 0x405   :  { %8350 = vst [vmem:[#allocation12_spill] sm:$0xff] %v8054_v4  ;;  %v5061_v8 = vmul.f32 %v8054_v4, %v8054_v4  ;;  %v5189_v22 = vshrl.u32 %v5188_v54, 7 }
 0x406   :  { %v5118_v29 = vadd.f32 %v5117_v13, %v5116_v24  ;;  %v5104_v20 = vadd.f32 %v5103_v7, %v5058_v17  ;;  %v5186_v24 = vld [vmem:[#allocation4] sm:$0x3f] }
 0x407   :  { %v5190_v13 = vsub.s32 0, %v5189_v22  ;;  %v5194_v7 = vsub.s32 1, %v5189_v22 }
 0x408   :  { %v5120_v3 = vadd.f32 %v5119_v10, %v5118_v29  ;;  %v5105_v27 = vadd.f32 %v5104_v20, %v5059_v55  ;;  %v5198_v29 = vsub.s32 2, %v5189_v22  ;;  %v5202_v10 = vsub.s32 3, %v5189_v22 }
 0x409   :  { %v5206_v20 = vsub.s32 4, %v5189_v22 }
 0x40a   :  { %5121 = vadd.xlane.f32.xlu1 %v5120_v3  ;;  %v5106_v48 = vadd.f32 %v5105_v27, %v5060_v46  ;;  %v5210_v3 = vsub.s32 5, %v5189_v22  ;;  %v5260_v46 = vld [vmem:[#allocation6] sm:$0x3f]  ;;  %v8068_v54 = vrot.slane %v5186_v24, %v5202_v10 }
 0x40b   :  { %v8082_v4 = vrot.slane %v5260_v46, %v5206_v20 }
 0x40c   :  { %v5107_v40 = vadd.f32 %v5106_v48, %v5061_v8  ;;  %v8062_v8 = vrot.slane %v5186_v24, %v5190_v13  ;;  %v8064_v48 = vrot.slane %v5186_v24, %v5194_v7 }
 0x40e   :  { %5108 = vadd.xlane.f32.xlu0 %v5107_v40  ;;  %v8066_v40 = vrot.slane %v5186_v24, %v5198_v29 }
 0x47d   :  { %v5074_v19 = vpop.xlane.xlu1 %5073 }
 0x47e   :  { %v5123_v50 = vmul.f32 0.0013020834, %v5074_v19 }
 0x480   :  { %v5130_v38 = vadd.f32 1e-05, %v5123_v50  ;;  %v5081_v52 = vpop.xlane.xlu0 %5080  ;;  %v8070_v50 = vrot.slane %v5186_v24, %v5206_v20 }
 0x481   :  { %v5124_v26 = vmul.f32 0.0013020834, %v5081_v52  ;;  %v8074_v52 = vrot.slane %v5260_v46, %v5190_v13  ;;  %v8088_v13 = vrot.slane %v5260_v46, %v5210_v3 }
 0x482   :  { %7065 = vrsqrt.f32 %v5130_v38  ;;  %v8072_v38 = vrot.slane %v5186_v24, %v5210_v3 }
 0x483   :  { %v5131_v58 = vadd.f32 1e-05, %v5124_v26 }
 0x485   :  { %7067 = vrsqrt.f32 %v5131_v58  ;;  %v5088_v17 = vpop.xlane.xlu1 %5087  ;;  %v8076_v58 = vrot.slane %v5260_v46, %v5194_v7 }
 0x486   :  { %v5125_v55 = vmul.f32 0.0013020834, %v5088_v17  ;;  %v8078_v17 = vrot.slane %v5260_v46, %v5198_v29 }
 0x488   :  { %v5132_v27 = vadd.f32 1e-05, %v5125_v55  ;;  %v5095_v19 = vpop.xlane.xlu0 %5094  ;;  %v8080_v55 = vrot.slane %v5260_v46, %v5202_v10 }
 0x489   :  { %v5126_v26 = vmul.f32 0.0013020834, %v5095_v19 }
 0x48a   :  { %7069 = vrsqrt.f32 %v5132_v27 }
 0x48b   :  { %v5133_v29 = vadd.f32 1e-05, %v5126_v26 }
 0x48c   :  { %v7066_v22 = vpop.eup %7065 }
 0x48d   :  { %v5144_v47 = vmul.f32 %v7066_v22, %v7847_v6  ;;  %v5145_v27 = vmul.f32 %v7066_v22, %v7850_v37  ;;  %v5146_v0 = vmul.f32 %v7066_v22, %v7853_v18  ;;  %v5147_v24 = vmul.f32 %v7066_v22, %v7856_v62 }
 0x48e   :  { %v5148_v19 = vmul.f32 %v7066_v22, %v7859_v35  ;;  %v5149_v7 = vmul.f32 %v7066_v22, %v7877_v28  ;;  %v5102_v22 = vpop.xlane.xlu1 %5101  ;;  %7071 = vrsqrt.f32 %v5133_v29 }
 0x48f   :  { %v7068_v60 = vpop.eup %7067  ;;  %v5218_v10 = vmul.f32 %v8062_v8, %v5144_v47  ;;  %v5219_v20 = vmul.f32 %v8064_v48, %v5145_v27  ;;  %v5220_v6 = vmul.f32 %v8066_v40, %v5146_v0  ;;  %v5221_v37 = vmul.f32 %v8068_v54, %v5147_v24 }
 0x490   :  { %v5222_v18 = vmul.f32 %v8070_v50, %v5148_v19  ;;  %v5223_v62 = vmul.f32 %v8072_v38, %v5149_v7  ;;  %v5150_v3 = vmul.f32 %v7068_v60, %v7866_v1  ;;  %v5151_v35 = vmul.f32 %v7068_v60, %v7869_v51 }
 0x491   :  { %v5292_v28 = vadd.f32 %v8074_v52, %v5218_v10  ;;  %v5293_v46 = vadd.f32 %v8076_v58, %v5219_v20  ;;  %v5294_v47 = vadd.f32 %v8078_v17, %v5220_v6  ;;  %v5295_v26 = vadd.f32 %v8080_v55, %v5221_v37 }
 0x492   :  { %v5296_v0 = vadd.f32 %v8082_v4, %v5222_v18  ;;  %v5297_v27 = vadd.f32 %v8088_v13, %v5223_v62  ;;  %v5152_v24 = vmul.f32 %v7068_v60, %v7874_v57  ;;  %v5153_v19 = vmul.f32 %v7068_v60, %v7880_v63 }
 0x493   :  { %5334 = vst [vmem:[%s8342_s4] sm:$0xff] %v5292_v28  ;;  %5335 = vst [vmem:[%s8342_s4 + $0x8] sm:$0xff] %v5293_v46  ;;  %v5154_v1 = vmul.f32 %v7068_v60, %v7891_v15  ;;  %v5155_v51 = vmul.f32 %v7068_v60, %v7894_v53  ;;  %v5224_v57 = vmul.f32 %v8062_v8, %v5150_v3  ;;  %v5127_v15 = vmul.f32 0.0013020834, %v5102_v22 }
 0x494   :  { %5336 = vst [vmem:[%s8342_s4 + $0x10] sm:$0xff] %v5294_v47  ;;  %5337 = vst [vmem:[%s8342_s4 + $0x18] sm:$0xff] %v5295_v26  ;;  %v5225_v63 = vmul.f32 %v8064_v48, %v5151_v35  ;;  %v7070_v7 = vpop.eup %7069  ;;  %v5226_v10 = vmul.f32 %v8066_v40, %v5152_v24  ;;  %v5227_v20 = vmul.f32 %v8068_v54, %v5153_v19 }
 0x495   :  { %5338 = vst [vmem:[%s8342_s4 + $0x20] sm:$0xff] %v5296_v0  ;;  %5339 = vst [vmem:[%s8342_s4 + $0x28] sm:$0xff] %v5297_v27  ;;  %v5228_v53 = vmul.f32 %v8070_v50, %v5154_v1  ;;  %v5229_v60 = vmul.f32 %v8072_v38, %v5155_v51  ;;  %v5298_v6 = vadd.f32 %v8074_v52, %v5224_v57  ;;  %v5134_v27 = vadd.f32 1e-05, %v5127_v15 }
 0x496   :  { %v5299_v37 = vadd.f32 %v8076_v58, %v5225_v63  ;;  %v5300_v18 = vadd.f32 %v8078_v17, %v5226_v10  ;;  %v5301_v62 = vadd.f32 %v8080_v55, %v5227_v20  ;;  %v5156_v3 = vmul.f32 %v7070_v7, %v7899_v49 }
 0x497   :  { %v5157_v35 = vmul.f32 %v7070_v7, %v7902_v25  ;;  %v5302_v28 = vadd.f32 %v8082_v4, %v5228_v53  ;;  %v5303_v29 = vadd.f32 %v8088_v13, %v5229_v60  ;;  %5340 = vst [vmem:[%s8342_s4 + $0x30] sm:$0xff] %v5298_v6  ;;  %v5158_v46 = vmul.f32 %v7070_v7, %v7909_v9  ;;  %v5122_v26 = vpop.xlane.xlu1 %5121 }
 0x498   :  { %5341 = vst [vmem:[%s8342_s4 + $0x38] sm:$0xff] %v5299_v37  ;;  %v5159_v47 = vmul.f32 %v7070_v7, %v7912_v14  ;;  %5342 = vst [vmem:[%s8342_s4 + $0x40] sm:$0xff] %v5300_v18  ;;  %v5160_v49 = vmul.f32 %v7070_v7, %v7923_v41  ;;  %v5161_v25 = vmul.f32 %v7070_v7, %v7931_v33  ;;  %v5129_v41 = vmul.f32 0.0013020834, %v5122_v26  ;;  %v7072_v53 = vpop.eup %7071 }
 0x499   :  { %5343 = vst [vmem:[%s8342_s4 + $0x48] sm:$0xff] %v5301_v62  ;;  %v5230_v22 = vmul.f32 %v8062_v8, %v5156_v3  ;;  %v5231_v0 = vmul.f32 %v8064_v48, %v5157_v35  ;;  %5344 = vst [vmem:[%s8342_s4 + $0x50] sm:$0xff] %v5302_v28  ;;  %v5232_v9 = vmul.f32 %v8066_v40, %v5158_v46  ;;  %7073 = vrsqrt.f32 %v5134_v27 }
 0x49a   :  { %5345 = vst [vmem:[%s8342_s4 + $0x58] sm:$0xff] %v5303_v29  ;;  %v5233_v14 = vmul.f32 %v8068_v54, %v5159_v47  ;;  %v5234_v33 = vmul.f32 %v8070_v50, %v5160_v49  ;;  %v5235_v24 = vmul.f32 %v8072_v38, %v5161_v25  ;;  %v5136_v63 = vadd.f32 1e-05, %v5129_v41 }
 0x49b   :  { %v5304_v19 = vadd.f32 %v8074_v52, %v5230_v22  ;;  %v5305_v1 = vadd.f32 %v8076_v58, %v5231_v0  ;;  %v5306_v51 = vadd.f32 %v8078_v17, %v5232_v9  ;;  %v5109_v20 = vpop.xlane.xlu0 %5108  ;;  %v5162_v60 = vmul.f32 %v7072_v53, %v7928_v31 }
 0x49c   :  { %v5307_v57 = vadd.f32 %v8080_v55, %v5233_v14  ;;  %v5308_v7 = vadd.f32 %v8082_v4, %v5234_v33  ;;  %v5309_v10 = vadd.f32 %v8088_v13, %v5235_v24  ;;  %7075 = vrsqrt.f32 %v5136_v63 }
 0x49d   :  { %5346 = vst [vmem:[%s8342_s4 + $0x60] sm:$0xff] %v5304_v19  ;;  %5347 = vst [vmem:[%s8342_s4 + $0x68] sm:$0xff] %v5305_v1  ;;  %v5128_v15 = vmul.f32 0.0013020834, %v5109_v20  ;;  %v5163_v6 = vmul.f32 %v7072_v53, %v7934_v32  ;;  %v5164_v37 = vmul.f32 %v7072_v53, %v7937_v39  ;;  %v5165_v18 = vmul.f32 %v7072_v53, %v7942_v11 }
 0x49e   :  { %5348 = vst [vmem:[%s8342_s4 + $0x70] sm:$0xff] %v5306_v51  ;;  %5349 = vst [vmem:[%s8342_s4 + $0x78] sm:$0xff] %v5307_v57  ;;  %v5166_v62 = vmul.f32 %v7072_v53, %v7951_v61  ;;  %v5167_v3 = vmul.f32 %v7072_v53, %v7967_v2  ;;  %v5236_v28 = vmul.f32 %v8062_v8, %v5162_v60 }
 0x49f   :  { %5350 = vst [vmem:[%s8342_s4 + $0x80] sm:$0xff] %v5308_v7  ;;  %5351 = vst [vmem:[%s8342_s4 + $0x88] sm:$0xff] %v5309_v10  ;;  %v5135_v35 = vadd.f32 1e-05, %v5128_v15  ;;  %v5237_v29 = vmul.f32 %v8064_v48, %v5163_v6  ;;  %v5238_v46 = vmul.f32 %v8066_v40, %v5164_v37  ;;  %v5239_v47 = vmul.f32 %v8068_v54, %v5165_v18 }
 0x4a0   :  { %v5240_v31 = vmul.f32 %v8070_v50, %v5166_v62  ;;  %v5241_v32 = vmul.f32 %v8072_v38, %v5167_v3  ;;  %v5310_v39 = vadd.f32 %v8074_v52, %v5236_v28 }
 0x4a1   :  { %7077 = vrsqrt.f32 %v5135_v35  ;;  %v5311_v11 = vadd.f32 %v8076_v58, %v5237_v29  ;;  %v5312_v61 = vadd.f32 %v8078_v17, %v5238_v46  ;;  %v5313_v2 = vadd.f32 %v8080_v55, %v5239_v47  ;;  %v8351_v29 = vld [vmem:[#allocation9_spill] sm:$0xff]  ;;  %v8352_v47 = vld [vmem:[#allocation10_spill] sm:$0xff] }
 0x4a2   :  { %v5314_v26 = vadd.f32 %v8082_v4, %v5240_v31  ;;  %v5315_v49 = vadd.f32 %v8088_v13, %v5241_v32  ;;  %5352 = vst [vmem:[%s8342_s4 + $0x90] sm:$0xff] %v5310_v39  ;;  %v8353_v32 = vld [vmem:[#allocation11_spill] sm:$0xff] }
 0x4a3   :  { %v7074_v25 = vpop.eup %7073  ;;  %5353 = vst [vmem:[%s8342_s4 + $0x98] sm:$0xff] %v5311_v11  ;;  %5354 = vst [vmem:[%s8342_s4 + $0xa0] sm:$0xff] %v5312_v61  ;;  %v8354_v11 = vld [vmem:[#allocation12_spill] sm:$0xff] }
 0x4a4   :  { %5355 = vst [vmem:[%s8342_s4 + $0xa8] sm:$0xff] %v5313_v2  ;;  %5356 = vst [vmem:[%s8342_s4 + $0xb0] sm:$0xff] %v5314_v26  ;;  %v5168_v22 = vmul.f32 %v7074_v25, %v7956_v43  ;;  %v5169_v0 = vmul.f32 %v7074_v25, %v7959_v44  ;;  %v5170_v9 = vmul.f32 %v7074_v25, %v7962_v30 }
 0x4a5   :  { %5357 = vst [vmem:[%s8342_s4 + $0xb8] sm:$0xff] %v5315_v49  ;;  %v5171_v14 = vmul.f32 %v7074_v25, %v7972_v5  ;;  %v5172_v41 = vmul.f32 %v7074_v25, %v7979_v59  ;;  %v5173_v33 = vmul.f32 %v7074_v25, %v7988_v23 }
 0x4a6   :  { %v7076_v27 = vpop.eup %7075  ;;  %v5242_v24 = vmul.f32 %v8062_v8, %v5168_v22  ;;  %v5243_v19 = vmul.f32 %v8064_v48, %v5169_v0  ;;  %v5244_v1 = vmul.f32 %v8066_v40, %v5170_v9 }
 0x4a7   :  { %v5245_v51 = vmul.f32 %v8068_v54, %v5171_v14  ;;  %v5246_v43 = vmul.f32 %v8070_v50, %v5172_v41  ;;  %v5247_v44 = vmul.f32 %v8072_v38, %v5173_v33  ;;  %v5180_v30 = vmul.f32 %v7076_v27, %v7995_v42 }
 0x4a8   :  { %v5181_v5 = vmul.f32 %v7076_v27, %v7998_v56  ;;  %v5316_v59 = vadd.f32 %v8074_v52, %v5242_v24  ;;  %v5317_v23 = vadd.f32 %v8076_v58, %v5243_v19  ;;  %v5318_v57 = vadd.f32 %v8078_v17, %v5244_v1 }
 0x4a9   :  { %v5319_v63 = vadd.f32 %v8080_v55, %v5245_v51  ;;  %v5320_v7 = vadd.f32 %v8082_v4, %v5246_v43  ;;  %v5321_v10 = vadd.f32 %v8088_v13, %v5247_v44  ;;  %v5182_v20 = vmul.f32 %v7076_v27, %v8003_v16 }
 0x4aa   :  { %v5183_v15 = vmul.f32 %v7076_v27, %v8006_v34  ;;  %5358 = vst [vmem:[%s8342_s4 + $0xc0] sm:$0xff] %v5316_v59  ;;  %5359 = vst [vmem:[%s8342_s4 + $0xc8] sm:$0xff] %v5317_v23  ;;  %v5184_v42 = vmul.f32 %v7076_v27, %v8009_v36  ;;  %v5185_v56 = vmul.f32 %v7076_v27, %v8016_v45 }
 0x4ab   :  { %v7078_v53 = vpop.eup %7077  ;;  %5360 = vst [vmem:[%s8342_s4 + $0xd0] sm:$0xff] %v5318_v57  ;;  %5361 = vst [vmem:[%s8342_s4 + $0xd8] sm:$0xff] %v5319_v63  ;;  %v5254_v16 = vmul.f32 %v8062_v8, %v5180_v30  ;;  %v5255_v34 = vmul.f32 %v8064_v48, %v5181_v5  ;;  %v5256_v60 = vmul.f32 %v8066_v40, %v5182_v20 }
 0x4ac   :  { %5362 = vst [vmem:[%s8342_s4 + $0xe0] sm:$0xff] %v5320_v7  ;;  %5363 = vst [vmem:[%s8342_s4 + $0xe8] sm:$0xff] %v5321_v10  ;;  %v5257_v6 = vmul.f32 %v8068_v54, %v5183_v15  ;;  %v5174_v36 = vmul.f32 %v7078_v53, %v8025_v12  ;;  %v5175_v45 = vmul.f32 %v7078_v53, %v8031_v21 }
 0x4ad   :  { %v5258_v37 = vmul.f32 %v8070_v50, %v5184_v42  ;;  %v5259_v18 = vmul.f32 %v8072_v38, %v5185_v56  ;;  %v5328_v62 = vadd.f32 %v8074_v52, %v5254_v16  ;;  %v5329_v3 = vadd.f32 %v8076_v58, %v5255_v34 }
 0x4ae   :  { %v5330_v35 = vadd.f32 %v8078_v17, %v5256_v60  ;;  %v5331_v28 = vadd.f32 %v8080_v55, %v5257_v6  ;;  %v5176_v46 = vmul.f32 %v7078_v53, %v8351_v29  ;;  %v5177_v31 = vmul.f32 %v7078_v53, %v8352_v47 }
 0x4af   :  { %v5332_v12 = vadd.f32 %v8082_v4, %v5258_v37  ;;  %v5333_v21 = vadd.f32 %v8088_v13, %v5259_v18  ;;  %5370 = vst [vmem:[%s8342_s4 + $0x120] sm:$0x1] %v5328_v62  ;;  %5371 = vst [vmem:[%s8342_s4 + $0x128] sm:$0x1] %v5329_v3  ;;  %v5178_v39 = vmul.f32 %v7078_v53, %v8353_v32 }
 0x4b0   :  { %v5179_v61 = vmul.f32 %v7078_v53, %v8354_v11  ;;  %5372 = vst [vmem:[%s8342_s4 + $0x130] sm:$0x1] %v5330_v35  ;;  %5373 = vst [vmem:[%s8342_s4 + $0x138] sm:$0x1] %v5331_v28  ;;  %v5248_v2 = vmul.f32 %v8062_v8, %v5174_v36  ;;  %v5249_v26 = vmul.f32 %v8064_v48, %v5175_v45 }
 0x4b1   :  { %v5250_v49 = vmul.f32 %v8066_v40, %v5176_v46  ;;  %v5251_v25 = vmul.f32 %v8068_v54, %v5177_v31  ;;  %5374 = vst [vmem:[%s8342_s4 + $0x140] sm:$0x1] %v5332_v12  ;;  %5375 = vst [vmem:[%s8342_s4 + $0x148] sm:$0x1] %v5333_v21  ;;  %v5252_v22 = vmul.f32 %v8070_v50, %v5178_v39 }
 0x4b2   :  { %v5253_v0 = vmul.f32 %v8072_v38, %v5179_v61  ;;  %v5322_v8 = vadd.f32 %v8074_v52, %v5248_v2  ;;  %v5323_v48 = vadd.f32 %v8076_v58, %v5249_v26 }
 0x4b3   :  { %v5324_v40 = vadd.f32 %v8078_v17, %v5250_v49  ;;  %v5325_v54 = vadd.f32 %v8080_v55, %v5251_v25  ;;  %v5326_v9 = vadd.f32 %v8082_v4, %v5252_v22 }
 0x4b4   :  { %v5327_v14 = vadd.f32 %v8088_v13, %v5253_v0  ;;  %5364 = vst [vmem:[%s8342_s4 + $0xf0] sm:$0xff] %v5322_v8  ;;  %5365 = vst [vmem:[%s8342_s4 + $0xf8] sm:$0xff] %v5323_v48 }
 0x4b5   :  { %5366 = vst [vmem:[%s8342_s4 + $0x100] sm:$0xff] %v5324_v40  ;;  %5367 = vst [vmem:[%s8342_s4 + $0x108] sm:$0xff] %v5325_v54 }
 0x4b6   :  { %5368 = vst [vmem:[%s8342_s4 + $0x110] sm:$0xff] %v5326_v9  ;;  %5369 = vst [vmem:[%s8342_s4 + $0x118] sm:$0xff] %v5327_v14 }
 0x4b7   :  { %5380 = vsyncpa [#allocation3], 1 }
 0x4b8   :  { %5381 = vsyncpa [#allocation5], 1 }

</bundles_post_ra>
